<compile_context>
chip_gen: v7x
topology: tpu7x:2x2x1
jax: 0.10.0
libtpu: 0.0.40
codegen_flags: <defaults>
</compile_context>

<pallas_src>
import jax
import jax.numpy as jnp
from jax.experimental import pallas as pl
from jax.experimental.pallas import tpu as pltpu


def _round_up(x, m):
    return ((x + m - 1) // m) * m


# ----------------------------------------------------------------------------
# Kernel body: 3-layer MLP with ReLU / ReLU / Softplus, f32 accumulation.
# ----------------------------------------------------------------------------
def _mlp_kernel(x_ref, w1_ref, b1_ref, w2_ref, b2_ref, w3_ref, b3_ref, o_ref):
    cdt = w1_ref.dtype  # matmul operand dtype (bf16 by default, f32 optional)

    # Layer 1: Linear(d_model_pad, 1024) + ReLU   (MXU, f32 accumulate)
    h1 = jnp.dot(x_ref[...], w1_ref[...],
                 preferred_element_type=jnp.float32) + b1_ref[...]
    h1 = jnp.maximum(h1, 0.0)

    # Layer 2: Linear(1024, 1024) + ReLU
    h2 = jnp.dot(h1.astype(cdt), w2_ref[...],
                 preferred_element_type=jnp.float32) + b2_ref[...]
    h2 = jnp.maximum(h2, 0.0)

    # Layer 3: Linear(1024, 128-padded) + Softplus (only first 4 lanes real)
    z = jnp.dot(h2.astype(cdt), w3_ref[...],
                preferred_element_type=jnp.float32) + b3_ref[...]
    # Numerically stable softplus (== torch.nn.Softplus(beta=1)):
    #   softplus(z) = max(z, 0) + log1p(exp(-|z|))
    sp = jnp.maximum(z, 0.0) + jnp.log1p(jnp.exp(-jnp.abs(z)))

    o_ref[...] = sp.astype(o_ref.dtype)


# ----------------------------------------------------------------------------
# One-time parameter preparation (pad + cast).  Call once, reuse per forward.
# ----------------------------------------------------------------------------
def prepare_params(params, *, weight_dtype=jnp.bfloat16):
    """Pad weights to lane-dense shapes and cast matmul operands once.

    params: (w1, b1, w2, b2, w3, b3); w* are (in, out), b* are (1, out).
    weight_dtype: matmul operand dtype (default bf16 for full-rate MXU);
                  None keeps the original (f32) weights.
    """
    w1, b1, w2, b2, w3, b3 = params
    d_model, hidden = w1.shape
    out_dim = w3.shape[1]

    k_pad = _round_up(d_model, 128)                # K dim of first matmul
    out_pad = _round_up(max(out_dim, 128), 128)    # lane-dense output slab
    wdt = jnp.dtype(weight_dtype) if weight_dtype is not None else w1.dtype

    w1_p = jnp.pad(w1, ((0, k_pad - d_model), (0, 0))).astype(wdt)
    w2_p = w2.astype(wdt)
    w3_p = jnp.pad(w3, ((0, 0), (0, out_pad - out_dim))).astype(wdt)
    b3_p = jnp.pad(b3, ((0, 0), (0, out_pad - out_dim)))   # bias stays f32

    return dict(
        w1=w1_p, b1=b1, w2=w2_p, b2=b2, w3=w3_p, b3=b3_p,
        d_model=d_model, hidden=hidden, out_dim=out_dim,
        k_pad=k_pad, out_pad=out_pad, weight_dtype=wdt,
    )


def _choose_tile_m(N):
    """Row tile: whole (padded) batch for small N; 256-multiples for large N,
    minimizing dead-row padding and preferring an even grid (v7x megacore)."""
    if N <= 512:
        return max(8, _round_up(N, 8))
    best_key, best_tm = None, 512
    for tm in (512, 256):                     # avoid 128-row tiles on v6e/v7x
        n_pad = _round_up(N, tm)
        grid = n_pad // tm
        key = (n_pad - N, grid % 2, -tm)      # min waste, prefer even grid, big tile
        if best_key is None or key < best_key:
            best_key, best_tm = key, tm
    return best_tm


# ----------------------------------------------------------------------------
# Forward pass.
# ----------------------------------------------------------------------------
def get_boxes_forward(so_rep, prepared, *, tile_m=None):
    """Run the GetBoxes MLP with a Pallas kernel.

    so_rep:   (N, d_model) f32 activations.
    prepared: dict from prepare_params (padded + cast weights, metadata).
    """
    N, d_model = so_rep.shape
    assert d_model == prepared["d_model"], "d_model mismatch vs prepared params"

    hidden = prepared["hidden"]
    out_dim = prepared["out_dim"]
    k_pad = prepared["k_pad"]
    out_pad = prepared["out_pad"]
    wdt = prepared["weight_dtype"]

    if tile_m is None:
        tile_m = _choose_tile_m(N)
    tile_m = max(8, _round_up(tile_m, 8))
    n_pad = _round_up(N, tile_m)

    # Cast x to the matmul operand dtype (fused with the pad) so the kernel's
    # x DMA is half-width on the bf16 path; no-op on the f32 path.
    x_p = so_rep if so_rep.dtype == wdt else so_rep.astype(wdt)
    if n_pad != N or k_pad != d_model:
        x_p = jnp.pad(x_p, ((0, n_pad - N), (0, k_pad - d_model)))

    # --- VMEM budget: Buffered(1) resident weights + double-buffered x/out ---
    w_itemsize = jnp.dtype(wdt).itemsize
    x_itemsize = jnp.dtype(x_p.dtype).itemsize
    vmem_bytes = (
        2 * tile_m * k_pad * x_itemsize                              # x tile (x2 buf)
        + 2 * tile_m * out_pad * 4                                   # out tile (x2 buf)
        + (k_pad * hidden + hidden * hidden + hidden * out_pad) * w_itemsize  # weights (x1)
        + 8 * (hidden + hidden + out_pad) * 4                        # biases, 8-sublane padded
        + (2 * hidden + out_pad) * tile_m * 4                        # h1/h2/z f32 temporaries
    )
    vmem_limit = min(40 << 20, max(16 << 20, int(vmem_bytes) + (4 << 20)))

    grid = (n_pad // tile_m,)
    resident = pl.Buffered(1)   # constant index_map => no double-buffering

    in_specs = [
        pl.BlockSpec((tile_m, k_pad), lambda i: (i, 0)),                      # x row tile
        pl.BlockSpec((k_pad, hidden), lambda i: (0, 0), pipeline_mode=resident),   # W1
        pl.BlockSpec((1, hidden), lambda i: (0, 0), pipeline_mode=resident),       # b1
        pl.BlockSpec((hidden, hidden), lambda i: (0, 0), pipeline_mode=resident),  # W2
        pl.BlockSpec((1, hidden), lambda i: (0, 0), pipeline_mode=resident),       # b2
        pl.BlockSpec((hidden, out_pad), lambda i: (0, 0), pipeline_mode=resident), # W3
        pl.BlockSpec((1, out_pad), lambda i: (0, 0), pipeline_mode=resident),      # b3
    ]
    out_specs = pl.BlockSpec((tile_m, out_pad), lambda i: (i, 0))

    # TODO(synk): for multi-million-row N, consider bf16 output or a 4-wide
    # out_spec to cut writeback amplification (measured choice; 128-slab kept).
    out_padded = pl.pallas_call(
        _mlp_kernel,
        out_shape=jax.ShapeDtypeStruct((n_pad, out_pad), so_rep.dtype),
        grid_spec=pltpu.PrefetchScalarGridSpec(
            num_scalar_prefetch=0,
            grid=grid,
            in_specs=in_specs,
            out_specs=out_specs,
        ),
        compiler_params=pltpu.CompilerParams(
            dimension_semantics=("parallel",),   # row tiles independent (megacore)
            vmem_limit_bytes=vmem_limit,
        ),
    )(x_p,
      prepared["w1"], prepared["b1"],
      prepared["w2"], prepared["b2"],
      prepared["w3"], prepared["b3"])

    # Strip row padding and the lane padding of the output channel dim.
    return out_padded[:N, :out_dim]


# ----------------------------------------------------------------------------
# Param init (PyTorch Linear default) and pure-JAX reference.
# ----------------------------------------------------------------------------
def init_params(key, d_model, hidden=1024, out_dim=4, dtype=jnp.float32):
    ks = jax.random.split(key, 6)

    def lin(kw, kb, fan_in, fan_out):
        bound = 1.0 / (fan_in ** 0.5)
        w = jax.random.uniform(kw, (fan_in, fan_out), dtype, -bound, bound)
        b = jax.random.uniform(kb, (1, fan_out), dtype, -bound, bound)
        return w, b

    w1, b1 = lin(ks[0], ks[1], d_model, hidden)
    w2, b2 = lin(ks[2], ks[3], hidden, hidden)
    w3, b3 = lin(ks[4], ks[5], hidden, out_dim)
    return (w1, b1, w2, b2, w3, b3)


def _reference(so_rep, params):
    w1, b1, w2, b2, w3, b3 = params
    h1 = jnp.maximum(so_rep @ w1 + b1, 0.0)
    h2 = jnp.maximum(h1 @ w2 + b2, 0.0)
    z = h2 @ w3 + b3
    return jnp.maximum(z, 0.0) + jnp.log1p(jnp.exp(-jnp.abs(z)))


if __name__ == "__main__":
    key = jax.random.PRNGKey(0)
    k_x, k_p = jax.random.split(key)

    N, d_model = 16, 32  # small object/subject representation batch
    so_rep = jax.random.normal(k_x, (N, d_model), dtype=jnp.float32)
    params = init_params(k_p, d_model)

    ref = _reference(so_rep, params)

    # f32 operand path: tight correctness check against the reference.
    prep_f32 = prepare_params(params, weight_dtype=None)
    out_f32 = jax.block_until_ready(get_boxes_forward(so_rep, prep_f32))
    assert out_f32.shape == (N, 4)
    assert jnp.allclose(out_f32, ref, atol=1e-4, rtol=1e-4), "f32 mismatch vs reference"

    # Default bf16-operand path (full-rate MXU, half weight-DMA), f32 accumulate.
    prep_bf16 = prepare_params(params)   # weight_dtype=jnp.bfloat16 by default
    out_bf16 = jax.block_until_ready(get_boxes_forward(so_rep, prep_bf16))
    assert out_bf16.shape == (N, 4)
    assert jnp.allclose(out_bf16, ref, atol=1e-1, rtol=1e-1), "bf16 mismatch vs reference"

    # Exercise row padding (N not a multiple of 8) on the default path.
    N2 = 37
    so_rep2 = jax.random.normal(jax.random.PRNGKey(1), (N2, d_model), jnp.float32)
    ref2 = _reference(so_rep2, params)
    out2 = jax.block_until_ready(get_boxes_forward(so_rep2, prep_bf16))
    assert out2.shape == (N2, 4)
    assert jnp.allclose(out2, ref2, atol=1e-1, rtol=1e-1), "padded-row mismatch"

    print("KERNEL_OK")
</pallas_src>

<mosaic_0001>
module attributes {stable_mosaic.version = 11 : i64} {
  func.func @_mlp_kernel(%arg0: i32, %arg1: memref<16x128xf32, #tpu.memory_space<vmem>>, %arg2: memref<128x1024xf32, #tpu.memory_space<vmem>>, %arg3: memref<1x1024xf32, #tpu.memory_space<vmem>>, %arg4: memref<1024x1024xf32, #tpu.memory_space<vmem>>, %arg5: memref<1x1024xf32, #tpu.memory_space<vmem>>, %arg6: memref<1024x128xf32, #tpu.memory_space<vmem>>, %arg7: memref<1x128xf32, #tpu.memory_space<vmem>>, %arg8: memref<16x128xf32, #tpu.memory_space<vmem>>) attributes {dimension_semantics = [#tpu.dimension_semantics<parallel>], iteration_bounds = array<i64: 1>, scalar_prefetch = 0 : i64, scratch_operands = 0 : i64, tpu.core_type = #tpu.core_type<tc>, window_params = [{transform_indices = @transform_0, window_bounds = array<i64: 16, 128>}, {pipeline_mode = #tpu.pipeline_mode<synchronous>, transform_indices = @transform_1, window_bounds = array<i64: 128, 1024>}, {pipeline_mode = #tpu.pipeline_mode<synchronous>, transform_indices = @transform_2, window_bounds = array<i64: 1, 1024>}, {pipeline_mode = #tpu.pipeline_mode<synchronous>, transform_indices = @transform_3, window_bounds = array<i64: 1024, 1024>}, {pipeline_mode = #tpu.pipeline_mode<synchronous>, transform_indices = @transform_4, window_bounds = array<i64: 1, 1024>}, {pipeline_mode = #tpu.pipeline_mode<synchronous>, transform_indices = @transform_5, window_bounds = array<i64: 1024, 128>}, {pipeline_mode = #tpu.pipeline_mode<synchronous>, transform_indices = @transform_6, window_bounds = array<i64: 1, 128>}, {transform_indices = @transform_7, window_bounds = array<i64: 16, 128>}]} {
    %c0 = arith.constant 0 : index
    %c0_0 = arith.constant 0 : index
    %0 = vector.load %arg1[%c0, %c0_0] : memref<16x128xf32, #tpu.memory_space<vmem>>, vector<16x128xf32>
    %c0_1 = arith.constant 0 : index
    %c0_2 = arith.constant 0 : index
    %1 = vector.load %arg2[%c0_1, %c0_2] : memref<128x1024xf32, #tpu.memory_space<vmem>>, vector<128x1024xf32>
    %cst = arith.constant dense<0.000000e+00> : vector<16x1024xf32>
    %2 = tpu.matmul %0, %1, %cst {dimension_numbers = #tpu.dot_dimension_numbers<[1], [0], [0], [1], [0, 0, 1, 1], [], []>} : vector<16x128xf32>, vector<128x1024xf32>, vector<16x1024xf32> -> vector<16x1024xf32>
    %c0_3 = arith.constant 0 : index
    %c0_4 = arith.constant 0 : index
    %3 = vector.load %arg3[%c0_3, %c0_4] : memref<1x1024xf32, #tpu.memory_space<vmem>>, vector<1x1024xf32>
    %4 = vector.broadcast %3 : vector<1x1024xf32> to vector<16x1024xf32>
    %5 = arith.addf %2, %4 : vector<16x1024xf32>
    %cst_5 = arith.constant 0.000000e+00 : f32
    %6 = vector.broadcast %cst_5 : f32 to vector<16x1024xf32>
    %7 = arith.maximumf %5, %6 : vector<16x1024xf32>
    %c0_6 = arith.constant 0 : index
    %c0_7 = arith.constant 0 : index
    %8 = vector.load %arg4[%c0_6, %c0_7] : memref<1024x1024xf32, #tpu.memory_space<vmem>>, vector<1024x1024xf32>
    %cst_8 = arith.constant dense<0.000000e+00> : vector<16x1024xf32>
    %9 = tpu.matmul %7, %8, %cst_8 {dimension_numbers = #tpu.dot_dimension_numbers<[1], [0], [0], [1], [0, 0, 1, 1], [], []>} : vector<16x1024xf32>, vector<1024x1024xf32>, vector<16x1024xf32> -> vector<16x1024xf32>
    %c0_9 = arith.constant 0 : index
    %c0_10 = arith.constant 0 : index
    %10 = vector.load %arg5[%c0_9, %c0_10] : memref<1x1024xf32, #tpu.memory_space<vmem>>, vector<1x1024xf32>
    %11 = vector.broadcast %10 : vector<1x1024xf32> to vector<16x1024xf32>
    %12 = arith.addf %9, %11 : vector<16x1024xf32>
    %cst_11 = arith.constant 0.000000e+00 : f32
    %13 = vector.broadcast %cst_11 : f32 to vector<16x1024xf32>
    %14 = arith.maximumf %12, %13 : vector<16x1024xf32>
    %c0_12 = arith.constant 0 : index
    %c0_13 = arith.constant 0 : index
    %15 = vector.load %arg6[%c0_12, %c0_13] : memref<1024x128xf32, #tpu.memory_space<vmem>>, vector<1024x128xf32>
    %cst_14 = arith.constant dense<0.000000e+00> : vector<16x128xf32>
    %16 = tpu.matmul %14, %15, %cst_14 {dimension_numbers = #tpu.dot_dimension_numbers<[1], [0], [0], [1], [0, 0, 1, 1], [], []>} : vector<16x1024xf32>, vector<1024x128xf32>, vector<16x128xf32> -> vector<16x128xf32>
    %c0_15 = arith.constant 0 : index
    %c0_16 = arith.constant 0 : index
    %17 = vector.load %arg7[%c0_15, %c0_16] : memref<1x128xf32, #tpu.memory_space<vmem>>, vector<1x128xf32>
    %18 = vector.broadcast %17 : vector<1x128xf32> to vector<16x128xf32>
    %19 = arith.addf %16, %18 : vector<16x128xf32>
    %cst_17 = arith.constant 0.000000e+00 : f32
    %20 = vector.broadcast %cst_17 : f32 to vector<16x128xf32>
    %21 = arith.maximumf %19, %20 : vector<16x128xf32>
    %22 = math.absf %19 : vector<16x128xf32>
    %cst_18 = arith.constant 0.000000e+00 : f32
    %23 = vector.broadcast %cst_18 : f32 to vector<16x128xf32>
    %24 = arith.subf %23, %22 : vector<16x128xf32>
    %25 = math.exp %24 : vector<16x128xf32>
    %26 = math.log1p %25 : vector<16x128xf32>
    %27 = arith.addf %21, %26 : vector<16x128xf32>
    %c0_19 = arith.constant 0 : index
    %c0_20 = arith.constant 0 : index
    %28 = vector.load %arg8[%c0_19, %c0_20] : memref<16x128xf32, #tpu.memory_space<vmem>>, vector<16x128xf32>
    tpu.vector_store %arg8[%c0_19, %c0_20], %27 {strides = array<i32>} : memref<16x128xf32, #tpu.memory_space<vmem>>, vector<16x128xf32>,
    return
  }
  func.func @transform_0(%arg0: i32) -> (i32, i32) {
    %c0_i32 = arith.constant 0 : i32
    %c0_i32_0 = arith.constant 0 : i32
    return %arg0, %c0_i32 : i32, i32
  }
  func.func @transform_1(%arg0: i32) -> (i32, i32) {
    %c0_i32 = arith.constant 0 : i32
    %c0_i32_0 = arith.constant 0 : i32
    %c0_i32_1 = arith.constant 0 : i32
    return %c0_i32, %c0_i32_0 : i32, i32
  }
  func.func @transform_2(%arg0: i32) -> (i32, i32) {
    %c0_i32 = arith.constant 0 : i32
    %c0_i32_0 = arith.constant 0 : i32
    %c0_i32_1 = arith.constant 0 : i32
    return %c0_i32, %c0_i32_0 : i32, i32
  }
  func.func @transform_3(%arg0: i32) -> (i32, i32) {
    %c0_i32 = arith.constant 0 : i32
    %c0_i32_0 = arith.constant 0 : i32
    %c0_i32_1 = arith.constant 0 : i32
    return %c0_i32, %c0_i32_0 : i32, i32
  }
  func.func @transform_4(%arg0: i32) -> (i32, i32) {
    %c0_i32 = arith.constant 0 : i32
    %c0_i32_0 = arith.constant 0 : i32
    %c0_i32_1 = arith.constant 0 : i32
    return %c0_i32, %c0_i32_0 : i32, i32
  }
  func.func @transform_5(%arg0: i32) -> (i32, i32) {
    %c0_i32 = arith.constant 0 : i32
    %c0_i32_0 = arith.constant 0 : i32
    %c0_i32_1 = arith.constant 0 : i32
    return %c0_i32, %c0_i32_0 : i32, i32
  }
  func.func @transform_6(%arg0: i32) -> (i32, i32) {
    %c0_i32 = arith.constant 0 : i32
    %c0_i32_0 = arith.constant 0 : i32
    %c0_i32_1 = arith.constant 0 : i32
    return %c0_i32, %c0_i32_0 : i32, i32
  }
  func.func @transform_7(%arg0: i32) -> (i32, i32) {
    %c0_i32 = arith.constant 0 : i32
    %c0_i32_0 = arith.constant 0 : i32
    return %arg0, %c0_i32 : i32, i32
  }
}

</mosaic_0001>

<bundles_post_ra>
// kernel: tpu_custom_call.1
= control target key start
LH: loop header
LB: loop body
LE: loop exit
PB: predicated region body
PF: predicated region fallthrough
CT: control target
= control target key end

     0   :  { %12 = vsyncpa [#allocation3], 0  ;;  %s5540_s0 = inlined_call_operand.hbm [shape: f32[16,128], index: 0, kind: input, shape index: {}]   ;;  %s5541_s1 = inlined_call_operand.hbm [shape: f32[128,1024], index: 1, kind: input, shape index: {}]   ;;  %s5542_s2 = inlined_call_operand.hbm [shape: f32[1,1024], index: 2, kind: input, shape index: {}]   ;;  %s5543_s3 = inlined_call_operand.hbm [shape: f32[1024,1024], index: 3, kind: input, shape index: {}]   ;;  %s5544_s4 = inlined_call_operand.hbm [shape: f32[1,1024], index: 4, kind: input, shape index: {}]   ;;  %s5545_s5 = inlined_call_operand.hbm [shape: f32[1024,128], index: 5, kind: input, shape index: {}]   ;;  %s5546_s6 = inlined_call_operand.hbm [shape: f32[1,128], index: 6, kind: input, shape index: {}]   ;;  %s5547_s7 = inlined_call_operand.hbm [shape: f32[16,128], index: 7, kind: output, shape index: {}]  }
   0x1   :  { %13 = vsyncpa [#allocation6], 0 }
   0x2   :  { %14 = vsyncpa [#allocation9], 0 }
   0x3   :  { %15 = vsyncpa [#allocation12], 0 }
   0x4   :  { %16 = vsyncpa [#allocation4], 0  ;;  %s5118_s24 = smov [#allocation5]   ;;  %s4932_s28 = scalar_lea.hbm %s5541_s1, 16384 }
   0x5   :  { %s34_s25 = sshll.u32 %s5118_s24, 4  ;;  %p4933_p0 = scmp.ne.s32.totalorder %s5541_s1, %s4932_s28  ;;  %s35_s25 = int_to_ptr.vmem [resolvable:$true] %s34_s25 }
   0x6   :  { %p4936_p1 = scmp.lt.u32.totalorder %s4932_s28, %s5541_s1 }
   0x8   :  { %p4938_p2 = pnand %p4936_p1, %p4933_p0 }
   0xa   :  { %4941 = shalt.err (!%p4938_p2)
}
   0xb   :  { %s4942_s10 = scalar_lea.vmem %s35_s25, 16384  ;;  %p4947_p4 = scmp.lt.s32.totalorder %s35_s25, %s35_s25 }
   0xc   :  { %p4943_p3 = scmp.ne.s32.totalorder %s35_s25, %s4942_s10  ;;  %p4948_p5 = scmp.lt.s32.totalorder %s4942_s10, %s4942_s10 }
   0xe   :  { %p4949_p6 = por %p4948_p5, %p4947_p4 }
  0x10   :  { %p4950_p7 = pnand %p4949_p6, %p4943_p3 }
  0x12   :  { %4953 = shalt.err (!%p4950_p7)
}
  0x13   :  { %s5119_s11 = smov 1024   ;;  %s5120_s12 = smov 64  }
  0x14   :  { %40 = dma.hbm_to_vmem [thread:$0]  %s5541_s1, 16384, %s35_s25, [#allocation6], %s5119_s11, %s5119_s11, %s5120_s12  }
  0x15   :  { %s5121_s15 = smov [#allocation8]   ;;  %s4954_s19 = scalar_lea.hbm %s5543_s3, 131072 }
  0x16   :  { %s56_s16 = sshll.u32 %s5121_s15, 4  ;;  %p4955_p8 = scmp.ne.s32.totalorder %s5543_s3, %s4954_s19  ;;  %s57_s16 = int_to_ptr.vmem [resolvable:$true] %s56_s16 }
  0x17   :  { %p4958_p9 = scmp.lt.u32.totalorder %s4954_s19, %s5543_s3 }
  0x19   :  { %p4960_p10 = pnand %p4958_p9, %p4955_p8 }
  0x1b   :  { %4963 = shalt.err (!%p4960_p10)
}
  0x1c   :  { %s4964_s24 = scalar_lea.vmem %s57_s16, 131072  ;;  %p4969_p12 = scmp.lt.s32.totalorder %s57_s16, %s57_s16 }
  0x1d   :  { %p4965_p11 = scmp.ne.s32.totalorder %s57_s16, %s4964_s24  ;;  %p4970_p13 = scmp.lt.s32.totalorder %s4964_s24, %s4964_s24 }
  0x1f   :  { %p4971_p0 = por %p4970_p13, %p4969_p12 }
  0x21   :  { %p4972_p1 = pnand %p4971_p0, %p4965_p11 }
  0x23   :  { %4975 = shalt.err (!%p4972_p1)
}
  0x24   :  { %62 = dma.hbm_to_vmem [thread:$0]  %s5543_s3, 131072, %s57_s16, [#allocation9], %s5119_s11, %s5119_s11, %s5120_s12  }
  0x25   :  { %s5122_s26 = smov [#allocation11]   ;;  %s5123_s28 = smov [#allocation2]  }
  0x26   :  { %s78_s27 = sshll.u32 %s5122_s26, 4  ;;  %s22_s29 = sshll.u32 %s5123_s28, 4  ;;  %s79_s27 = int_to_ptr.vmem [resolvable:$true] %s78_s27  ;;  %s5195_s29 = int_to_ptr.vmem [resolvable:$true] %s22_s29 }
  0x27   :  { %s4976_s9 = scalar_lea.hbm %s5545_s5, 16384 }
  0x28   :  { %p4977_p2 = scmp.ne.s32.totalorder %s5545_s5, %s4976_s9  ;;  %p4980_p3 = scmp.lt.u32.totalorder %s4976_s9, %s5545_s5 }
  0x2a   :  { %p4982_p4 = pnand %p4980_p3, %p4977_p2 }
  0x2c   :  { %4985 = shalt.err (!%p4982_p4)
}
  0x2d   :  { %s4986_s3 = scalar_lea.vmem %s79_s27, 16384  ;;  %p4991_p6 = scmp.lt.s32.totalorder %s79_s27, %s79_s27 }
  0x2e   :  { %p4987_p5 = scmp.ne.s32.totalorder %s79_s27, %s4986_s3  ;;  %p4992_p7 = scmp.lt.s32.totalorder %s4986_s3, %s4986_s3 }
  0x30   :  { %p4993_p8 = por %p4992_p7, %p4991_p6 }
  0x32   :  { %p4994_p9 = pnand %p4993_p8, %p4987_p5 }
  0x34   :  { %4997 = shalt.err (!%p4994_p9)
}
  0x35   :  { %s5124_s11 = smov 128   ;;  %s5125_s12 = smov 8  }
  0x36   :  { %84 = dma.hbm_to_vmem [thread:$0]  %s5545_s5, 16384, %s79_s27, [#allocation12], %s5124_s11, %s5124_s11, %s5125_s12  }
  0x37   :  { %s4998_s20 = scalar_lea.hbm %s5540_s0, 256 }
  0x38   :  { %p4999_p10 = scmp.ne.s32.totalorder %s5540_s0, %s4998_s20  ;;  %p5002_p11 = scmp.lt.u32.totalorder %s4998_s20, %s5540_s0 }
  0x3a   :  { %p5004_p12 = pnand %p5002_p11, %p4999_p10 }
  0x3c   :  { %5007 = shalt.err (!%p5004_p12)
}
  0x3d   :  { %s5008_s1 = scalar_lea.vmem %s5195_s29, 256  ;;  %p5013_p0 = scmp.lt.s32.totalorder %s5195_s29, %s5195_s29 }
  0x3e   :  { %p5009_p13 = scmp.ne.s32.totalorder %s5195_s29, %s5008_s1  ;;  %p5014_p1 = scmp.lt.s32.totalorder %s5008_s1, %s5008_s1 }
  0x40   :  { %p5015_p2 = por %p5014_p1, %p5013_p0 }
  0x42   :  { %p5016_p3 = pnand %p5015_p2, %p5009_p13 }
  0x44   :  { %5019 = shalt.err (!%p5016_p3)
}
  0x45   :  { %28 = dma.hbm_to_vmem [thread:$0]  %s5540_s0, 256, %s5195_s29, [#allocation3], %s5124_s11, %s5124_s11, %s5125_s12  }
  0x46   :  { %s5126_s26 = smov [#allocation7]   ;;  %s5127_s28 = smov [#allocation10]  }
  0x47   :  { %s47_s27 = sshll.u32 %s5126_s26, 4  ;;  %s69_s30 = sshll.u32 %s5127_s28, 4  ;;  %s48_s27 = int_to_ptr.vmem [resolvable:$true] %s47_s27  ;;  %s70_s30 = int_to_ptr.vmem [resolvable:$true] %s69_s30 }
  0x48   :  { %s5020_s10 = scalar_lea.hbm %s5542_s2, 128 }
  0x49   :  { %p5021_p4 = scmp.ne.s32.totalorder %s5542_s2, %s5020_s10  ;;  %p5024_p5 = scmp.lt.u32.totalorder %s5020_s10, %s5542_s2 }
  0x4b   :  { %p5026_p6 = pnand %p5024_p5, %p5021_p4 }
  0x4d   :  { %5029 = shalt.err (!%p5026_p6)
}
  0x4e   :  { %s5030_s0 = scalar_lea.vmem %s48_s27, 128  ;;  %p5035_p8 = scmp.lt.s32.totalorder %s48_s27, %s48_s27 }
  0x4f   :  { %p5031_p7 = scmp.ne.s32.totalorder %s48_s27, %s5030_s0  ;;  %p5036_p9 = scmp.lt.s32.totalorder %s5030_s0, %s5030_s0 }
  0x51   :  { %p5037_p10 = por %p5036_p9, %p5035_p8 }
  0x53   :  { %p5038_p11 = pnand %p5037_p10, %p5031_p7 }
  0x55   :  { %5041 = shalt.err (!%p5038_p11)
}
  0x56   :  { %50 = dma.hbm_to_vmem [thread:$0]  %s5542_s2, 128, %s48_s27, [#allocation6]  }
  0x57   :  { %s5042_s19 = scalar_lea.hbm %s5544_s4, 128 }
  0x58   :  { %p5043_p12 = scmp.ne.s32.totalorder %s5544_s4, %s5042_s19  ;;  %p5046_p13 = scmp.lt.u32.totalorder %s5042_s19, %s5544_s4 }
  0x5a   :  { %p5048_p0 = pnand %p5046_p13, %p5043_p12 }
  0x5c   :  { %5051 = shalt.err (!%p5048_p0)
}
  0x5d   :  { %s5052_s24 = scalar_lea.vmem %s70_s30, 128  ;;  %p5057_p2 = scmp.lt.s32.totalorder %s70_s30, %s70_s30 }
  0x5e   :  { %p5053_p1 = scmp.ne.s32.totalorder %s70_s30, %s5052_s24  ;;  %p5058_p3 = scmp.lt.s32.totalorder %s5052_s24, %s5052_s24 }
  0x60   :  { %p5059_p4 = por %p5058_p3, %p5057_p2 }
  0x62   :  { %p5060_p5 = pnand %p5059_p4, %p5053_p1 }
  0x64   :  { %5063 = shalt.err (!%p5060_p5)
}
  0x65   :  { %72 = dma.hbm_to_vmem [thread:$0]  %s5544_s4, 128, %s70_s30, [#allocation9]  }
  0x66   :  { %s5128_s5 = smov [#allocation13]   ;;  %s5064_s28 = scalar_lea.hbm %s5546_s6, 16 }
  0x67   :  { %s91_s25 = sshll.u32 %s5128_s5, 4  ;;  %p5065_p6 = scmp.ne.s32.totalorder %s5546_s6, %s5064_s28  ;;  %s92_s25 = int_to_ptr.vmem [resolvable:$true] %s91_s25 }
  0x68   :  { %p5068_p7 = scmp.lt.u32.totalorder %s5064_s28, %s5546_s6 }
  0x6a   :  { %p5070_p8 = pnand %p5068_p7, %p5065_p6 }
  0x6c   :  { %5073 = shalt.err (!%p5070_p8)
}
  0x6d   :  { %s5074_s14 = scalar_lea.vmem %s92_s25, 16  ;;  %s5078_s4 = scalar_lea.vmem %s92_s25, 32 }
  0x6e   :  { %p5075_p9 = scmp.ne.s32.totalorder %s92_s25, %s5074_s14  ;;  %p5079_p10 = scmp.lt.s32.totalorder %s92_s25, %s92_s25 }
  0x6f   :  { %p5080_p11 = scmp.lt.s32.totalorder %s5078_s4, %s5074_s14 }
  0x71   :  { %p5081_p12 = por %p5080_p11, %p5079_p10 }
  0x73   :  { %p5082_p13 = pnand %p5081_p12, %p5075_p9 }
  0x75   :  { %5085 = shalt.err (!%p5082_p13)
}
  0x76   :  { %94 = dma.hbm_to_vmem [thread:$0]  %s5546_s6, 16, %s92_s25, [#allocation12]  }
  0x77   :  { %5108 = dma.done.wait [#allocation3], 256  }
  0x78   :  { %5109 = vsyncadd [#allocation3], 4294967040 }
  0x79   :  { %5110 = dma.done.wait [#allocation6], 16512  }
  0x7a   :  { %5111 = vsyncadd [#allocation6], 4294950784 }
  0x7b   :  { %5112 = dma.done.wait [#allocation9], 131200  }
  0x7c   :  { %5113 = vsyncadd [#allocation9], 4294836096 }
  0x7d   :  { %5114 = dma.done.wait [#allocation12], 16400  }
  0x7e   :  { %5115 = vsyncadd [#allocation12], 4294950896  ;;  %v5129_v0 = vmov 0.0   ;;  %v119_v1 = vld [vmem:[#allocation5 + $0x8] sm:$0xff]  ;;  %v118_v3 = vld [vmem:[#allocation5] sm:$0xff]  ;;  %s5130_s6 = smov [#allocation14]  }
  0x7f   :  { %352 = vmatprep.mubr.f32.mxu0 %v5129_v0  ;;  %429 = vmatprep.mubr.f32.mxu1 %v5129_v0  ;;  %v127_v2 = vld [vmem:[#allocation5 + $0x48] sm:$0xff]  ;;  %v126_v5 = vld [vmem:[#allocation5 + $0x40] sm:$0xff]  ;;  %v121_v28 = vld [vmem:[#allocation5 + $0x18] sm:$0xff]  ;;  %s3398_s3 = sshll.u32 %s5130_s6, 4  ;;  %s3399_s3 = int_to_ptr.vmem [resolvable:$true] %s3398_s3 }
  0x80   :  { %v3566_v4 = vpack.c.bf16 %v127_v2, %v119_v1  ;;  %v135_v6 = vld [vmem:[#allocation5 + $0x88] sm:$0xff]  ;;  %v3568_v8 = vpack.c.bf16 %v126_v5, %v118_v3  ;;  %v134_v10 = vld [vmem:[#allocation5 + $0x80] sm:$0xff]  ;;  %v129_v29 = vld [vmem:[#allocation5 + $0x58] sm:$0xff]  ;;  %s5086_s0 = scalar_lea.vmem %s3399_s3, 256  ;;  %p5091_p1 = scmp.lt.s32.totalorder %s3399_s3, %s3399_s3 }
  0x81   :  { %v143_v7 = vld [vmem:[#allocation5 + $0xc8] sm:$0xff]  ;;  %v142_v11 = vld [vmem:[#allocation5 + $0xc0] sm:$0xff]  ;;  %v120_v30 = vld [vmem:[#allocation5 + $0x10] sm:$0xff]  ;;  %v3598_v32 = vpack.c.bf16 %v129_v29, %v121_v28  ;;  %p5087_p0 = scmp.ne.s32.totalorder %s3399_s3, %s5086_s0  ;;  %p5092_p2 = scmp.lt.s32.totalorder %s5086_s0, %s5086_s0 }
  0x82   :  { %v3570_v9 = vpack.c.bf16 %v143_v7, %v135_v6  ;;  %v151_v12 = vld [vmem:[#allocation5 + $0x108] sm:$0xff]  ;;  %3567 = vmatprep.subr.bf16.mxu0 %v3566_v4  ;;  %v3572_v14 = vpack.c.bf16 %v142_v11, %v134_v10  ;;  %v150_v16 = vld [vmem:[#allocation5 + $0x100] sm:$0xff]  ;;  %v128_v33 = vld [vmem:[#allocation5 + $0x50] sm:$0xff] }
  0x83   :  { %v159_v13 = vld [vmem:[#allocation5 + $0x148] sm:$0xff]  ;;  %3569 = vmatpush1.bf16.msra.mxu0 %v3568_v8  ;;  %v158_v17 = vld [vmem:[#allocation5 + $0x140] sm:$0xff]  ;;  %v137_v34 = vld [vmem:[#allocation5 + $0x98] sm:$0xff]  ;;  %v3600_v37 = vpack.c.bf16 %v128_v33, %v120_v30  ;;  %3599 = vmatprep.subr.bf16.mxu1 %v3598_v32  ;;  %p5093_p3 = por %p5092_p2, %p5091_p1 }
  0x84   :  { %3571 = vmatprep.subr.bf16.mxu0 %v3570_v9  ;;  %v3574_v15 = vpack.c.bf16 %v159_v13, %v151_v12  ;;  %v167_v18 = vld [vmem:[#allocation5 + $0x188] sm:$0xff]  ;;  %v3576_v20 = vpack.c.bf16 %v158_v17, %v150_v16  ;;  %v166_v22 = vld [vmem:[#allocation5 + $0x180] sm:$0xff]  ;;  %v145_v35 = vld [vmem:[#allocation5 + $0xd8] sm:$0xff] }
  0x85   :  { %v175_v19 = vld [vmem:[#allocation5 + $0x1c8] sm:$0xff]  ;;  %v174_v23 = vld [vmem:[#allocation5 + $0x1c0] sm:$0xff]  ;;  %v3602_v38 = vpack.c.bf16 %v145_v35, %v137_v34  ;;  %v136_v39 = vld [vmem:[#allocation5 + $0x90] sm:$0xff]  ;;  %3601 = vmatpush1.bf16.msra.mxu1 %v3600_v37  ;;  %p5094_p4 = pnand %p5093_p3, %p5087_p0 }
  0x86   :  { %v3578_v21 = vpack.c.bf16 %v175_v19, %v167_v18  ;;  %v183_v24 = vld [vmem:[#allocation5 + $0x208] sm:$0xff]  ;;  %v182_v26 = vld [vmem:[#allocation5 + $0x200] sm:$0xff]  ;;  %v3580_v31 = vpack.c.bf16 %v174_v23, %v166_v22  ;;  %v144_v40 = vld [vmem:[#allocation5 + $0xd0] sm:$0xff] }
  0x87   :  { %3573 = vmatpush1.bf16.msra.mxu0 %v3572_v14  ;;  %v191_v25 = vld [vmem:[#allocation5 + $0x248] sm:$0xff]  ;;  %v190_v27 = vld [vmem:[#allocation5 + $0x240] sm:$0xff]  ;;  %v153_v41 = vld [vmem:[#allocation5 + $0x118] sm:$0xff]  ;;  %v3604_v45 = vpack.c.bf16 %v144_v40, %v136_v39  ;;  %3603 = vmatprep.subr.bf16.mxu1 %v3602_v38 }
  0x88   :  { %3575 = vmatprep.subr.bf16.mxu0 %v3574_v15  ;;  %v3582_v36 = vpack.c.bf16 %v191_v25, %v183_v24  ;;  %v199_v42 = vld [vmem:[#allocation5 + $0x288] sm:$0xff]  ;;  %v161_v44 = vld [vmem:[#allocation5 + $0x158] sm:$0xff]  ;;  %v3584_v46 = vpack.c.bf16 %v190_v27, %v182_v26  ;;  %v198_v47 = vld [vmem:[#allocation5 + $0x280] sm:$0xff] }
  0x89   :  { %v207_v43 = vld [vmem:[#allocation5 + $0x2c8] sm:$0xff]  ;;  %v3606_v48 = vpack.c.bf16 %v161_v44, %v153_v41  ;;  %v152_v49 = vld [vmem:[#allocation5 + $0x110] sm:$0xff]  ;;  %v206_v52 = vld [vmem:[#allocation5 + $0x2c0] sm:$0xff]  ;;  %3605 = vmatpush1.bf16.msra.mxu1 %v3604_v45 }
  0x8a   :  { %v160_v50 = vld [vmem:[#allocation5 + $0x150] sm:$0xff]  ;;  %v3586_v51 = vpack.c.bf16 %v207_v43, %v199_v42  ;;  %v169_v53 = vld [vmem:[#allocation5 + $0x198] sm:$0xff]  ;;  %v215_v55 = vld [vmem:[#allocation5 + $0x308] sm:$0xff]  ;;  %v3588_v58 = vpack.c.bf16 %v206_v52, %v198_v47 }
  0x8b   :  { %3577 = vmatpush1.bf16.msra.mxu0 %v3576_v20  ;;  %v177_v54 = vld [vmem:[#allocation5 + $0x1d8] sm:$0xff]  ;;  %v223_v56 = vld [vmem:[#allocation5 + $0x348] sm:$0xff]  ;;  %v3608_v57 = vpack.c.bf16 %v160_v50, %v152_v49  ;;  %v214_v59 = vld [vmem:[#allocation5 + $0x300] sm:$0xff]  ;;  %3607 = vmatprep.subr.bf16.mxu1 %v3606_v48 }
  0x8c   :  { %3579 = vmatprep.subr.bf16.mxu0 %v3578_v21  ;;  %v3610_v60 = vpack.c.bf16 %v177_v54, %v169_v53  ;;  %v168_v61 = vld [vmem:[#allocation5 + $0x190] sm:$0xff]  ;;  %v3590_v63 = vpack.c.bf16 %v223_v56, %v215_v55  ;;  %v222_v1 = vld [vmem:[#allocation5 + $0x340] sm:$0xff]  ;;  %v185_v2 = vld [vmem:[#allocation5 + $0x218] sm:$0xff] }
  0x8d   :  { %v176_v62 = vld [vmem:[#allocation5 + $0x1d0] sm:$0xff]  ;;  %v193_v3 = vld [vmem:[#allocation5 + $0x258] sm:$0xff]  ;;  %v231_v4 = vld [vmem:[#allocation5 + $0x388] sm:$0xff]  ;;  %3609 = vmatpush1.bf16.msra.mxu1 %v3608_v57  ;;  %v3592_v7 = vpack.c.bf16 %v222_v1, %v214_v59 }
  0x8e   :  { %v239_v5 = vld [vmem:[#allocation5 + $0x3c8] sm:$0xff]  ;;  %v3612_v6 = vpack.c.bf16 %v176_v62, %v168_v61  ;;  %v230_v8 = vld [vmem:[#allocation5 + $0x380] sm:$0xff]  ;;  %3611 = vmatprep.subr.bf16.mxu1 %v3610_v60  ;;  %v3614_v9 = vpack.c.bf16 %v193_v3, %v185_v2  ;;  %v184_v10 = vld [vmem:[#allocation5 + $0x210] sm:$0xff] }
  0x8f   :  { %3581 = vmatpush1.bf16.msra.mxu0 %v3580_v31  ;;  %v192_v11 = vld [vmem:[#allocation5 + $0x250] sm:$0xff]  ;;  %v3594_v12 = vpack.c.bf16 %v239_v5, %v231_v4  ;;  %v238_v13 = vld [vmem:[#allocation5 + $0x3c0] sm:$0xff]  ;;  %v201_v14 = vld [vmem:[#allocation5 + $0x298] sm:$0xff] }
  0x90   :  { %3583 = vmatprep.subr.bf16.mxu0 %v3582_v36  ;;  %v209_v15 = vld [vmem:[#allocation5 + $0x2d8] sm:$0xff]  ;;  %v123_v16 = vld [vmem:[#allocation5 + $0x28] sm:$0xff]  ;;  %v3616_v18 = vpack.c.bf16 %v192_v11, %v184_v10  ;;  %v3596_v19 = vpack.c.bf16 %v238_v13, %v230_v8  ;;  %v200_v21 = vld [vmem:[#allocation5 + $0x290] sm:$0xff] }
  0x91   :  { %v131_v17 = vld [vmem:[#allocation5 + $0x68] sm:$0xff]  ;;  %3613 = vmatpush1.bf16.msra.mxu1 %v3612_v6  ;;  %v3618_v20 = vpack.c.bf16 %v209_v15, %v201_v14  ;;  %v208_v22 = vld [vmem:[#allocation5 + $0x2d0] sm:$0xff]  ;;  %v217_v23 = vld [vmem:[#allocation5 + $0x318] sm:$0xff] }
  0x92   :  { %3615 = vmatprep.subr.bf16.mxu1 %v3614_v9  ;;  %v225_v24 = vld [vmem:[#allocation5 + $0x358] sm:$0xff]  ;;  %v3630_v25 = vpack.c.bf16 %v131_v17, %v123_v16  ;;  %v122_v26 = vld [vmem:[#allocation5 + $0x20] sm:$0xff]  ;;  %v3620_v28 = vpack.c.bf16 %v208_v22, %v200_v21  ;;  %v139_v29 = vld [vmem:[#allocation5 + $0xa8] sm:$0xff] }
  0x93   :  { %3585 = vmatpush1.bf16.msra.mxu0 %v3584_v46  ;;  %v130_v27 = vld [vmem:[#allocation5 + $0x60] sm:$0xff]  ;;  %v147_v30 = vld [vmem:[#allocation5 + $0xe8] sm:$0xff]  ;;  %v5270_v31 = vld [vmem:[#allocation2] sm:$0xff]  ;;  %v3622_v32 = vpack.c.bf16 %v225_v24, %v217_v23 }
  0x94   :  { %3587 = vmatprep.subr.bf16.mxu0 %v3586_v51  ;;  %v216_v33 = vld [vmem:[#allocation5 + $0x310] sm:$0xff]  ;;  %v233_v35 = vld [vmem:[#allocation5 + $0x398] sm:$0xff]  ;;  %v3632_v37 = vpack.c.bf16 %v130_v27, %v122_v26  ;;  %v3634_v38 = vpack.c.bf16 %v147_v30, %v139_v29  ;;  %v138_v39 = vld [vmem:[#allocation5 + $0xa0] sm:$0xff] }
  0x95   :  { %3617 = vmatpush1.bf16.msra.mxu1 %v3616_v18  ;;  %v224_v34 = vld [vmem:[#allocation5 + $0x350] sm:$0xff]  ;;  %v241_v36 = vld [vmem:[#allocation5 + $0x3d8] sm:$0xff]  ;;  %v146_v40 = vld [vmem:[#allocation5 + $0xe0] sm:$0xff] }
  0x96   :  { %3619 = vmatprep.subr.bf16.mxu1 %v3618_v20  ;;  %v3624_v41 = vpack.c.bf16 %v224_v34, %v216_v33  ;;  %v155_v42 = vld [vmem:[#allocation5 + $0x128] sm:$0xff]  ;;  %v5274_v44 = vld [vmem:[#allocation2 + $0x8] sm:$0xff]  ;;  %v3626_v45 = vpack.c.bf16 %v241_v36, %v233_v35  ;;  %v232_v46 = vld [vmem:[#allocation5 + $0x390] sm:$0xff]  ;;  %v3636_v48 = vpack.c.bf16 %v146_v40, %v138_v39 }
  0x97   :  { %3589 = vmatpush1.bf16.msra.mxu0 %v3588_v58  ;;  %v163_v43 = vld [vmem:[#allocation5 + $0x168] sm:$0xff]  ;;  %v240_v47 = vld [vmem:[#allocation5 + $0x3d0] sm:$0xff]  ;;  %v125_v49 = vld [vmem:[#allocation5 + $0x38] sm:$0xff] }
  0x98   :  { %3591 = vmatprep.subr.bf16.mxu0 %v3590_v63  ;;  %v133_v50 = vld [vmem:[#allocation5 + $0x78] sm:$0xff]  ;;  %v3638_v51 = vpack.c.bf16 %v163_v43, %v155_v42  ;;  %v154_v52 = vld [vmem:[#allocation5 + $0x120] sm:$0xff]  ;;  %v3628_v54 = vpack.c.bf16 %v240_v47, %v232_v46  ;;  %v171_v55 = vld [vmem:[#allocation5 + $0x1a8] sm:$0xff] }
  0x99   :  { %3621 = vmatpush1.bf16.msra.mxu1 %v3620_v28  ;;  %v162_v53 = vld [vmem:[#allocation5 + $0x160] sm:$0xff]  ;;  %v179_v56 = vld [vmem:[#allocation5 + $0x1e8] sm:$0xff]  ;;  %v3662_v57 = vpack.c.bf16 %v133_v50, %v125_v49  ;;  %v124_v58 = vld [vmem:[#allocation5 + $0x30] sm:$0xff] }
  0x9a   :  { %3623 = vmatprep.subr.bf16.mxu1 %v3622_v32  ;;  %v132_v59 = vld [vmem:[#allocation5 + $0x70] sm:$0xff]  ;;  %v3640_v60 = vpack.c.bf16 %v162_v53, %v154_v52  ;;  %v141_v61 = vld [vmem:[#allocation5 + $0xb8] sm:$0xff]  ;;  %v3642_v63 = vpack.c.bf16 %v179_v56, %v171_v55  ;;  %v170_v1 = vld [vmem:[#allocation5 + $0x1a0] sm:$0xff] }
  0x9b   :  { %3593 = vmatpush1.bf16.msra.mxu0 %v3592_v7  ;;  %v149_v62 = vld [vmem:[#allocation5 + $0xf8] sm:$0xff]  ;;  %v178_v2 = vld [vmem:[#allocation5 + $0x1e0] sm:$0xff]  ;;  %v187_v3 = vld [vmem:[#allocation5 + $0x228] sm:$0xff]  ;;  %v3664_v5 = vpack.c.bf16 %v132_v59, %v124_v58 }
  0x9c   :  { %3595 = vmatprep.subr.bf16.mxu0 %v3594_v12  ;;  %v195_v4 = vld [vmem:[#allocation5 + $0x268] sm:$0xff]  ;;  %v3666_v6 = vpack.c.bf16 %v149_v62, %v141_v61  ;;  %v140_v7 = vld [vmem:[#allocation5 + $0xb0] sm:$0xff]  ;;  %v3644_v9 = vpack.c.bf16 %v178_v2, %v170_v1  ;;  %v157_v10 = vld [vmem:[#allocation5 + $0x138] sm:$0xff] }
  0x9d   :  { %3625 = vmatpush1.bf16.msra.mxu1 %v3624_v41  ;;  %v148_v8 = vld [vmem:[#allocation5 + $0xf0] sm:$0xff]  ;;  %v165_v11 = vld [vmem:[#allocation5 + $0x178] sm:$0xff]  ;;  %v3646_v12 = vpack.c.bf16 %v195_v4, %v187_v3  ;;  %v186_v13 = vld [vmem:[#allocation5 + $0x220] sm:$0xff] }
  0x9e   :  { %3627 = vmatprep.subr.bf16.mxu1 %v3626_v45  ;;  %v194_v14 = vld [vmem:[#allocation5 + $0x260] sm:$0xff]  ;;  %v203_v15 = vld [vmem:[#allocation5 + $0x2a8] sm:$0xff]  ;;  %v3668_v17 = vpack.c.bf16 %v148_v8, %v140_v7  ;;  %v3670_v18 = vpack.c.bf16 %v165_v11, %v157_v10  ;;  %v164_v20 = vld [vmem:[#allocation5 + $0x170] sm:$0xff] }
  0x9f   :  { %3597 = vmatpush1.bf16.msra.mxu0 %v3596_v19  ;;  %v211_v16 = vld [vmem:[#allocation5 + $0x2e8] sm:$0xff]  ;;  %v156_v19 = vld [vmem:[#allocation5 + $0x130] sm:$0xff]  ;;  %v3648_v21 = vpack.c.bf16 %v194_v14, %v186_v13  ;;  %v173_v22 = vld [vmem:[#allocation5 + $0x1b8] sm:$0xff] }
  0xa0   :  { %3631 = vmatprep.subr.bf16.mxu0 %v3630_v25  ;;  %v181_v23 = vld [vmem:[#allocation5 + $0x1f8] sm:$0xff]  ;;  %v3650_v24 = vpack.c.bf16 %v211_v16, %v203_v15  ;;  %v202_v25 = vld [vmem:[#allocation5 + $0x2a0] sm:$0xff]  ;;  %v219_v27 = vld [vmem:[#allocation5 + $0x328] sm:$0xff]  ;;  %v3672_v29 = vpack.c.bf16 %v164_v20, %v156_v19 }
  0xa1   :  { %3629 = vmatpush1.bf16.msra.mxu1 %v3628_v54  ;;  %v210_v26 = vld [vmem:[#allocation5 + $0x2e0] sm:$0xff]  ;;  %v227_v28 = vld [vmem:[#allocation5 + $0x368] sm:$0xff]  ;;  %v3674_v30 = vpack.c.bf16 %v181_v23, %v173_v22  ;;  %v172_v32 = vld [vmem:[#allocation5 + $0x1b0] sm:$0xff] }
  0xa2   :  { %353 = vmatmul.mubr.f32.vlgmr.msra.gmra.mrb[0].mxu0 %v5270_v31  ;;  %3663 = vmatprep.subr.bf16.mxu1 %v3662_v57  ;;  %v180_v33 = vld [vmem:[#allocation5 + $0x1f0] sm:$0xff]  ;;  %v3652_v34 = vpack.c.bf16 %v210_v26, %v202_v25  ;;  %v189_v35 = vld [vmem:[#allocation5 + $0x238] sm:$0xff]  ;;  %v226_v39 = vld [vmem:[#allocation5 + $0x360] sm:$0xff] }
  0xa3   :  { %358 = vmatprep.mubr.f32.mxu0 %v5129_v0  ;;  %3633 = vmatpush1.bf16.msra.mxu0 %v3632_v37  ;;  %v197_v36 = vld [vmem:[#allocation5 + $0x278] sm:$0xff]  ;;  %v3654_v37 = vpack.c.bf16 %v227_v28, %v219_v27  ;;  %v235_v40 = vld [vmem:[#allocation5 + $0x3a8] sm:$0xff]  ;;  %v3676_v42 = vpack.c.bf16 %v180_v33, %v172_v32  ;;  %v188_v45 = vld [vmem:[#allocation5 + $0x230] sm:$0xff] }
  0xa4   :  { %3635 = vmatprep.subr.bf16.mxu0 %v3634_v38  ;;  %430 = vmatmul.mubr.f32.vlgmr.msra.gmra.mrb[0].mxu1 %v5270_v31  ;;  %v218_v38 = vld [vmem:[#allocation5 + $0x320] sm:$0xff]  ;;  %v243_v41 = vld [vmem:[#allocation5 + $0x3e8] sm:$0xff]  ;;  %v3678_v43 = vpack.c.bf16 %v197_v36, %v189_v35  ;;  %v196_v46 = vld [vmem:[#allocation5 + $0x270] sm:$0xff] }
  0xa5   :  { %435 = vmatprep.mubr.f32.mxu1 %v5129_v0  ;;  %3665 = vmatpush1.bf16.msra.mxu1 %v3664_v5  ;;  %v3656_v47 = vpack.c.bf16 %v226_v39, %v218_v38  ;;  %v213_v49 = vld [vmem:[#allocation5 + $0x2f8] sm:$0xff]  ;;  %v3658_v50 = vpack.c.bf16 %v243_v41, %v235_v40  ;;  %v242_v52 = vld [vmem:[#allocation5 + $0x3e0] sm:$0xff]  ;;  %v3680_v53 = vpack.c.bf16 %v196_v46, %v188_v45  ;;  %v613_v54 = vld [vmem:[#allocation8 + $0x8] sm:$0xff] }
  0xa6   :  { %359 = vmatmul.mubr.f32.gmra.mrb[2].mxu0 %v5274_v44  ;;  %3667 = vmatprep.subr.bf16.mxu1 %v3666_v6  ;;  %v621_v55 = vld [vmem:[#allocation8 + $0x48] sm:$0xff]  ;;  %v229_v61 = vld [vmem:[#allocation5 + $0x378] sm:$0xff]  ;;  %v620_v1 = vld [vmem:[#allocation8 + $0x40] sm:$0xff] }
  0xa7   :  { %506 = vmatprep.mubr.f32.mxu0 %v5129_v0  ;;  %3637 = vmatpush1.bf16.msra.mxu0 %v3636_v48  ;;  %v205_v48 = vld [vmem:[#allocation5 + $0x2b8] sm:$0xff]  ;;  %v204_v57 = vld [vmem:[#allocation5 + $0x2b0] sm:$0xff]  ;;  %v3694_v62 = vpack.c.bf16 %v621_v55, %v613_v54  ;;  %v636_v13 = vld [vmem:[#allocation8 + $0xc0] sm:$0xff] }
  0xa8   :  { %3639 = vmatprep.subr.bf16.mxu0 %v3638_v51  ;;  %436 = vmatmul.mubr.f32.gmra.mrb[2].mxu1 %v5274_v44  ;;  %v234_v51 = vld [vmem:[#allocation5 + $0x3a0] sm:$0xff]  ;;  %v3682_v56 = vpack.c.bf16 %v213_v49, %v205_v48  ;;  %v212_v58 = vld [vmem:[#allocation5 + $0x2f0] sm:$0xff]  ;;  %v237_v8 = vld [vmem:[#allocation5 + $0x3b8] sm:$0xff] }
  0xa9   :  { %3669 = vmatpush1.bf16.msra.mxu1 %v3668_v17  ;;  %583 = vmatprep.mubr.f32.mxu1 %v5129_v0  ;;  %v3660_v59 = vpack.c.bf16 %v242_v52, %v234_v51  ;;  %v3684_v2 = vpack.c.bf16 %v212_v58, %v204_v57  ;;  %v629_v3 = vld [vmem:[#allocation8 + $0x88] sm:$0xff]  ;;  %v615_v20 = vld [vmem:[#allocation8 + $0x18] sm:$0xff]  ;;  %v652_v25 = vld [vmem:[#allocation8 + $0x140] sm:$0xff] }
  0xaa   :  { %3671 = vmatprep.subr.bf16.mxu1 %v3670_v18  ;;  %v637_v4 = vld [vmem:[#allocation8 + $0xc8] sm:$0xff]  ;;  %v622_v32 = vld [vmem:[#allocation8 + $0x50] sm:$0xff]  ;;  %v631_v33 = vld [vmem:[#allocation8 + $0x98] sm:$0xff] }
  0xab   :  { %3641 = vmatpush1.bf16.msra.mxu0 %v3640_v60  ;;  %v221_v60 = vld [vmem:[#allocation5 + $0x338] sm:$0xff]  ;;  %v220_v6 = vld [vmem:[#allocation5 + $0x330] sm:$0xff]  ;;  %v3698_v11 = vpack.c.bf16 %v637_v4, %v629_v3  ;;  %v668_v38 = vld [vmem:[#allocation8 + $0x1c0] sm:$0xff] }
  0xac   :  { %3643 = vmatprep.subr.bf16.mxu0 %v3642_v63  ;;  %v612_v63 = vld [vmem:[#allocation8] sm:$0xff]  ;;  %v3686_v5 = vpack.c.bf16 %v229_v61, %v221_v60  ;;  %v228_v7 = vld [vmem:[#allocation5 + $0x370] sm:$0xff]  ;;  %v638_v45 = vld [vmem:[#allocation8 + $0xd0] sm:$0xff] }
  0xad   :  { %3673 = vmatpush1.bf16.msra.mxu1 %v3672_v29  ;;  %v3696_v10 = vpack.c.bf16 %v620_v1, %v612_v63  ;;  %v3688_v14 = vpack.c.bf16 %v228_v7, %v220_v6  ;;  %v645_v15 = vld [vmem:[#allocation8 + $0x108] sm:$0xff]  ;;  %v647_v46 = vld [vmem:[#allocation8 + $0x118] sm:$0xff]  ;;  %v684_v51 = vld [vmem:[#allocation8 + $0x240] sm:$0xff] }
  0xae   :  { %3675 = vmatprep.subr.bf16.mxu1 %v3674_v30  ;;  %v653_v16 = vld [vmem:[#allocation8 + $0x148] sm:$0xff]  ;;  %v614_v30 = vld [vmem:[#allocation8 + $0x10] sm:$0xff]  ;;  %v663_v58 = vld [vmem:[#allocation8 + $0x198] sm:$0xff] }
  0xaf   :  { %3645 = vmatpush1.bf16.msra.mxu0 %v3644_v9  ;;  %v245_v9 = vld [vmem:[#allocation5 + $0x3f8] sm:$0xff]  ;;  %v236_v18 = vld [vmem:[#allocation5 + $0x3b0] sm:$0xff]  ;;  %v3702_v23 = vpack.c.bf16 %v653_v16, %v645_v15  ;;  %v3952_v39 = vpack.c.bf16 %v622_v32, %v614_v30  ;;  %v692_v61 = vld [vmem:[#allocation8 + $0x280] sm:$0xff] }
  0xb0   :  { %3647 = vmatprep.subr.bf16.mxu0 %v3646_v12  ;;  %v628_v12 = vld [vmem:[#allocation8 + $0x80] sm:$0xff]  ;;  %v3690_v17 = vpack.c.bf16 %v245_v9, %v237_v8  ;;  %v244_v19 = vld [vmem:[#allocation5 + $0x3f0] sm:$0xff]  ;;  %v654_v57 = vld [vmem:[#allocation8 + $0x150] sm:$0xff] }
  0xb1   :  { %3677 = vmatpush1.bf16.msra.mxu1 %v3676_v42  ;;  %v3700_v22 = vpack.c.bf16 %v636_v13, %v628_v12  ;;  %v3692_v26 = vpack.c.bf16 %v244_v19, %v236_v18  ;;  %v661_v27 = vld [vmem:[#allocation8 + $0x188] sm:$0xff]  ;;  %v662_v3 = vld [vmem:[#allocation8 + $0x190] sm:$0xff]  ;;  %v687_v6 = vld [vmem:[#allocation8 + $0x258] sm:$0xff] }
  0xb2   :  { %3679 = vmatprep.subr.bf16.mxu1 %v3678_v43  ;;  %v669_v28 = vld [vmem:[#allocation8 + $0x1c8] sm:$0xff]  ;;  %v630_v43 = vld [vmem:[#allocation8 + $0x90] sm:$0xff]  ;;  %v708_v9 = vld [vmem:[#allocation8 + $0x300] sm:$0xff] }
  0xb3   :  { %3649 = vmatpush1.bf16.msra.mxu0 %v3648_v21  ;;  %v623_v21 = vld [vmem:[#allocation8 + $0x58] sm:$0xff]  ;;  %v3706_v36 = vpack.c.bf16 %v669_v28, %v661_v27  ;;  %v677_v40 = vld [vmem:[#allocation8 + $0x208] sm:$0xff]  ;;  %v3956_v52 = vpack.c.bf16 %v638_v45, %v630_v43  ;;  %v670_v4 = vld [vmem:[#allocation8 + $0x1d0] sm:$0xff] }
  0xb4   :  { %3651 = vmatprep.subr.bf16.mxu0 %v3650_v24  ;;  %v644_v24 = vld [vmem:[#allocation8 + $0x100] sm:$0xff]  ;;  %v3950_v29 = vpack.c.bf16 %v623_v21, %v615_v20  ;;  %v685_v41 = vld [vmem:[#allocation8 + $0x248] sm:$0xff]  ;;  %v686_v15 = vld [vmem:[#allocation8 + $0x250] sm:$0xff] }
  0xb5   :  { %3681 = vmatpush1.bf16.msra.mxu1 %v3680_v53  ;;  %v3704_v35 = vpack.c.bf16 %v652_v25, %v644_v24  ;;  %v3710_v49 = vpack.c.bf16 %v685_v41, %v677_v40  ;;  %v693_v53 = vld [vmem:[#allocation8 + $0x288] sm:$0xff]  ;;  %v695_v16 = vld [vmem:[#allocation8 + $0x298] sm:$0xff]  ;;  %v724_v20 = vld [vmem:[#allocation8 + $0x380] sm:$0xff] }
  0xb6   :  { %3683 = vmatprep.subr.bf16.mxu1 %v3682_v56  ;;  %v701_v54 = vld [vmem:[#allocation8 + $0x2c8] sm:$0xff]  ;;  %v646_v56 = vld [vmem:[#allocation8 + $0x110] sm:$0xff]  ;;  %v732_v21 = vld [vmem:[#allocation8 + $0x3c0] sm:$0xff] }
  0xb7   :  { %3653 = vmatpush1.bf16.msra.mxu0 %v3652_v34  ;;  %v639_v34 = vld [vmem:[#allocation8 + $0xd8] sm:$0xff]  ;;  %v3960_v63 = vpack.c.bf16 %v654_v57, %v646_v56  ;;  %v709_v1 = vld [vmem:[#allocation8 + $0x308] sm:$0xff]  ;;  %v702_v27 = vld [vmem:[#allocation8 + $0x2d0] sm:$0xff]  ;;  %v3724_v30 = vpack.c.bf16 %v732_v21, %v724_v20 }
  0xb8   :  { %3655 = vmatprep.subr.bf16.mxu0 %v3654_v37  ;;  %v660_v37 = vld [vmem:[#allocation8 + $0x180] sm:$0xff]  ;;  %v3954_v42 = vpack.c.bf16 %v639_v34, %v631_v33  ;;  %v725_v12 = vld [vmem:[#allocation8 + $0x388] sm:$0xff]  ;;  %v711_v28 = vld [vmem:[#allocation8 + $0x318] sm:$0xff] }
  0xb9   :  { %3685 = vmatpush1.bf16.msra.mxu1 %v3684_v2  ;;  %v3708_v48 = vpack.c.bf16 %v668_v38, %v660_v37  ;;  %v717_v2 = vld [vmem:[#allocation8 + $0x348] sm:$0xff]  ;;  %v740_v33 = vld [vmem:[#allocation8 + $0x400] sm:$0xff]  ;;  %v718_v40 = vld [vmem:[#allocation8 + $0x350] sm:$0xff] }
  0xba   :  { %3687 = vmatprep.subr.bf16.mxu1 %v3686_v5  ;;  %v679_v5 = vld [vmem:[#allocation8 + $0x218] sm:$0xff]  ;;  %v3718_v8 = vpack.c.bf16 %v717_v2, %v709_v1  ;;  %v749_v24 = vld [vmem:[#allocation8 + $0x448] sm:$0xff]  ;;  %v748_v34 = vld [vmem:[#allocation8 + $0x440] sm:$0xff] }
  0xbb   :  { %3657 = vmatpush1.bf16.msra.mxu0 %v3656_v47  ;;  %v655_v47 = vld [vmem:[#allocation8 + $0x158] sm:$0xff]  ;;  %v3966_v13 = vpack.c.bf16 %v687_v6, %v679_v5  ;;  %v765_v37 = vld [vmem:[#allocation8 + $0x4c8] sm:$0xff]  ;;  %v3728_v43 = vpack.c.bf16 %v748_v34, %v740_v33  ;;  %v750_v1 = vld [vmem:[#allocation8 + $0x450] sm:$0xff] }
  0xbc   :  { %3659 = vmatprep.subr.bf16.mxu0 %v3658_v50  ;;  %v676_v50 = vld [vmem:[#allocation8 + $0x200] sm:$0xff]  ;;  %v3958_v55 = vpack.c.bf16 %v655_v47, %v647_v46  ;;  %v727_v41 = vld [vmem:[#allocation8 + $0x398] sm:$0xff]  ;;  %v829_v20 = vld [vmem:[#allocation8 + $0x6c8] sm:$0xff] }
  0xbd   :  { %3689 = vmatpush1.bf16.msra.mxu1 %v3688_v14  ;;  %v3712_v60 = vpack.c.bf16 %v684_v51, %v676_v50  ;;  %v678_v14 = vld [vmem:[#allocation8 + $0x210] sm:$0xff]  ;;  %v756_v46 = vld [vmem:[#allocation8 + $0x480] sm:$0xff]  ;;  %v781_v50 = vld [vmem:[#allocation8 + $0x548] sm:$0xff] }
  0xbe   :  { %3691 = vmatprep.subr.bf16.mxu1 %v3690_v17  ;;  %v703_v17 = vld [vmem:[#allocation8 + $0x2d8] sm:$0xff]  ;;  %v764_v47 = vld [vmem:[#allocation8 + $0x4c0] sm:$0xff]  ;;  %v845_v33 = vld [vmem:[#allocation8 + $0x748] sm:$0xff] }
  0xbf   :  { %3661 = vmatpush1.bf16.msra.mxu0 %v3660_v59  ;;  %v671_v59 = vld [vmem:[#allocation8 + $0x1d8] sm:$0xff]  ;;  %v3970_v25 = vpack.c.bf16 %v703_v17, %v695_v16  ;;  %v3732_v56 = vpack.c.bf16 %v764_v47, %v756_v46  ;;  %v788_v5 = vld [vmem:[#allocation8 + $0x580] sm:$0xff]  ;;  %v861_v46 = vld [vmem:[#allocation8 + $0x7c8] sm:$0xff] }
  0xc0   :  { %3695 = vmatprep.subr.bf16.mxu0 %v3694_v62  ;;  %v700_v62 = vld [vmem:[#allocation8 + $0x2c0] sm:$0xff]  ;;  %v759_v2 = vld [vmem:[#allocation8 + $0x498] sm:$0xff] }
  0xc1   :  { %3693 = vmatpush1.bf16.msra.mxu1 %v3692_v26  ;;  %v3716_v7 = vpack.c.bf16 %v700_v62, %v692_v61  ;;  %v694_v26 = vld [vmem:[#allocation8 + $0x290] sm:$0xff]  ;;  %v797_v61 = vld [vmem:[#allocation8 + $0x5c8] sm:$0xff]  ;;  %v796_v6 = vld [vmem:[#allocation8 + $0x5c0] sm:$0xff] }
  0xc2   :  { %507 = vmatmul.mubr.f32.vlgmr.msra.gmra.mrb[4].mxu0 %v5270_v31  ;;  %3951 = vmatprep.subr.bf16.mxu1 %v3950_v29  ;;  %v719_v29 = vld [vmem:[#allocation8 + $0x358] sm:$0xff]  ;;  %v804_v16 = vld [vmem:[#allocation8 + $0x600] sm:$0xff] }
  0xc3   :  { %512 = vmatprep.mubr.f32.mxu0 %v5129_v0  ;;  %3697 = vmatpush1.bf16.msra.mxu0 %v3696_v10  ;;  %v716_v10 = vld [vmem:[#allocation8 + $0x340] sm:$0xff]  ;;  %v3974_v38 = vpack.c.bf16 %v719_v29, %v711_v28 }
  0xc4   :  { %3699 = vmatprep.subr.bf16.mxu0 %v3698_v11  ;;  %584 = vmatmul.mubr.f32.vlgmr.msra.gmra.mrb[4].mxu1 %v5270_v31  ;;  %v3714_v31 = vpack.c.bf16 %v701_v54, %v693_v53  ;;  %v3964_v11 = vpack.c.bf16 %v670_v4, %v662_v3  ;;  %v3720_v18 = vpack.c.bf16 %v716_v10, %v708_v9  ;;  %v734_v53 = vld [vmem:[#allocation8 + $0x3d0] sm:$0xff]  ;;  %v743_v54 = vld [vmem:[#allocation8 + $0x418] sm:$0xff]  ;;  %v813_v9 = vld [vmem:[#allocation8 + $0x648] sm:$0xff] }
  0xc5   :  { %3953 = vmatpush1.bf16.msra.mxu1 %v3952_v39  ;;  %589 = vmatprep.mubr.f32.mxu1 %v5129_v0  ;;  %v3962_v0 = vpack.c.bf16 %v671_v59, %v663_v58  ;;  %v710_v39 = vld [vmem:[#allocation8 + $0x310] sm:$0xff]  ;;  %v772_v58 = vld [vmem:[#allocation8 + $0x500] sm:$0xff] }
  0xc6   :  { %513 = vmatmul.mubr.f32.gmra.mrb[6].mxu0 %v5274_v44  ;;  %3955 = vmatprep.subr.bf16.mxu1 %v3954_v42  ;;  %v735_v42 = vld [vmem:[#allocation8 + $0x3d8] sm:$0xff]  ;;  %v780_v59 = vld [vmem:[#allocation8 + $0x540] sm:$0xff] }
  0xc7   :  { %3701 = vmatpush1.bf16.msra.mxu0 %v3700_v22  ;;  %v3968_v22 = vpack.c.bf16 %v686_v15, %v678_v14  ;;  %v3978_v51 = vpack.c.bf16 %v735_v42, %v727_v41  ;;  %v3736_v3 = vpack.c.bf16 %v780_v59, %v772_v58  ;;  %v3740_v14 = vpack.c.bf16 %v796_v6, %v788_v5  ;;  %v812_v17 = vld [vmem:[#allocation8 + $0x640] sm:$0xff]  ;;  %v877_v58 = vld [vmem:[#allocation8 + $0x848] sm:$0xff]  ;;  %v855_v5 = vld [vmem:[#allocation8 + $0x798] sm:$0xff] }
  0xc8   :  { %3703 = vmatprep.subr.bf16.mxu0 %v3702_v23  ;;  %590 = vmatmul.mubr.f32.gmra.mrb[6].mxu1 %v5274_v44  ;;  %v733_v44 = vld [vmem:[#allocation8 + $0x3c8] sm:$0xff]  ;;  %v820_v28 = vld [vmem:[#allocation8 + $0x680] sm:$0xff]  ;;  %v863_v6 = vld [vmem:[#allocation8 + $0x7d8] sm:$0xff] }
  0xc9   :  { %3957 = vmatpush1.bf16.msra.mxu1 %v3956_v52  ;;  %v3722_v19 = vpack.c.bf16 %v733_v44, %v725_v12  ;;  %v741_v23 = vld [vmem:[#allocation8 + $0x408] sm:$0xff]  ;;  %v726_v52 = vld [vmem:[#allocation8 + $0x390] sm:$0xff]  ;;  %v775_v44 = vld [vmem:[#allocation8 + $0x518] sm:$0xff] }
  0xca   :  { %3959 = vmatprep.subr.bf16.mxu1 %v3958_v55  ;;  %v3726_v32 = vpack.c.bf16 %v749_v24, %v741_v23  ;;  %v751_v55 = vld [vmem:[#allocation8 + $0x458] sm:$0xff]  ;;  %v766_v12 = vld [vmem:[#allocation8 + $0x4d0] sm:$0xff]  ;;  %v828_v29 = vld [vmem:[#allocation8 + $0x6c0] sm:$0xff] }
  0xcb   :  { %3705 = vmatpush1.bf16.msra.mxu0 %v3704_v35  ;;  %v3972_v35 = vpack.c.bf16 %v702_v27, %v694_v26  ;;  %v3982_v62 = vpack.c.bf16 %v751_v55, %v743_v54  ;;  %v782_v23 = vld [vmem:[#allocation8 + $0x550] sm:$0xff]  ;;  %v791_v24 = vld [vmem:[#allocation8 + $0x598] sm:$0xff]  ;;  %v3744_v26 = vpack.c.bf16 %v812_v17, %v804_v16  ;;  %v836_v41 = vld [vmem:[#allocation8 + $0x700] sm:$0xff] }
  0xcc   :  { %3707 = vmatprep.subr.bf16.mxu0 %v3706_v36  ;;  %v757_v36 = vld [vmem:[#allocation8 + $0x488] sm:$0xff]  ;;  %v844_v42 = vld [vmem:[#allocation8 + $0x740] sm:$0xff]  ;;  %v5291_v17 = vld [vmem:[#allocation7] sm:$0xff] }
  0xcd   :  { %3961 = vmatpush1.bf16.msra.mxu1 %v3960_v63  ;;  %v3730_v45 = vpack.c.bf16 %v765_v37, %v757_v36  ;;  %v742_v63 = vld [vmem:[#allocation8 + $0x410] sm:$0xff]  ;;  %v807_v37 = vld [vmem:[#allocation8 + $0x618] sm:$0xff]  ;;  %v852_v54 = vld [vmem:[#allocation8 + $0x780] sm:$0xff] }
  0xce   :  { %3963 = vmatprep.subr.bf16.mxu1 %v3962_v0  ;;  %v767_v0 = vld [vmem:[#allocation8 + $0x4d8] sm:$0xff]  ;;  %v798_v36 = vld [vmem:[#allocation8 + $0x5d0] sm:$0xff]  ;;  %v860_v55 = vld [vmem:[#allocation8 + $0x7c0] sm:$0xff] }
  0xcf   :  { %3709 = vmatpush1.bf16.msra.mxu0 %v3708_v48  ;;  %v3976_v48 = vpack.c.bf16 %v718_v40, %v710_v39  ;;  %v3986_v10 = vpack.c.bf16 %v767_v0, %v759_v2  ;;  %v3748_v39 = vpack.c.bf16 %v828_v29, %v820_v28  ;;  %v885_v28 = vld [vmem:[#allocation8 + $0x888] sm:$0xff] }
  0xd0   :  { %3711 = vmatprep.subr.bf16.mxu0 %v3710_v49  ;;  %v773_v49 = vld [vmem:[#allocation8 + $0x508] sm:$0xff] }
  0xd1   :  { %3965 = vmatpush1.bf16.msra.mxu1 %v3964_v11  ;;  %v3734_v57 = vpack.c.bf16 %v781_v50, %v773_v49  ;;  %v758_v11 = vld [vmem:[#allocation8 + $0x490] sm:$0xff]  ;;  %v823_v50 = vld [vmem:[#allocation8 + $0x698] sm:$0xff]  ;;  %v893_v29 = vld [vmem:[#allocation8 + $0x8c8] sm:$0xff] }
  0xd2   :  { %3967 = vmatprep.subr.bf16.mxu1 %v3966_v13  ;;  %v783_v13 = vld [vmem:[#allocation8 + $0x558] sm:$0xff]  ;;  %v814_v49 = vld [vmem:[#allocation8 + $0x650] sm:$0xff] }
  0xd3   :  { %3713 = vmatpush1.bf16.msra.mxu0 %v3712_v60  ;;  %v3980_v60 = vpack.c.bf16 %v734_v53, %v726_v52  ;;  %v3990_v21 = vpack.c.bf16 %v783_v13, %v775_v44  ;;  %v3752_v52 = vpack.c.bf16 %v844_v42, %v836_v41 }
  0xd4   :  { %3715 = vmatprep.subr.bf16.mxu0 %v3714_v31  ;;  %v789_v31 = vld [vmem:[#allocation8 + $0x588] sm:$0xff] }
  0xd5   :  { %3969 = vmatpush1.bf16.msra.mxu1 %v3968_v22  ;;  %v3738_v4 = vpack.c.bf16 %v797_v61, %v789_v31  ;;  %v774_v22 = vld [vmem:[#allocation8 + $0x510] sm:$0xff]  ;;  %v839_v61 = vld [vmem:[#allocation8 + $0x718] sm:$0xff] }
  0xd6   :  { %3971 = vmatprep.subr.bf16.mxu1 %v3970_v25  ;;  %v799_v25 = vld [vmem:[#allocation8 + $0x5d8] sm:$0xff]  ;;  %v830_v31 = vld [vmem:[#allocation8 + $0x6d0] sm:$0xff] }
  0xd7   :  { %3717 = vmatpush1.bf16.msra.mxu0 %v3716_v7  ;;  %v3984_v7 = vpack.c.bf16 %v750_v1, %v742_v63  ;;  %v3994_v34 = vpack.c.bf16 %v799_v25, %v791_v24  ;;  %v3756_v63 = vpack.c.bf16 %v860_v55, %v852_v54  ;;  %v870_v24 = vld [vmem:[#allocation8 + $0x810] sm:$0xff] }
  0xd8   :  { %3719 = vmatprep.subr.bf16.mxu0 %v3718_v8  ;;  %v805_v8 = vld [vmem:[#allocation8 + $0x608] sm:$0xff] }
  0xd9   :  { %3973 = vmatpush1.bf16.msra.mxu1 %v3972_v35  ;;  %v3742_v15 = vpack.c.bf16 %v813_v9, %v805_v8  ;;  %v790_v35 = vld [vmem:[#allocation8 + $0x590] sm:$0xff]  ;;  %v4010_v8 = vpack.c.bf16 %v863_v6, %v855_v5 }
  0xda   :  { %3975 = vmatprep.subr.bf16.mxu1 %v3974_v38  ;;  %v815_v38 = vld [vmem:[#allocation8 + $0x658] sm:$0xff]  ;;  %v854_v9 = vld [vmem:[#allocation8 + $0x790] sm:$0xff] }
  0xdb   :  { %3721 = vmatpush1.bf16.msra.mxu0 %v3720_v18  ;;  %v3988_v18 = vpack.c.bf16 %v766_v12, %v758_v11  ;;  %v3998_v47 = vpack.c.bf16 %v815_v38, %v807_v37  ;;  %v871_v11 = vld [vmem:[#allocation8 + $0x818] sm:$0xff]  ;;  %v3762_v37 = vpack.c.bf16 %v893_v29, %v885_v28  ;;  %v884_v38 = vld [vmem:[#allocation8 + $0x880] sm:$0xff] }
  0xdc   :  { %3723 = vmatprep.subr.bf16.mxu0 %v3722_v19  ;;  %v821_v19 = vld [vmem:[#allocation8 + $0x688] sm:$0xff]  ;;  %v879_v12 = vld [vmem:[#allocation8 + $0x858] sm:$0xff] }
  0xdd   :  { %3977 = vmatpush1.bf16.msra.mxu1 %v3976_v48  ;;  %v3746_v27 = vpack.c.bf16 %v829_v20, %v821_v19  ;;  %v806_v48 = vld [vmem:[#allocation8 + $0x610] sm:$0xff]  ;;  %v4014_v13 = vpack.c.bf16 %v879_v12, %v871_v11 }
  0xde   :  { %3979 = vmatprep.subr.bf16.mxu1 %v3978_v51  ;;  %v831_v51 = vld [vmem:[#allocation8 + $0x6d8] sm:$0xff]  ;;  %v918_v12 = vld [vmem:[#allocation8 + $0x990] sm:$0xff] }
  0xdf   :  { %3725 = vmatpush1.bf16.msra.mxu0 %v3724_v30  ;;  %v3992_v30 = vpack.c.bf16 %v782_v23, %v774_v22  ;;  %v4002_v59 = vpack.c.bf16 %v831_v51, %v823_v50  ;;  %v868_v22 = vld [vmem:[#allocation8 + $0x800] sm:$0xff]  ;;  %v909_v50 = vld [vmem:[#allocation8 + $0x948] sm:$0xff]  ;;  %v903_v51 = vld [vmem:[#allocation8 + $0x918] sm:$0xff] }
  0xe0   :  { %3727 = vmatprep.subr.bf16.mxu0 %v3726_v32  ;;  %v837_v32 = vld [vmem:[#allocation8 + $0x708] sm:$0xff]  ;;  %v876_v23 = vld [vmem:[#allocation8 + $0x840] sm:$0xff] }
  0xe1   :  { %3981 = vmatpush1.bf16.msra.mxu1 %v3980_v60  ;;  %v3750_v40 = vpack.c.bf16 %v845_v33, %v837_v32  ;;  %v822_v60 = vld [vmem:[#allocation8 + $0x690] sm:$0xff]  ;;  %v887_v32 = vld [vmem:[#allocation8 + $0x898] sm:$0xff] }
  0xe2   :  { %3983 = vmatprep.subr.bf16.mxu1 %v3982_v62  ;;  %v847_v62 = vld [vmem:[#allocation8 + $0x758] sm:$0xff]  ;;  %v4004_v2 = vpack.c.bf16 %v830_v31, %v822_v60 }
  0xe3   :  { %3729 = vmatpush1.bf16.msra.mxu0 %v3728_v43  ;;  %v3996_v43 = vpack.c.bf16 %v798_v36, %v790_v35  ;;  %v4006_v0 = vpack.c.bf16 %v847_v62, %v839_v61  ;;  %v895_v33 = vld [vmem:[#allocation8 + $0x8d8] sm:$0xff]  ;;  %v3760_v35 = vpack.c.bf16 %v876_v23, %v868_v22  ;;  %v902_v61 = vld [vmem:[#allocation8 + $0x910] sm:$0xff] }
  0xe4   :  { %3731 = vmatprep.subr.bf16.mxu0 %v3730_v45  ;;  %v853_v45 = vld [vmem:[#allocation8 + $0x788] sm:$0xff]  ;;  %v4018_v42 = vpack.c.bf16 %v895_v33, %v887_v32  ;;  %v910_v62 = vld [vmem:[#allocation8 + $0x950] sm:$0xff] }
  0xe5   :  { %3985 = vmatpush1.bf16.msra.mxu1 %v3984_v7  ;;  %v3754_v53 = vpack.c.bf16 %v861_v46, %v853_v45  ;;  %v894_v45 = vld [vmem:[#allocation8 + $0x8d0] sm:$0xff]  ;;  %v901_v46 = vld [vmem:[#allocation8 + $0x908] sm:$0xff]  ;;  %v4024_v6 = vpack.c.bf16 %v910_v62, %v902_v61 }
  0xe6   :  { %3987 = vmatprep.subr.bf16.mxu1 %v3986_v10  ;;  %v862_v10 = vld [vmem:[#allocation8 + $0x7d0] sm:$0xff]  ;;  %v3766_v60 = vpack.c.bf16 %v909_v50, %v901_v46  ;;  %v965_v50 = vld [vmem:[#allocation8 + $0xb08] sm:$0xff] }
  0xe7   :  { %3733 = vmatpush1.bf16.msra.mxu0 %v3732_v56  ;;  %v4000_v56 = vpack.c.bf16 %v814_v49, %v806_v48  ;;  %v4012_v44 = vpack.c.bf16 %v862_v10, %v854_v9  ;;  %v934_v32 = vld [vmem:[#allocation8 + $0xa10] sm:$0xff] }
  0xe8   :  { %3735 = vmatprep.subr.bf16.mxu0 %v3734_v57  ;;  %v869_v57 = vld [vmem:[#allocation8 + $0x808] sm:$0xff]  ;;  %v942_v33 = vld [vmem:[#allocation8 + $0xa50] sm:$0xff] }
  0xe9   :  { %3989 = vmatpush1.bf16.msra.mxu1 %v3988_v18  ;;  %v3758_v1 = vpack.c.bf16 %v877_v58, %v869_v57  ;;  %v900_v57 = vld [vmem:[#allocation8 + $0x900] sm:$0xff]  ;;  %v966_v61 = vld [vmem:[#allocation8 + $0xb10] sm:$0xff] }
  0xea   :  { %3991 = vmatprep.subr.bf16.mxu1 %v3990_v21  ;;  %v908_v58 = vld [vmem:[#allocation8 + $0x940] sm:$0xff]  ;;  %v974_v62 = vld [vmem:[#allocation8 + $0xb50] sm:$0xff] }
  0xeb   :  { %3737 = vmatpush1.bf16.msra.mxu0 %v3736_v3  ;;  %v838_v3 = vld [vmem:[#allocation8 + $0x710] sm:$0xff]  ;;  %v3768_v5 = vpack.c.bf16 %v908_v58, %v900_v57  ;;  %v964_v57 = vld [vmem:[#allocation8 + $0xb00] sm:$0xff] }
  0xec   :  { %3739 = vmatprep.subr.bf16.mxu0 %v3738_v4  ;;  %v846_v4 = vld [vmem:[#allocation8 + $0x750] sm:$0xff]  ;;  %v972_v58 = vld [vmem:[#allocation8 + $0xb40] sm:$0xff] }
  0xed   :  { %3993 = vmatpush1.bf16.msra.mxu1 %v3992_v30  ;;  %v4008_v7 = vpack.c.bf16 %v846_v4, %v838_v3  ;;  %v927_v3 = vld [vmem:[#allocation8 + $0x9d8] sm:$0xff] }
  0xee   :  { %3995 = vmatprep.subr.bf16.mxu1 %v3994_v34 }
  0xef   :  { %3741 = vmatpush1.bf16.msra.mxu0 %v3740_v14  ;;  %v248_v14 = vlaneseq }
  0xf0   :  { %3743 = vmatprep.subr.bf16.mxu0 %v3742_v15 }
  0xf1   :  { %3997 = vmatpush1.bf16.msra.mxu1 %v3996_v43  ;;  %v5288_v15 = vshrl.u32 %v248_v14, 7  ;;  %v886_v43 = vld [vmem:[#allocation8 + $0x890] sm:$0xff] }
  0xf2   :  { %3999 = vmatprep.subr.bf16.mxu1 %v3998_v47 }
  0xf3   :  { %3745 = vmatpush1.bf16.msra.mxu0 %v3744_v26  ;;  %v250_v16 = vsub.s32 0, %v5288_v15  ;;  %v254_v18 = vsub.s32 1, %v5288_v15  ;;  %v262_v49 = vsub.s32 3, %v5288_v15 }
  0xf4   :  { %3747 = vmatprep.subr.bf16.mxu0 %v3746_v27  ;;  %v878_v27 = vld [vmem:[#allocation8 + $0x850] sm:$0xff] }
  0xf5   :  { %4001 = vmatpush1.bf16.msra.mxu1 %v4000_v56  ;;  %v251_v19 = vrot.slane %v5291_v17, %v250_v16  ;;  %v255_v20 = vrot.slane %v5291_v17, %v254_v18  ;;  %v4016_v36 = vpack.c.bf16 %v878_v27, %v870_v24  ;;  %v4020_v56 = vpack.c.bf16 %v894_v45, %v886_v43  ;;  %v940_v27 = vld [vmem:[#allocation8 + $0xa40] sm:$0xff] }
  0xf6   :  { %4003 = vmatprep.subr.bf16.mxu1 %v4002_v59  ;;  %v956_v43 = vld [vmem:[#allocation8 + $0xac0] sm:$0xff] }
  0xf7   :  { %3749 = vmatpush1.bf16.msra.mxu0 %v3748_v39  ;;  %v892_v39 = vld [vmem:[#allocation8 + $0x8c0] sm:$0xff] }
  0xf8   :  { %3751 = vmatprep.subr.bf16.mxu0 %v3750_v40  ;;  %v3764_v55 = vpack.c.bf16 %v892_v39, %v884_v38  ;;  %v959_v38 = vld [vmem:[#allocation8 + $0xad8] sm:$0xff] }
  0xf9   :  { %4005 = vmatpush1.bf16.msra.mxu1 %v4004_v2  ;;  %v925_v2 = vld [vmem:[#allocation8 + $0x9c8] sm:$0xff] }
  0xfa   :  { %4007 = vmatprep.subr.bf16.mxu1 %v4006_v0  ;;  %v919_v0 = vld [vmem:[#allocation8 + $0x998] sm:$0xff] }
  0xfb   :  { %3753 = vmatpush1.bf16.msra.mxu0 %v3752_v52  ;;  %v911_v52 = vld [vmem:[#allocation8 + $0x958] sm:$0xff]  ;;  %v4026_v11 = vpack.c.bf16 %v927_v3, %v919_v0 }
  0xfc   :  { %3755 = vmatprep.subr.bf16.mxu0 %v3754_v53  ;;  %v4022_v31 = vpack.c.bf16 %v911_v52, %v903_v51  ;;  %v973_v51 = vld [vmem:[#allocation8 + $0xb48] sm:$0xff]  ;;  %v967_v52 = vld [vmem:[#allocation8 + $0xb18] sm:$0xff] }
  0xfd   :  { %4009 = vmatpush1.bf16.msra.mxu1 %v4008_v7  ;;  %v916_v7 = vld [vmem:[#allocation8 + $0x980] sm:$0xff]  ;;  %v983_v0 = vld [vmem:[#allocation8 + $0xb98] sm:$0xff] }
  0xfe   :  { %4011 = vmatprep.subr.bf16.mxu1 %v4010_v8  ;;  %v924_v8 = vld [vmem:[#allocation8 + $0x9c0] sm:$0xff]  ;;  %v991_v3 = vld [vmem:[#allocation8 + $0xbd8] sm:$0xff] }
  0xff   :  { %3757 = vmatpush1.bf16.msra.mxu0 %v3756_v63  ;;  %v917_v63 = vld [vmem:[#allocation8 + $0x988] sm:$0xff]  ;;  %v3772_v24 = vpack.c.bf16 %v924_v8, %v916_v7  ;;  %v980_v7 = vld [vmem:[#allocation8 + $0xb80] sm:$0xff] }
 0x100   :  { %3759 = vmatprep.subr.bf16.mxu0 %v3758_v1  ;;  %v5316_v1 = vrot.slane %v5291_v17, %v262_v49  ;;  %v3770_v10 = vpack.c.bf16 %v925_v2, %v917_v63  ;;  %v981_v63 = vld [vmem:[#allocation8 + $0xb88] sm:$0xff]  ;;  %v988_v8 = vld [vmem:[#allocation8 + $0xbc0] sm:$0xff] }
 0x101   :  { %4013 = vmatpush1.bf16.msra.mxu1 %v4012_v44  ;;  %v926_v44 = vld [vmem:[#allocation8 + $0x9d0] sm:$0xff]  ;;  %v989_v2 = vld [vmem:[#allocation8 + $0xbc8] sm:$0xff] }
 0x102   :  { %4015 = vmatprep.subr.bf16.mxu1 %v4014_v13  ;;  %v933_v13 = vld [vmem:[#allocation8 + $0xa08] sm:$0xff] }
 0x175   :  { %v354_v21 = vpop.f32.mrb[0].mxu0 }
 0x176   :  { %v355_v25 = vadd.f32 %v354_v21, %v251_v19  ;;  %v356_v26 = vpop.f32.mrb[1].mxu0  ;;  %v943_v21 = vld [vmem:[#allocation8 + $0xa58] sm:$0xff] }
 0x177   :  { %v357_v30 = vadd.f32 %v356_v26, %v255_v20  ;;  %v5320_v4 = vpop.f32.mrb[0].mxu1  ;;  %v932_v26 = vld [vmem:[#allocation8 + $0xa00] sm:$0xff] }
 0x178   :  { %v5302_v41 = vmax.f32 %v355_v25, 0.0  ;;  %v433_v9 = vpop.f32.mrb[1].mxu1  ;;  %v4028_v25 = vpack.c.bf16 %v926_v44, %v918_v12  ;;  %v3776_v39 = vpack.c.bf16 %v940_v27, %v932_v26  ;;  %v990_v12 = vld [vmem:[#allocation8 + $0xbd0] sm:$0xff]  ;;  %v997_v44 = vld [vmem:[#allocation8 + $0xc08] sm:$0xff] }
 0x179   :  { %v5300_v34 = vmax.f32 %v357_v30, 0.0  ;;  %v360_v40 = vpop.f32.mrb[2].mxu0  ;;  %v434_v14 = vadd.f32 %v433_v9, %v5316_v1  ;;  %v3786_v9 = vpack.c.bf16 %v989_v2, %v981_v63  ;;  %v1030_v63 = vld [vmem:[#allocation8 + $0xd10] sm:$0xff] }
 0x17a   :  { %v361_v47 = vadd.f32 %v360_v40, %v251_v19  ;;  %v362_v48 = vpop.f32.mrb[3].mxu0  ;;  %v941_v19 = vld [vmem:[#allocation8 + $0xa48] sm:$0xff]  ;;  %v4032_v40 = vpack.c.bf16 %v942_v33, %v934_v32  ;;  %v1038_v2 = vld [vmem:[#allocation8 + $0xd50] sm:$0xff] }
 0x17b   :  { %1742 = vmatprep.mubr.f32.mxu0 %v5300_v34  ;;  %2050 = vmatprep.mubr.f32.mxu1 %v5300_v34  ;;  %v363_v53 = vadd.f32 %v362_v48, %v255_v20  ;;  %v935_v20 = vld [vmem:[#allocation8 + $0xa18] sm:$0xff]  ;;  %v5325_v22 = vmax.f32 %v434_v14, 0.0  ;;  %v5327_v23 = vpop.f32.mrb[2].mxu1  ;;  %v3774_v29 = vpack.c.bf16 %v941_v19, %v933_v13  ;;  %v958_v48 = vld [vmem:[#allocation8 + $0xad0] sm:$0xff]  ;;  %v1005_v13 = vld [vmem:[#allocation8 + $0xc48] sm:$0xff] }
 0x17c   :  { %1743 = vmatmul.mubr.f32.vlgmr.msra.gmra.mrb[8].mxu0 %v5302_v41  ;;  %2051 = vmatmul.mubr.f32.vlgmr.msra.gmra.mrb[8].mxu1 %v5302_v41  ;;  %v5309_v54 = vmax.f32 %v361_v47, 0.0  ;;  %v5329_v28 = vpop.f32.mrb[3].mxu1  ;;  %v4030_v30 = vpack.c.bf16 %v943_v21, %v935_v20  ;;  %v950_v47 = vld [vmem:[#allocation8 + $0xa90] sm:$0xff]  ;;  %v999_v14 = vld [vmem:[#allocation8 + $0xc18] sm:$0xff]  ;;  %v3788_v20 = vpack.c.bf16 %v988_v8, %v980_v7  ;;  %v3790_v26 = vpack.c.bf16 %v1005_v13, %v997_v44  ;;  %v1013_v32 = vld [vmem:[#allocation8 + $0xc88] sm:$0xff] }
 0x17d   :  { %3761 = vmatpush1.bf16.msra.mxu0 %v3760_v35  ;;  %4017 = vmatpush1.bf16.msra.mxu1 %v4016_v36  ;;  %v5311_v59 = vmax.f32 %v363_v53, 0.0  ;;  %v949_v35 = vld [vmem:[#allocation8 + $0xa88] sm:$0xff]  ;;  %v975_v53 = vld [vmem:[#allocation8 + $0xb58] sm:$0xff] }
 0x17e   :  { %3763 = vmatprep.subr.bf16.mxu0 %v3762_v37  ;;  %4019 = vmatprep.subr.bf16.mxu1 %v4018_v42  ;;  %v957_v36 = vld [vmem:[#allocation8 + $0xac8] sm:$0xff]  ;;  %v951_v37 = vld [vmem:[#allocation8 + $0xa98] sm:$0xff]  ;;  %v948_v42 = vld [vmem:[#allocation8 + $0xa80] sm:$0xff] }
 0x17f   :  { %1748 = vmatprep.mubr.f32.mxu0 %v5311_v59  ;;  %2056 = vmatprep.mubr.f32.mxu1 %v5311_v59  ;;  %v3778_v45 = vpack.c.bf16 %v957_v36, %v949_v35  ;;  %v4034_v46 = vpack.c.bf16 %v959_v38, %v951_v37  ;;  %v1007_v19 = vld [vmem:[#allocation8 + $0xc58] sm:$0xff]  ;;  %v1021_v35 = vld [vmem:[#allocation8 + $0xcc8] sm:$0xff] }
 0x180   :  { %1749 = vmatmul.mubr.f32.gmra.mrb[10].mxu0 %v5309_v54  ;;  %2057 = vmatmul.mubr.f32.gmra.mrb[10].mxu1 %v5309_v54  ;;  %v4046_v27 = vpack.c.bf16 %v1007_v19, %v999_v14  ;;  %v1015_v36 = vld [vmem:[#allocation8 + $0xc98] sm:$0xff]  ;;  %v1046_v14 = vld [vmem:[#allocation8 + $0xd90] sm:$0xff] }
 0x181   :  { %3765 = vmatpush1.bf16.msra.mxu0 %v3764_v55  ;;  %4021 = vmatpush1.bf16.msra.mxu1 %v4020_v56  ;;  %v3780_v55 = vpack.c.bf16 %v956_v43, %v948_v42  ;;  %v4036_v56 = vpack.c.bf16 %v958_v48, %v950_v47  ;;  %v1023_v37 = vld [vmem:[#allocation8 + $0xcd8] sm:$0xff]  ;;  %v1012_v42 = vld [vmem:[#allocation8 + $0xc80] sm:$0xff]  ;;  %v1014_v47 = vld [vmem:[#allocation8 + $0xc90] sm:$0xff] }
 0x182   :  { %3767 = vmatprep.subr.bf16.mxu0 %v3766_v60  ;;  %4023 = vmatprep.subr.bf16.mxu1 %v4022_v31  ;;  %v3782_v60 = vpack.c.bf16 %v973_v51, %v965_v50  ;;  %v4038_v31 = vpack.c.bf16 %v975_v53, %v967_v52  ;;  %v1020_v43 = vld [vmem:[#allocation8 + $0xcc0] sm:$0xff]  ;;  %v1022_v48 = vld [vmem:[#allocation8 + $0xcd0] sm:$0xff]  ;;  %v1029_v50 = vld [vmem:[#allocation8 + $0xd08] sm:$0xff] }
 0x183   :  { %1819 = vmatprep.mubr.f32.mxu0 %v5325_v22  ;;  %2127 = vmatprep.mubr.f32.mxu1 %v5325_v22  ;;  %v1037_v52 = vld [vmem:[#allocation8 + $0xd48] sm:$0xff]  ;;  %v1031_v53 = vld [vmem:[#allocation8 + $0xd18] sm:$0xff]  ;;  %v1054_v19 = vld [vmem:[#allocation8 + $0xdd0] sm:$0xff] }
 0x185   :  { %3769 = vmatpush1.bf16.msra.mxu0 %v3768_v5  ;;  %4025 = vmatpush1.bf16.msra.mxu1 %v4024_v6  ;;  %v3784_v5 = vpack.c.bf16 %v972_v58, %v964_v57  ;;  %v4040_v6 = vpack.c.bf16 %v974_v62, %v966_v61  ;;  %v3796_v57 = vpack.c.bf16 %v1020_v43, %v1012_v42  ;;  %v1079_v42 = vld [vmem:[#allocation8 + $0xe98] sm:$0xff] }
 0x186   :  { %3771 = vmatprep.subr.bf16.mxu0 %v3770_v10  ;;  %4027 = vmatprep.subr.bf16.mxu1 %v4026_v11  ;;  %v4042_v10 = vpack.c.bf16 %v991_v3, %v983_v0  ;;  %v982_v11 = vld [vmem:[#allocation8 + $0xb90] sm:$0xff]  ;;  %v4052_v58 = vpack.c.bf16 %v1022_v48, %v1014_v47  ;;  %v3798_v61 = vpack.c.bf16 %v1037_v52, %v1029_v50  ;;  %v1045_v0 = vld [vmem:[#allocation8 + $0xd88] sm:$0xff]  ;;  %v1087_v43 = vld [vmem:[#allocation8 + $0xed8] sm:$0xff] }
 0x187   :  { %v4044_v21 = vpack.c.bf16 %v990_v12, %v982_v11  ;;  %v1053_v3 = vld [vmem:[#allocation8 + $0xdc8] sm:$0xff]  ;;  %v1052_v11 = vld [vmem:[#allocation8 + $0xdc0] sm:$0xff]  ;;  %v4066_v52 = vpack.c.bf16 %v1087_v43, %v1079_v42 }
 0x188   :  { %v3802_v44 = vpack.c.bf16 %v1053_v3, %v1045_v0  ;;  %v1076_v47 = vld [vmem:[#allocation8 + $0xe80] sm:$0xff] }
 0x189   :  { %3773 = vmatpush1.bf16.msra.mxu0 %v3772_v24  ;;  %4029 = vmatpush1.bf16.msra.mxu1 %v4028_v25  ;;  %v996_v24 = vld [vmem:[#allocation8 + $0xc00] sm:$0xff] }
 0x18a   :  { %3775 = vmatprep.subr.bf16.mxu0 %v3774_v29  ;;  %4031 = vmatprep.subr.bf16.mxu1 %v4030_v30  ;;  %v1004_v25 = vld [vmem:[#allocation8 + $0xc40] sm:$0xff]  ;;  %v998_v29 = vld [vmem:[#allocation8 + $0xc10] sm:$0xff] }
 0x18b   :  { %v1006_v30 = vld [vmem:[#allocation8 + $0xc50] sm:$0xff]  ;;  %v1084_v48 = vld [vmem:[#allocation8 + $0xec0] sm:$0xff] }
 0x18c   :  { %v1100_v0 = vld [vmem:[#allocation8 + $0xf40] sm:$0xff] }
 0x18d   :  { %3777 = vmatpush1.bf16.msra.mxu0 %v3776_v39  ;;  %4033 = vmatpush1.bf16.msra.mxu1 %v4032_v40  ;;  %v3792_v39 = vpack.c.bf16 %v1004_v25, %v996_v24  ;;  %v4048_v40 = vpack.c.bf16 %v1006_v30, %v998_v29  ;;  %v1063_v24 = vld [vmem:[#allocation8 + $0xe18] sm:$0xff]  ;;  %v1060_v29 = vld [vmem:[#allocation8 + $0xe00] sm:$0xff] }
 0x18e   :  { %3779 = vmatprep.subr.bf16.mxu0 %v3778_v45  ;;  %4035 = vmatprep.subr.bf16.mxu1 %v4034_v46  ;;  %v3794_v45 = vpack.c.bf16 %v1021_v35, %v1013_v32  ;;  %v4050_v46 = vpack.c.bf16 %v1023_v37, %v1015_v36  ;;  %v1071_v25 = vld [vmem:[#allocation8 + $0xe58] sm:$0xff]  ;;  %v1068_v30 = vld [vmem:[#allocation8 + $0xe40] sm:$0xff]  ;;  %v1062_v36 = vld [vmem:[#allocation8 + $0xe10] sm:$0xff] }
 0x18f   :  { %v4062_v35 = vpack.c.bf16 %v1071_v25, %v1063_v24  ;;  %v1070_v37 = vld [vmem:[#allocation8 + $0xe50] sm:$0xff]  ;;  %v1124_v42 = vld [vmem:[#allocation8 + $0x1000] sm:$0xff] }
 0x190   :  { %v1132_v43 = vld [vmem:[#allocation8 + $0x1040] sm:$0xff] }
 0x191   :  { %3781 = vmatpush1.bf16.msra.mxu0 %v3780_v55  ;;  %4037 = vmatpush1.bf16.msra.mxu1 %v4036_v56  ;;  %v1039_v55 = vld [vmem:[#allocation8 + $0xd58] sm:$0xff] }
 0x192   :  { %3783 = vmatprep.subr.bf16.mxu0 %v3782_v60  ;;  %4039 = vmatprep.subr.bf16.mxu1 %v4038_v31  ;;  %v1028_v60 = vld [vmem:[#allocation8 + $0xd00] sm:$0xff]  ;;  %v4054_v62 = vpack.c.bf16 %v1039_v55, %v1031_v53  ;;  %v1078_v53 = vld [vmem:[#allocation8 + $0xe90] sm:$0xff] }
 0x193   :  { %v1036_v31 = vld [vmem:[#allocation8 + $0xd40] sm:$0xff]  ;;  %v1086_v55 = vld [vmem:[#allocation8 + $0xed0] sm:$0xff] }
 0x194   :  { %v3800_v8 = vpack.c.bf16 %v1036_v31, %v1028_v60  ;;  %v1095_v60 = vld [vmem:[#allocation8 + $0xf18] sm:$0xff] }
 0x195   :  { %3785 = vmatpush1.bf16.msra.mxu0 %v3784_v5  ;;  %4041 = vmatpush1.bf16.msra.mxu1 %v4040_v6  ;;  %v5333_v33 = vpop.f32.mrb[4].mxu0  ;;  %v1047_v5 = vld [vmem:[#allocation8 + $0xd98] sm:$0xff] }
 0x196   :  { %3787 = vmatprep.subr.bf16.mxu0 %v3786_v9  ;;  %4043 = vmatprep.subr.bf16.mxu1 %v4042_v10  ;;  %v5335_v38 = vpop.f32.mrb[5].mxu0  ;;  %v1055_v6 = vld [vmem:[#allocation8 + $0xdd8] sm:$0xff]  ;;  %v4056_v9 = vpack.c.bf16 %v1038_v2, %v1030_v63  ;;  %v1044_v10 = vld [vmem:[#allocation8 + $0xd80] sm:$0xff]  ;;  %v4068_v63 = vpack.c.bf16 %v1086_v55, %v1078_v53  ;;  %v1149_v53 = vld [vmem:[#allocation8 + $0x10c8] sm:$0xff] }
 0x197   :  { %v5341_v7 = vpop.f32.mrb[4].mxu1  ;;  %v4058_v13 = vpack.c.bf16 %v1055_v6, %v1047_v5  ;;  %v1103_v31 = vld [vmem:[#allocation8 + $0xf58] sm:$0xff]  ;;  %v1092_v2 = vld [vmem:[#allocation8 + $0xf00] sm:$0xff]  ;;  %v1094_v6 = vld [vmem:[#allocation8 + $0xf10] sm:$0xff] }
 0x198   :  { %v5343_v12 = vpop.f32.mrb[5].mxu1  ;;  %v4070_v5 = vpack.c.bf16 %v1103_v31, %v1095_v60  ;;  %v1143_v55 = vld [vmem:[#allocation8 + $0x1098] sm:$0xff] }
 0x199   :  { %3789 = vmatpush1.bf16.msra.mxu0 %v3788_v20  ;;  %4045 = vmatpush1.bf16.msra.mxu1 %v4044_v21  ;;  %v5337_v51 = vpop.f32.mrb[6].mxu0  ;;  %v1061_v20 = vld [vmem:[#allocation8 + $0xe08] sm:$0xff] }
 0x19a   :  { %3791 = vmatprep.subr.bf16.mxu0 %v3790_v26  ;;  %4047 = vmatprep.subr.bf16.mxu1 %v4046_v27  ;;  %v5339_v56 = vpop.f32.mrb[7].mxu0  ;;  %v1069_v21 = vld [vmem:[#allocation8 + $0xe48] sm:$0xff]  ;;  %v3804_v26 = vpack.c.bf16 %v1052_v11, %v1044_v10  ;;  %v4060_v27 = vpack.c.bf16 %v1054_v19, %v1046_v14  ;;  %v1111_v11 = vld [vmem:[#allocation8 + $0xf98] sm:$0xff]  ;;  %v3816_v14 = vpack.c.bf16 %v1100_v0, %v1092_v2  ;;  %v1140_v2 = vld [vmem:[#allocation8 + $0x1080] sm:$0xff] }
 0x19b   :  { %v3806_v32 = vpack.c.bf16 %v1069_v21, %v1061_v20  ;;  %v1117_v10 = vld [vmem:[#allocation8 + $0xfc8] sm:$0xff]  ;;  %v1108_v20 = vld [vmem:[#allocation8 + $0xf80] sm:$0xff] }
 0x19c   :  { %v1116_v21 = vld [vmem:[#allocation8 + $0xfc0] sm:$0xff] }
 0x19d   :  { %3793 = vmatpush1.bf16.msra.mxu0 %v3792_v39  ;;  %4049 = vmatpush1.bf16.msra.mxu1 %v4048_v40  ;;  %v1077_v39 = vld [vmem:[#allocation8 + $0xe88] sm:$0xff]  ;;  %v1148_v0 = vld [vmem:[#allocation8 + $0x10c0] sm:$0xff] }
 0x19e   :  { %3795 = vmatprep.subr.bf16.mxu0 %v3794_v45  ;;  %4051 = vmatprep.subr.bf16.mxu1 %v4050_v46  ;;  %v1085_v40 = vld [vmem:[#allocation8 + $0xec8] sm:$0xff]  ;;  %v3808_v45 = vpack.c.bf16 %v1068_v30, %v1060_v29  ;;  %v4064_v46 = vpack.c.bf16 %v1070_v37, %v1062_v36  ;;  %v270_v36 = vsub.s32 5, %v5288_v15 }
 0x19f   :  { %v3810_v50 = vpack.c.bf16 %v1085_v40, %v1077_v39  ;;  %v1125_v29 = vld [vmem:[#allocation8 + $0x1008] sm:$0xff]  ;;  %v3820_v39 = vpack.c.bf16 %v1116_v21, %v1108_v20  ;;  %v1164_v20 = vld [vmem:[#allocation8 + $0x1140] sm:$0xff] }
 0x1a0   :  { %v1133_v30 = vld [vmem:[#allocation8 + $0x1048] sm:$0xff] }
 0x1a1   :  { %3797 = vmatpush1.bf16.msra.mxu0 %v3796_v57  ;;  %4053 = vmatpush1.bf16.msra.mxu1 %v4052_v58  ;;  %v1093_v57 = vld [vmem:[#allocation8 + $0xf08] sm:$0xff] }
 0x1a2   :  { %3799 = vmatprep.subr.bf16.mxu0 %v3798_v61  ;;  %4055 = vmatprep.subr.bf16.mxu1 %v4054_v62  ;;  %v1101_v58 = vld [vmem:[#allocation8 + $0xf48] sm:$0xff]  ;;  %v258_v61 = vsub.s32 2, %v5288_v15  ;;  %v3812_v62 = vpack.c.bf16 %v1084_v48, %v1076_v47  ;;  %v1126_v47 = vld [vmem:[#allocation8 + $0x1010] sm:$0xff] }
 0x1a3   :  { %v3814_v3 = vpack.c.bf16 %v1101_v58, %v1093_v57  ;;  %v1134_v48 = vld [vmem:[#allocation8 + $0x1050] sm:$0xff]  ;;  %v1151_v57 = vld [vmem:[#allocation8 + $0x10d8] sm:$0xff]  ;;  %v5358_v58 = vrot.slane %v5291_v17, %v270_v36 }
 0x1a5   :  { %3801 = vmatpush1.bf16.msra.mxu0 %v3800_v8  ;;  %4057 = vmatpush1.bf16.msra.mxu1 %v4056_v9  ;;  %v1102_v8 = vld [vmem:[#allocation8 + $0xf50] sm:$0xff]  ;;  %v1109_v9 = vld [vmem:[#allocation8 + $0xf88] sm:$0xff] }
 0x1a6   :  { %3803 = vmatprep.subr.bf16.mxu0 %v3802_v44  ;;  %4059 = vmatprep.subr.bf16.mxu1 %v4058_v13  ;;  %v1119_v44 = vld [vmem:[#allocation8 + $0xfd8] sm:$0xff]  ;;  %v259_v13 = vrot.slane %v5291_v17, %v258_v61  ;;  %v4072_v19 = vpack.c.bf16 %v1102_v8, %v1094_v6  ;;  %v3818_v24 = vpack.c.bf16 %v1117_v10, %v1109_v9  ;;  %v1150_v6 = vld [vmem:[#allocation8 + $0x10d0] sm:$0xff]  ;;  %v1157_v17 = vld [vmem:[#allocation8 + $0x1108] sm:$0xff] }
 0x1a7   :  { %v4074_v25 = vpack.c.bf16 %v1119_v44, %v1111_v11  ;;  %v1165_v8 = vld [vmem:[#allocation8 + $0x1148] sm:$0xff]  ;;  %v1159_v9 = vld [vmem:[#allocation8 + $0x1118] sm:$0xff] }
 0x1a8   :  { %v432_v37 = vadd.f32 %v5320_v4, %v259_v13  ;;  %v440_v4 = vadd.f32 %v5329_v28, %v5316_v1  ;;  %v438_v31 = vadd.f32 %v5327_v23, %v259_v13  ;;  %v4082_v28 = vpack.c.bf16 %v1151_v57, %v1143_v55  ;;  %v1167_v10 = vld [vmem:[#allocation8 + $0x1158] sm:$0xff] }
 0x1a9   :  { %3805 = vmatpush1.bf16.msra.mxu0 %v3804_v26  ;;  %4061 = vmatpush1.bf16.msra.mxu1 %v4060_v27  ;;  %v1110_v26 = vld [vmem:[#allocation8 + $0xf90] sm:$0xff]  ;;  %v511_v23 = vadd.f32 %v5335_v38, %v5358_v58  ;;  %v3828_v13 = vpack.c.bf16 %v1148_v0, %v1140_v2  ;;  %v3830_v21 = vpack.c.bf16 %v1165_v8, %v1157_v17  ;;  %v1181_v38 = vld [vmem:[#allocation8 + $0x11c8] sm:$0xff] }
 0x1aa   :  { %3807 = vmatprep.subr.bf16.mxu0 %v3806_v32  ;;  %4063 = vmatprep.subr.bf16.mxu1 %v4062_v35  ;;  %v1118_v27 = vld [vmem:[#allocation8 + $0xfd0] sm:$0xff]  ;;  %v1127_v32 = vld [vmem:[#allocation8 + $0x1018] sm:$0xff]  ;;  %v5360_v60 = vmax.f32 %v432_v37, 0.0  ;;  %v5365_v11 = vmax.f32 %v440_v4, 0.0  ;;  %v5371_v44 = vmax.f32 %v438_v31, 0.0  ;;  %v1188_v4 = vld [vmem:[#allocation8 + $0x1200] sm:$0xff] }
 0x1ab   :  { %v1135_v35 = vld [vmem:[#allocation8 + $0x1058] sm:$0xff]  ;;  %v4076_v40 = vpack.c.bf16 %v1118_v27, %v1110_v26  ;;  %v1166_v26 = vld [vmem:[#allocation8 + $0x1150] sm:$0xff]  ;;  %v1173_v27 = vld [vmem:[#allocation8 + $0x1188] sm:$0xff] }
 0x1ac   :  { %v1196_v31 = vld [vmem:[#allocation8 + $0x1240] sm:$0xff]  ;;  %v1190_v2 = vld [vmem:[#allocation8 + $0x1210] sm:$0xff] }
 0x1ad   :  { %3809 = vmatpush1.bf16.msra.mxu0 %v3808_v45  ;;  %4065 = vmatpush1.bf16.msra.mxu1 %v4064_v46  ;;  %v3822_v45 = vpack.c.bf16 %v1133_v30, %v1125_v29  ;;  %v4078_v46 = vpack.c.bf16 %v1135_v35, %v1127_v32  ;;  %v1175_v29 = vld [vmem:[#allocation8 + $0x1198] sm:$0xff]  ;;  %v5373_v32 = vmax.f32 %v511_v23, 0.0  ;;  %v1198_v0 = vld [vmem:[#allocation8 + $0x1250] sm:$0xff]  ;;  %v3840_v17 = vpack.c.bf16 %v1196_v31, %v1188_v4  ;;  %v1253_v31 = vld [vmem:[#allocation8 + $0x1408] sm:$0xff] }
 0x1ae   :  { %3811 = vmatprep.subr.bf16.mxu0 %v3810_v50  ;;  %4067 = vmatprep.subr.bf16.mxu1 %v4066_v52  ;;  %v1141_v50 = vld [vmem:[#allocation8 + $0x1088] sm:$0xff]  ;;  %v5351_v52 = vpop.f32.mrb[6].mxu1  ;;  %v1183_v30 = vld [vmem:[#allocation8 + $0x11d8] sm:$0xff]  ;;  %v4096_v8 = vpack.c.bf16 %v1198_v0, %v1190_v2  ;;  %v1246_v4 = vld [vmem:[#allocation8 + $0x13d0] sm:$0xff] }
 0x1af   :  { %v3826_v1 = vpack.c.bf16 %v1149_v53, %v1141_v50  ;;  %v1191_v50 = vld [vmem:[#allocation8 + $0x1218] sm:$0xff] }
 0x1b0   :  { %v1199_v53 = vld [vmem:[#allocation8 + $0x1258] sm:$0xff] }
 0x1b1   :  { %3813 = vmatpush1.bf16.msra.mxu0 %v3812_v62  ;;  %4069 = vmatpush1.bf16.msra.mxu1 %v4068_v63  ;;  %v3824_v62 = vpack.c.bf16 %v1132_v43, %v1124_v42  ;;  %v4080_v63 = vpack.c.bf16 %v1134_v48, %v1126_v47  ;;  %v3834_v42 = vpack.c.bf16 %v1181_v38, %v1173_v27  ;;  %v1189_v47 = vld [vmem:[#allocation8 + $0x1208] sm:$0xff]  ;;  %v1220_v38 = vld [vmem:[#allocation8 + $0x1300] sm:$0xff]  ;;  %v1263_v2 = vld [vmem:[#allocation8 + $0x1458] sm:$0xff] }
 0x1b2   :  { %3815 = vmatprep.subr.bf16.mxu0 %v3814_v3  ;;  %4071 = vmatprep.subr.bf16.mxu1 %v4070_v5  ;;  %v5363_v3 = vpop.f32.mrb[7].mxu1  ;;  %v1142_v5 = vld [vmem:[#allocation8 + $0x1090] sm:$0xff]  ;;  %v4090_v43 = vpack.c.bf16 %v1183_v30, %v1175_v29  ;;  %v1197_v48 = vld [vmem:[#allocation8 + $0x1248] sm:$0xff]  ;;  %v1228_v29 = vld [vmem:[#allocation8 + $0x1340] sm:$0xff] }
 0x1b5   :  { %3817 = vmatpush1.bf16.msra.mxu0 %v3816_v14  ;;  %4073 = vmatpush1.bf16.msra.mxu1 %v4072_v19  ;;  %v4084_v14 = vpack.c.bf16 %v1150_v6, %v1142_v5  ;;  %v1156_v19 = vld [vmem:[#allocation8 + $0x1100] sm:$0xff]  ;;  %v1207_v5 = vld [vmem:[#allocation8 + $0x1298] sm:$0xff] }
 0x1b6   :  { %3819 = vmatprep.subr.bf16.mxu0 %v3818_v24  ;;  %4075 = vmatprep.subr.bf16.mxu1 %v4074_v25  ;;  %v4086_v24 = vpack.c.bf16 %v1167_v10, %v1159_v9  ;;  %v1158_v25 = vld [vmem:[#allocation8 + $0x1110] sm:$0xff]  ;;  %v3832_v35 = vpack.c.bf16 %v1164_v20, %v1156_v19  ;;  %v1215_v6 = vld [vmem:[#allocation8 + $0x12d8] sm:$0xff]  ;;  %v1204_v9 = vld [vmem:[#allocation8 + $0x1280] sm:$0xff] }
 0x1b7   :  { %v4088_v37 = vpack.c.bf16 %v1166_v26, %v1158_v25  ;;  %v1212_v10 = vld [vmem:[#allocation8 + $0x12c0] sm:$0xff]  ;;  %v1214_v19 = vld [vmem:[#allocation8 + $0x12d0] sm:$0xff]  ;;  %v1221_v20 = vld [vmem:[#allocation8 + $0x1308] sm:$0xff] }
 0x1b8   :  { %v1231_v25 = vld [vmem:[#allocation8 + $0x1358] sm:$0xff]  ;;  %v3844_v26 = vpack.c.bf16 %v1212_v10, %v1204_v9  ;;  %v1262_v9 = vld [vmem:[#allocation8 + $0x1450] sm:$0xff]  ;;  %v1269_v10 = vld [vmem:[#allocation8 + $0x1488] sm:$0xff] }
 0x1b9   :  { %3821 = vmatpush1.bf16.msra.mxu0 %v3820_v39  ;;  %4077 = vmatpush1.bf16.msra.mxu1 %v4076_v40  ;;  %v1172_v39 = vld [vmem:[#allocation8 + $0x1180] sm:$0xff] }
 0x1ba   :  { %3823 = vmatprep.subr.bf16.mxu0 %v3822_v45  ;;  %4079 = vmatprep.subr.bf16.mxu1 %v4078_v46  ;;  %v1180_v40 = vld [vmem:[#allocation8 + $0x11c0] sm:$0xff]  ;;  %v1174_v45 = vld [vmem:[#allocation8 + $0x1190] sm:$0xff] }
 0x1bb   :  { %v1182_v46 = vld [vmem:[#allocation8 + $0x11d0] sm:$0xff]  ;;  %v3836_v55 = vpack.c.bf16 %v1180_v40, %v1172_v39  ;;  %v1237_v40 = vld [vmem:[#allocation8 + $0x1388] sm:$0xff] }
 0x1bc   :  { %1820 = vmatmul.mubr.f32.vlgmr.msra.gmra.mrb[8].mxu0 %v5360_v60  ;;  %2128 = vmatmul.mubr.f32.vlgmr.msra.gmra.mrb[8].mxu1 %v5360_v60  ;;  %v4092_v57 = vpack.c.bf16 %v1182_v46, %v1174_v45  ;;  %v1230_v39 = vld [vmem:[#allocation8 + $0x1350] sm:$0xff]  ;;  %v1247_v45 = vld [vmem:[#allocation8 + $0x13d8] sm:$0xff]  ;;  %v3848_v46 = vpack.c.bf16 %v1228_v29, %v1220_v38  ;;  %v1285_v29 = vld [vmem:[#allocation8 + $0x1508] sm:$0xff] }
 0x1bd   :  { %3825 = vmatpush1.bf16.msra.mxu0 %v3824_v62  ;;  %4081 = vmatpush1.bf16.msra.mxu1 %v4080_v63  ;;  %v3838_v62 = vpack.c.bf16 %v1197_v48, %v1189_v47  ;;  %v4094_v63 = vpack.c.bf16 %v1199_v53, %v1191_v50  ;;  %v1236_v48 = vld [vmem:[#allocation8 + $0x1380] sm:$0xff]  ;;  %v1278_v38 = vld [vmem:[#allocation8 + $0x14d0] sm:$0xff] }
 0x1be   :  { %3827 = vmatprep.subr.bf16.mxu0 %v3826_v1  ;;  %4083 = vmatprep.subr.bf16.mxu1 %v4082_v28  ;;  %v1205_v1 = vld [vmem:[#allocation8 + $0x1288] sm:$0xff]  ;;  %v1244_v50 = vld [vmem:[#allocation8 + $0x13c0] sm:$0xff] }
 0x1bf   :  { %1825 = vmatprep.mubr.f32.mxu0 %v5365_v11  ;;  %2133 = vmatprep.mubr.f32.mxu1 %v5365_v11  ;;  %v1213_v28 = vld [vmem:[#allocation8 + $0x12c8] sm:$0xff]  ;;  %v3852_v0 = vpack.c.bf16 %v1244_v50, %v1236_v48  ;;  %v1294_v48 = vld [vmem:[#allocation8 + $0x1550] sm:$0xff] }
 0x1c0   :  { %1826 = vmatmul.mubr.f32.gmra.mrb[10].mxu0 %v5371_v44  ;;  %2134 = vmatmul.mubr.f32.gmra.mrb[10].mxu1 %v5371_v44  ;;  %v3842_v23 = vpack.c.bf16 %v1213_v28, %v1205_v1  ;;  %v1252_v28 = vld [vmem:[#allocation8 + $0x1400] sm:$0xff]  ;;  %v1301_v50 = vld [vmem:[#allocation8 + $0x1588] sm:$0xff] }
 0x1c1   :  { %3829 = vmatpush1.bf16.msra.mxu0 %v3828_v13  ;;  %4085 = vmatpush1.bf16.msra.mxu1 %v4084_v14  ;;  %v4098_v13 = vpack.c.bf16 %v1215_v6, %v1207_v5  ;;  %v1206_v14 = vld [vmem:[#allocation8 + $0x1290] sm:$0xff]  ;;  %v1260_v5 = vld [vmem:[#allocation8 + $0x1440] sm:$0xff] }
 0x1c2   :  { %3831 = vmatprep.subr.bf16.mxu0 %v3830_v21  ;;  %4087 = vmatprep.subr.bf16.mxu1 %v4086_v24  ;;  %v1229_v21 = vld [vmem:[#allocation8 + $0x1348] sm:$0xff]  ;;  %v1223_v24 = vld [vmem:[#allocation8 + $0x1318] sm:$0xff]  ;;  %v4100_v27 = vpack.c.bf16 %v1214_v19, %v1206_v14  ;;  %v3856_v19 = vpack.c.bf16 %v1260_v5, %v1252_v28  ;;  %v1310_v28 = vld [vmem:[#allocation8 + $0x15d0] sm:$0xff] }
 0x1c3   :  { %1896 = vmatprep.mubr.f32.mxu0 %v5373_v32  ;;  %2204 = vmatprep.mubr.f32.mxu1 %v5373_v32  ;;  %v3846_v30 = vpack.c.bf16 %v1229_v21, %v1221_v20  ;;  %v1279_v14 = vld [vmem:[#allocation8 + $0x14d8] sm:$0xff]  ;;  %v1268_v21 = vld [vmem:[#allocation8 + $0x1480] sm:$0xff]  ;;  %v1317_v5 = vld [vmem:[#allocation8 + $0x1608] sm:$0xff] }
 0x1c5   :  { %3833 = vmatpush1.bf16.msra.mxu0 %v3832_v35  ;;  %4089 = vmatpush1.bf16.msra.mxu1 %v4088_v37  ;;  %v4102_v35 = vpack.c.bf16 %v1231_v25, %v1223_v24  ;;  %v1222_v37 = vld [vmem:[#allocation8 + $0x1310] sm:$0xff]  ;;  %v1276_v24 = vld [vmem:[#allocation8 + $0x14c0] sm:$0xff] }
 0x1c6   :  { %3835 = vmatprep.subr.bf16.mxu0 %v3834_v42  ;;  %4091 = vmatprep.subr.bf16.mxu1 %v4090_v43  ;;  %v1245_v42 = vld [vmem:[#allocation8 + $0x13c8] sm:$0xff]  ;;  %v1239_v43 = vld [vmem:[#allocation8 + $0x1398] sm:$0xff]  ;;  %v4104_v47 = vpack.c.bf16 %v1230_v39, %v1222_v37  ;;  %v3860_v39 = vpack.c.bf16 %v1276_v24, %v1268_v21  ;;  %v1326_v21 = vld [vmem:[#allocation8 + $0x1650] sm:$0xff] }
 0x1c7   :  { %v3850_v53 = vpack.c.bf16 %v1245_v42, %v1237_v40  ;;  %v1295_v37 = vld [vmem:[#allocation8 + $0x1558] sm:$0xff]  ;;  %v1284_v42 = vld [vmem:[#allocation8 + $0x1500] sm:$0xff]  ;;  %v1333_v24 = vld [vmem:[#allocation8 + $0x1688] sm:$0xff] }
 0x1c9   :  { %3837 = vmatpush1.bf16.msra.mxu0 %v3836_v55  ;;  %4093 = vmatpush1.bf16.msra.mxu1 %v4092_v57  ;;  %v4106_v55 = vpack.c.bf16 %v1247_v45, %v1239_v43  ;;  %v1238_v57 = vld [vmem:[#allocation8 + $0x1390] sm:$0xff]  ;;  %v1292_v43 = vld [vmem:[#allocation8 + $0x1540] sm:$0xff] }
 0x1ca   :  { %3839 = vmatprep.subr.bf16.mxu0 %v3838_v62  ;;  %4095 = vmatprep.subr.bf16.mxu1 %v4094_v63  ;;  %v1261_v62 = vld [vmem:[#allocation8 + $0x1448] sm:$0xff]  ;;  %v1255_v63 = vld [vmem:[#allocation8 + $0x1418] sm:$0xff]  ;;  %v4108_v1 = vpack.c.bf16 %v1246_v4, %v1238_v57  ;;  %v3864_v4 = vpack.c.bf16 %v1292_v43, %v1284_v42  ;;  %v1342_v42 = vld [vmem:[#allocation8 + $0x16d0] sm:$0xff] }
 0x1cb   :  { %v3854_v6 = vpack.c.bf16 %v1261_v62, %v1253_v31  ;;  %v1311_v57 = vld [vmem:[#allocation8 + $0x15d8] sm:$0xff]  ;;  %v1300_v62 = vld [vmem:[#allocation8 + $0x1580] sm:$0xff]  ;;  %v1349_v43 = vld [vmem:[#allocation8 + $0x1708] sm:$0xff] }
 0x1cd   :  { %3841 = vmatpush1.bf16.msra.mxu0 %v3840_v17  ;;  %4097 = vmatpush1.bf16.msra.mxu1 %v4096_v8  ;;  %v4110_v17 = vpack.c.bf16 %v1263_v2, %v1255_v63  ;;  %v1254_v8 = vld [vmem:[#allocation8 + $0x1410] sm:$0xff]  ;;  %v1308_v63 = vld [vmem:[#allocation8 + $0x15c0] sm:$0xff] }
 0x1ce   :  { %3843 = vmatprep.subr.bf16.mxu0 %v3842_v23  ;;  %4099 = vmatprep.subr.bf16.mxu1 %v4098_v13  ;;  %v1277_v23 = vld [vmem:[#allocation8 + $0x14c8] sm:$0xff]  ;;  %v1271_v13 = vld [vmem:[#allocation8 + $0x1498] sm:$0xff]  ;;  %v4112_v20 = vpack.c.bf16 %v1262_v9, %v1254_v8  ;;  %v3868_v9 = vpack.c.bf16 %v1308_v63, %v1300_v62  ;;  %v1350_v62 = vld [vmem:[#allocation8 + $0x1710] sm:$0xff] }
 0x1cf   :  { %v3858_v25 = vpack.c.bf16 %v1277_v23, %v1269_v10  ;;  %v1327_v8 = vld [vmem:[#allocation8 + $0x1658] sm:$0xff]  ;;  %v1316_v23 = vld [vmem:[#allocation8 + $0x1600] sm:$0xff]  ;;  %v1358_v63 = vld [vmem:[#allocation8 + $0x1750] sm:$0xff] }
 0x1d1   :  { %3845 = vmatpush1.bf16.msra.mxu0 %v3844_v26  ;;  %4101 = vmatpush1.bf16.msra.mxu1 %v4100_v27  ;;  %v4114_v26 = vpack.c.bf16 %v1279_v14, %v1271_v13  ;;  %v1270_v27 = vld [vmem:[#allocation8 + $0x1490] sm:$0xff]  ;;  %v1324_v13 = vld [vmem:[#allocation8 + $0x1640] sm:$0xff] }
 0x1d2   :  { %3847 = vmatprep.subr.bf16.mxu0 %v3846_v30  ;;  %4103 = vmatprep.subr.bf16.mxu1 %v4102_v35  ;;  %v1293_v30 = vld [vmem:[#allocation8 + $0x1548] sm:$0xff]  ;;  %v1287_v35 = vld [vmem:[#allocation8 + $0x1518] sm:$0xff]  ;;  %v4116_v40 = vpack.c.bf16 %v1278_v38, %v1270_v27  ;;  %v3872_v38 = vpack.c.bf16 %v1324_v13, %v1316_v23 }
 0x1d3   :  { %v3862_v45 = vpack.c.bf16 %v1293_v30, %v1285_v29  ;;  %v1343_v27 = vld [vmem:[#allocation8 + $0x16d8] sm:$0xff]  ;;  %v1332_v30 = vld [vmem:[#allocation8 + $0x1680] sm:$0xff] }
 0x1d5   :  { %3849 = vmatpush1.bf16.msra.mxu0 %v3848_v46  ;;  %4105 = vmatpush1.bf16.msra.mxu1 %v4104_v47  ;;  %v4118_v46 = vpack.c.bf16 %v1295_v37, %v1287_v35  ;;  %v1286_v47 = vld [vmem:[#allocation8 + $0x1510] sm:$0xff]  ;;  %v1340_v35 = vld [vmem:[#allocation8 + $0x16c0] sm:$0xff] }
 0x1d6   :  { %3851 = vmatprep.subr.bf16.mxu0 %v3850_v53  ;;  %4107 = vmatprep.subr.bf16.mxu1 %v4106_v55  ;;  %v1309_v53 = vld [vmem:[#allocation8 + $0x15c8] sm:$0xff]  ;;  %v1303_v55 = vld [vmem:[#allocation8 + $0x1598] sm:$0xff]  ;;  %v4120_v31 = vpack.c.bf16 %v1294_v48, %v1286_v47  ;;  %v266_v48 = vsub.s32 4, %v5288_v15 }
 0x1d7   :  { %v3866_v2 = vpack.c.bf16 %v1309_v53, %v1301_v50  ;;  %v1359_v47 = vld [vmem:[#allocation8 + $0x1758] sm:$0xff]  ;;  %v3876_v50 = vpack.c.bf16 %v1340_v35, %v1332_v30  ;;  %v1380_v30 = vld [vmem:[#allocation8 + $0x1800] sm:$0xff] }
 0x1d8   :  { %v1388_v35 = vld [vmem:[#allocation8 + $0x1840] sm:$0xff] }
 0x1d9   :  { %3853 = vmatpush1.bf16.msra.mxu0 %v3852_v0  ;;  %4109 = vmatpush1.bf16.msra.mxu1 %v4108_v1  ;;  %v4122_v0 = vpack.c.bf16 %v1311_v57, %v1303_v55  ;;  %v1302_v1 = vld [vmem:[#allocation8 + $0x1590] sm:$0xff]  ;;  %v1348_v55 = vld [vmem:[#allocation8 + $0x1700] sm:$0xff] }
 0x1da   :  { %3855 = vmatprep.subr.bf16.mxu0 %v3854_v6  ;;  %4111 = vmatprep.subr.bf16.mxu1 %v4110_v17  ;;  %v1325_v6 = vld [vmem:[#allocation8 + $0x1648] sm:$0xff]  ;;  %v1319_v17 = vld [vmem:[#allocation8 + $0x1618] sm:$0xff]  ;;  %v4124_v10 = vpack.c.bf16 %v1310_v28, %v1302_v1  ;;  %v1356_v57 = vld [vmem:[#allocation8 + $0x1740] sm:$0xff] }
 0x1db   :  { %v3870_v14 = vpack.c.bf16 %v1325_v6, %v1317_v5  ;;  %v1367_v1 = vld [vmem:[#allocation8 + $0x1798] sm:$0xff] }
 0x1dc   :  { %v1375_v28 = vld [vmem:[#allocation8 + $0x17d8] sm:$0xff] }
 0x1dd   :  { %3857 = vmatpush1.bf16.msra.mxu0 %v3856_v19  ;;  %4113 = vmatpush1.bf16.msra.mxu1 %v4112_v20  ;;  %v4126_v19 = vpack.c.bf16 %v1327_v8, %v1319_v17  ;;  %v1318_v20 = vld [vmem:[#allocation8 + $0x1610] sm:$0xff]  ;;  %v5382_v5 = vld [vmem:[#allocation7] sm:$0xff]  ;;  %v3880_v17 = vpack.c.bf16 %v1356_v57, %v1348_v55  ;;  %v4136_v8 = vpack.c.bf16 %v1358_v63, %v1350_v62  ;;  %v1404_v62 = vld [vmem:[#allocation8 + $0x18c0] sm:$0xff] }
 0x1de   :  { %3859 = vmatprep.subr.bf16.mxu0 %v3858_v25  ;;  %4115 = vmatprep.subr.bf16.mxu1 %v4114_v26  ;;  %v1341_v25 = vld [vmem:[#allocation8 + $0x16c8] sm:$0xff]  ;;  %v1335_v26 = vld [vmem:[#allocation8 + $0x1698] sm:$0xff]  ;;  %v4128_v29 = vpack.c.bf16 %v1326_v21, %v1318_v20  ;;  %v267_v6 = vrot.slane %v5382_v5, %v266_v48  ;;  %v4138_v13 = vpack.c.bf16 %v1375_v28, %v1367_v1 }
 0x1df   :  { %v3874_v37 = vpack.c.bf16 %v1341_v25, %v1333_v24  ;;  %v1381_v20 = vld [vmem:[#allocation8 + $0x1808] sm:$0xff]  ;;  %v1383_v24 = vld [vmem:[#allocation8 + $0x1818] sm:$0xff]  ;;  %v3888_v57 = vpack.c.bf16 %v1388_v35, %v1380_v30  ;;  %v1428_v35 = vld [vmem:[#allocation8 + $0x1980] sm:$0xff] }
 0x1e0   :  { %v1389_v21 = vld [vmem:[#allocation8 + $0x1848] sm:$0xff]  ;;  %v1391_v25 = vld [vmem:[#allocation8 + $0x1858] sm:$0xff]  ;;  %v515_v55 = vadd.f32 %v5337_v51, %v267_v6 }
 0x1e1   :  { %3861 = vmatpush1.bf16.msra.mxu0 %v3860_v39  ;;  %4117 = vmatpush1.bf16.msra.mxu1 %v4116_v40  ;;  %v4130_v39 = vpack.c.bf16 %v1343_v27, %v1335_v26  ;;  %v1334_v40 = vld [vmem:[#allocation8 + $0x1690] sm:$0xff]  ;;  %v278_v26 = vsub.s32 7, %v5288_v15  ;;  %v509_v27 = vadd.f32 %v5333_v33, %v267_v6  ;;  %v1421_v1 = vld [vmem:[#allocation8 + $0x1948] sm:$0xff]  ;;  %v1415_v28 = vld [vmem:[#allocation8 + $0x1918] sm:$0xff] }
 0x1e2   :  { %3863 = vmatprep.subr.bf16.mxu0 %v3862_v45  ;;  %4119 = vmatprep.subr.bf16.mxu1 %v4118_v46  ;;  %v1357_v45 = vld [vmem:[#allocation8 + $0x1748] sm:$0xff]  ;;  %v1351_v46 = vld [vmem:[#allocation8 + $0x1718] sm:$0xff]  ;;  %v4132_v53 = vpack.c.bf16 %v1342_v42, %v1334_v40  ;;  %v1382_v40 = vld [vmem:[#allocation8 + $0x1810] sm:$0xff]  ;;  %v5405_v6 = vmax.f32 %v515_v55, 0.0 }
 0x1e3   :  { %v1390_v42 = vld [vmem:[#allocation8 + $0x1850] sm:$0xff]  ;;  %v5394_v33 = vrot.slane %v5382_v5, %v278_v26 }
 0x1e5   :  { %3865 = vmatpush1.bf16.msra.mxu0 %v3864_v4  ;;  %4121 = vmatpush1.bf16.msra.mxu1 %v4120_v31  ;;  %v3878_v4 = vpack.c.bf16 %v1357_v45, %v1349_v43  ;;  %v4134_v31 = vpack.c.bf16 %v1359_v47, %v1351_v46  ;;  %v1397_v43 = vld [vmem:[#allocation8 + $0x1888] sm:$0xff]  ;;  %v1399_v46 = vld [vmem:[#allocation8 + $0x1898] sm:$0xff]  ;;  %v588_v51 = vadd.f32 %v5343_v12, %v5394_v33 }
 0x1e6   :  { %3867 = vmatprep.subr.bf16.mxu0 %v3866_v2  ;;  %4123 = vmatprep.subr.bf16.mxu1 %v4122_v0  ;;  %v1365_v2 = vld [vmem:[#allocation8 + $0x1788] sm:$0xff]  ;;  %v1407_v47 = vld [vmem:[#allocation8 + $0x18d8] sm:$0xff] }
 0x1e7   :  { %v1373_v0 = vld [vmem:[#allocation8 + $0x17c8] sm:$0xff] }
 0x1e8   :  { %v3882_v23 = vpack.c.bf16 %v1373_v0, %v1365_v2  ;;  %v1405_v45 = vld [vmem:[#allocation8 + $0x18c8] sm:$0xff]  ;;  %v4146_v2 = vpack.c.bf16 %v1407_v47, %v1399_v46  ;;  %v1447_v47 = vld [vmem:[#allocation8 + $0x1a18] sm:$0xff] }
 0x1e9   :  { %3869 = vmatpush1.bf16.msra.mxu0 %v3868_v9  ;;  %4125 = vmatpush1.bf16.msra.mxu1 %v4124_v10  ;;  %v1364_v9 = vld [vmem:[#allocation8 + $0x1780] sm:$0xff]  ;;  %v3890_v63 = vpack.c.bf16 %v1405_v45, %v1397_v43  ;;  %v1413_v0 = vld [vmem:[#allocation8 + $0x1908] sm:$0xff]  ;;  %v1438_v43 = vld [vmem:[#allocation8 + $0x19d0] sm:$0xff] }
 0x1ea   :  { %3871 = vmatprep.subr.bf16.mxu0 %v3870_v14  ;;  %4127 = vmatprep.subr.bf16.mxu1 %v4126_v19  ;;  %v1372_v10 = vld [vmem:[#allocation8 + $0x17c0] sm:$0xff]  ;;  %v1366_v14 = vld [vmem:[#allocation8 + $0x1790] sm:$0xff]  ;;  %v1437_v12 = vld [vmem:[#allocation8 + $0x19c8] sm:$0xff] }
 0x1eb   :  { %v1374_v19 = vld [vmem:[#allocation8 + $0x17d0] sm:$0xff]  ;;  %v1445_v45 = vld [vmem:[#allocation8 + $0x1a08] sm:$0xff] }
 0x1ec   :  { %v1453_v46 = vld [vmem:[#allocation8 + $0x1a48] sm:$0xff] }
 0x1ed   :  { %3873 = vmatpush1.bf16.msra.mxu0 %v3872_v38  ;;  %4129 = vmatpush1.bf16.msra.mxu1 %v4128_v29  ;;  %v3884_v38 = vpack.c.bf16 %v1372_v10, %v1364_v9  ;;  %v4140_v29 = vpack.c.bf16 %v1374_v19, %v1366_v14  ;;  %v3894_v14 = vpack.c.bf16 %v1421_v1, %v1413_v0  ;;  %v1469_v0 = vld [vmem:[#allocation8 + $0x1ac8] sm:$0xff]  ;;  %v1463_v1 = vld [vmem:[#allocation8 + $0x1a98] sm:$0xff] }
 0x1ee   :  { %3875 = vmatprep.subr.bf16.mxu0 %v3874_v37  ;;  %4131 = vmatprep.subr.bf16.mxu1 %v4130_v39  ;;  %v3886_v37 = vpack.c.bf16 %v1389_v21, %v1381_v20  ;;  %v4142_v39 = vpack.c.bf16 %v1391_v25, %v1383_v24  ;;  %v1414_v20 = vld [vmem:[#allocation8 + $0x1910] sm:$0xff]  ;;  %v1429_v24 = vld [vmem:[#allocation8 + $0x1988] sm:$0xff]  ;;  %v1431_v25 = vld [vmem:[#allocation8 + $0x1998] sm:$0xff] }
 0x1ef   :  { %v1422_v21 = vld [vmem:[#allocation8 + $0x1950] sm:$0xff] }
 0x1f0   :  { %v4152_v30 = vpack.c.bf16 %v1422_v21, %v1414_v20  ;;  %v1477_v20 = vld [vmem:[#allocation8 + $0x1b08] sm:$0xff] }
 0x1f1   :  { %3877 = vmatpush1.bf16.msra.mxu0 %v3876_v50  ;;  %4133 = vmatpush1.bf16.msra.mxu1 %v4132_v53  ;;  %v517_v50 = vadd.f32 %v5339_v56, %v5358_v58  ;;  %v5396_v53 = vmax.f32 %v509_v27, 0.0  ;;  %v1398_v56 = vld [vmem:[#allocation8 + $0x1890] sm:$0xff]  ;;  %v1439_v27 = vld [vmem:[#allocation8 + $0x19d8] sm:$0xff]  ;;  %v1485_v21 = vld [vmem:[#allocation8 + $0x1b48] sm:$0xff] }
 0x1f2   :  { %3879 = vmatprep.subr.bf16.mxu0 %v3878_v4  ;;  %4135 = vmatprep.subr.bf16.mxu1 %v4134_v31  ;;  %v4144_v4 = vpack.c.bf16 %v1390_v42, %v1382_v40  ;;  %v1396_v31 = vld [vmem:[#allocation8 + $0x1880] sm:$0xff]  ;;  %v1406_v58 = vld [vmem:[#allocation8 + $0x18d0] sm:$0xff]  ;;  %v4154_v40 = vpack.c.bf16 %v1439_v27, %v1431_v25 }
 0x1f3   :  { %v3892_v9 = vpack.c.bf16 %v1404_v62, %v1396_v31  ;;  %v4148_v10 = vpack.c.bf16 %v1406_v58, %v1398_v56  ;;  %v1430_v42 = vld [vmem:[#allocation8 + $0x1990] sm:$0xff]  ;;  %v1452_v31 = vld [vmem:[#allocation8 + $0x1a40] sm:$0xff]  ;;  %v3902_v62 = vpack.c.bf16 %v1453_v46, %v1445_v45  ;;  %v1461_v58 = vld [vmem:[#allocation8 + $0x1a88] sm:$0xff] }
 0x1f4   :  { %v1454_v56 = vld [vmem:[#allocation8 + $0x1a50] sm:$0xff]  ;;  %v1495_v45 = vld [vmem:[#allocation8 + $0x1b98] sm:$0xff] }
 0x1f5   :  { %3881 = vmatpush1.bf16.msra.mxu0 %v3880_v17  ;;  %4137 = vmatpush1.bf16.msra.mxu1 %v4136_v8  ;;  %v1423_v17 = vld [vmem:[#allocation8 + $0x1958] sm:$0xff]  ;;  %v5399_v8 = vmax.f32 %v517_v50, 0.0 }
 0x1f6   :  { %3883 = vmatprep.subr.bf16.mxu0 %v3882_v23  ;;  %4139 = vmatprep.subr.bf16.mxu1 %v4138_v13  ;;  %v1412_v23 = vld [vmem:[#allocation8 + $0x1900] sm:$0xff]  ;;  %v4150_v19 = vpack.c.bf16 %v1423_v17, %v1415_v28  ;;  %v1455_v50 = vld [vmem:[#allocation8 + $0x1a58] sm:$0xff] }
 0x1f7   :  { %v1420_v13 = vld [vmem:[#allocation8 + $0x1940] sm:$0xff]  ;;  %v1471_v28 = vld [vmem:[#allocation8 + $0x1ad8] sm:$0xff] }
 0x1f8   :  { %v1503_v46 = vld [vmem:[#allocation8 + $0x1bd8] sm:$0xff] }
 0x1f9   :  { %3885 = vmatpush1.bf16.msra.mxu0 %v3884_v38  ;;  %4141 = vmatpush1.bf16.msra.mxu1 %v4140_v29  ;;  %v5407_v38 = vmax.f32 %v588_v51, 0.0  ;;  %v3896_v29 = vpack.c.bf16 %v1420_v13, %v1412_v23  ;;  %v3906_v23 = vpack.c.bf16 %v1469_v0, %v1461_v58  ;;  %v4162_v13 = vpack.c.bf16 %v1471_v28, %v1463_v1  ;;  %v1511_v58 = vld [vmem:[#allocation8 + $0x1c18] sm:$0xff] }
 0x1fa   :  { %3887 = vmatprep.subr.bf16.mxu0 %v3886_v37  ;;  %4143 = vmatprep.subr.bf16.mxu1 %v4142_v39  ;;  %v1436_v37 = vld [vmem:[#allocation8 + $0x19c0] sm:$0xff]  ;;  %v3898_v39 = vpack.c.bf16 %v1437_v12, %v1429_v24  ;;  %v1479_v24 = vld [vmem:[#allocation8 + $0x1b18] sm:$0xff] }
 0x1fb   :  { %v3900_v55 = vpack.c.bf16 %v1436_v37, %v1428_v35  ;;  %v1487_v12 = vld [vmem:[#allocation8 + $0x1b58] sm:$0xff]  ;;  %v3910_v35 = vpack.c.bf16 %v1485_v21, %v1477_v20 }
 0x1fc   :  { %1897 = vmatmul.mubr.f32.vlgmr.msra.gmra.mrb[8].mxu0 %v5396_v53  ;;  %2205 = vmatmul.mubr.f32.vlgmr.msra.gmra.mrb[8].mxu1 %v5396_v53  ;;  %v4166_v37 = vpack.c.bf16 %v1487_v12, %v1479_v24  ;;  %v1519_v0 = vld [vmem:[#allocation8 + $0x1c58] sm:$0xff] }
 0x1fd   :  { %3889 = vmatpush1.bf16.msra.mxu0 %v3888_v57  ;;  %4145 = vmatpush1.bf16.msra.mxu1 %v4144_v4  ;;  %v4156_v57 = vpack.c.bf16 %v1438_v43, %v1430_v42  ;;  %v1444_v4 = vld [vmem:[#allocation8 + $0x1a00] sm:$0xff]  ;;  %v1493_v42 = vld [vmem:[#allocation8 + $0x1b88] sm:$0xff]  ;;  %v1527_v20 = vld [vmem:[#allocation8 + $0x1c98] sm:$0xff] }
 0x1fe   :  { %3891 = vmatprep.subr.bf16.mxu0 %v3890_v63  ;;  %4147 = vmatprep.subr.bf16.mxu1 %v4146_v2  ;;  %v4158_v63 = vpack.c.bf16 %v1455_v50, %v1447_v47  ;;  %v1446_v2 = vld [vmem:[#allocation8 + $0x1a10] sm:$0xff]  ;;  %v3904_v17 = vpack.c.bf16 %v1452_v31, %v1444_v4  ;;  %v1501_v43 = vld [vmem:[#allocation8 + $0x1bc8] sm:$0xff]  ;;  %v4170_v31 = vpack.c.bf16 %v1503_v46, %v1495_v45  ;;  %v1535_v21 = vld [vmem:[#allocation8 + $0x1cd8] sm:$0xff] }
 0x1ff   :  { %1902 = vmatprep.mubr.f32.mxu0 %v5399_v8  ;;  %2210 = vmatprep.mubr.f32.mxu1 %v5399_v8  ;;  %v4160_v51 = vpack.c.bf16 %v1454_v56, %v1446_v2  ;;  %v3914_v4 = vpack.c.bf16 %v1501_v43, %v1493_v42  ;;  %v1509_v2 = vld [vmem:[#allocation8 + $0x1c08] sm:$0xff]  ;;  %v1543_v42 = vld [vmem:[#allocation8 + $0x1d18] sm:$0xff] }
 0x200   :  { %1903 = vmatmul.mubr.f32.gmra.mrb[10].mxu0 %v5405_v6  ;;  %2211 = vmatmul.mubr.f32.gmra.mrb[10].mxu1 %v5405_v6  ;;  %v1517_v56 = vld [vmem:[#allocation8 + $0x1c48] sm:$0xff]  ;;  %v1551_v43 = vld [vmem:[#allocation8 + $0x1d58] sm:$0xff] }
 0x201   :  { %3893 = vmatpush1.bf16.msra.mxu0 %v3892_v9  ;;  %4149 = vmatpush1.bf16.msra.mxu1 %v4148_v10  ;;  %v1460_v9 = vld [vmem:[#allocation8 + $0x1a80] sm:$0xff] }
 0x202   :  { %3895 = vmatprep.subr.bf16.mxu0 %v3894_v14  ;;  %4151 = vmatprep.subr.bf16.mxu1 %v4150_v19  ;;  %v1468_v10 = vld [vmem:[#allocation8 + $0x1ac0] sm:$0xff]  ;;  %v1462_v14 = vld [vmem:[#allocation8 + $0x1a90] sm:$0xff] }
 0x203   :  { %1973 = vmatprep.mubr.f32.mxu0 %v5407_v38  ;;  %2281 = vmatprep.mubr.f32.mxu1 %v5407_v38  ;;  %v1470_v19 = vld [vmem:[#allocation8 + $0x1ad0] sm:$0xff]  ;;  %v3908_v25 = vpack.c.bf16 %v1468_v10, %v1460_v9  ;;  %v3918_v9 = vpack.c.bf16 %v1517_v56, %v1509_v2  ;;  %v4174_v10 = vpack.c.bf16 %v1519_v0, %v1511_v58  ;;  %v1559_v2 = vld [vmem:[#allocation8 + $0x1d98] sm:$0xff] }
 0x204   :  { %v4164_v27 = vpack.c.bf16 %v1470_v19, %v1462_v14  ;;  %v1525_v14 = vld [vmem:[#allocation8 + $0x1c88] sm:$0xff]  ;;  %v1567_v56 = vld [vmem:[#allocation8 + $0x1dd8] sm:$0xff] }
 0x205   :  { %3897 = vmatpush1.bf16.msra.mxu0 %v3896_v29  ;;  %4153 = vmatpush1.bf16.msra.mxu1 %v4152_v30  ;;  %v1476_v29 = vld [vmem:[#allocation8 + $0x1b00] sm:$0xff]  ;;  %v1533_v19 = vld [vmem:[#allocation8 + $0x1cc8] sm:$0xff] }
 0x206   :  { %3899 = vmatprep.subr.bf16.mxu0 %v3898_v39  ;;  %4155 = vmatprep.subr.bf16.mxu1 %v4154_v40  ;;  %v1484_v30 = vld [vmem:[#allocation8 + $0x1b40] sm:$0xff]  ;;  %v1478_v39 = vld [vmem:[#allocation8 + $0x1b10] sm:$0xff] }
 0x207   :  { %v1486_v40 = vld [vmem:[#allocation8 + $0x1b50] sm:$0xff]  ;;  %v3912_v47 = vpack.c.bf16 %v1484_v30, %v1476_v29  ;;  %v3922_v29 = vpack.c.bf16 %v1533_v19, %v1525_v14  ;;  %v4178_v30 = vpack.c.bf16 %v1535_v21, %v1527_v20  ;;  %v1575_v14 = vld [vmem:[#allocation8 + $0x1e18] sm:$0xff] }
 0x208   :  { %v4168_v50 = vpack.c.bf16 %v1486_v40, %v1478_v39  ;;  %v1541_v39 = vld [vmem:[#allocation8 + $0x1d08] sm:$0xff]  ;;  %v1583_v19 = vld [vmem:[#allocation8 + $0x1e58] sm:$0xff] }
 0x209   :  { %3901 = vmatpush1.bf16.msra.mxu0 %v3900_v55  ;;  %4157 = vmatpush1.bf16.msra.mxu1 %v4156_v57  ;;  %v1492_v55 = vld [vmem:[#allocation8 + $0x1b80] sm:$0xff]  ;;  %v1549_v40 = vld [vmem:[#allocation8 + $0x1d48] sm:$0xff] }
 0x20a   :  { %3903 = vmatprep.subr.bf16.mxu0 %v3902_v62  ;;  %4159 = vmatprep.subr.bf16.mxu1 %v4158_v63  ;;  %v1500_v57 = vld [vmem:[#allocation8 + $0x1bc0] sm:$0xff]  ;;  %v1494_v62 = vld [vmem:[#allocation8 + $0x1b90] sm:$0xff] }
 0x20b   :  { %v1502_v63 = vld [vmem:[#allocation8 + $0x1bd0] sm:$0xff]  ;;  %v3916_v1 = vpack.c.bf16 %v1500_v57, %v1492_v55  ;;  %v3926_v55 = vpack.c.bf16 %v1549_v40, %v1541_v39  ;;  %v4182_v57 = vpack.c.bf16 %v1551_v43, %v1543_v42  ;;  %v1591_v39 = vld [vmem:[#allocation8 + $0x1e98] sm:$0xff] }
 0x20c   :  { %v4172_v28 = vpack.c.bf16 %v1502_v63, %v1494_v62  ;;  %v1557_v62 = vld [vmem:[#allocation8 + $0x1d88] sm:$0xff]  ;;  %v1599_v40 = vld [vmem:[#allocation8 + $0x1ed8] sm:$0xff] }
 0x20d   :  { %3905 = vmatpush1.bf16.msra.mxu0 %v3904_v17  ;;  %4161 = vmatpush1.bf16.msra.mxu1 %v4160_v51  ;;  %v1508_v17 = vld [vmem:[#allocation8 + $0x1c00] sm:$0xff]  ;;  %v1565_v63 = vld [vmem:[#allocation8 + $0x1dc8] sm:$0xff] }
 0x20e   :  { %3907 = vmatprep.subr.bf16.mxu0 %v3906_v23  ;;  %4163 = vmatprep.subr.bf16.mxu1 %v4162_v13  ;;  %v1516_v51 = vld [vmem:[#allocation8 + $0x1c40] sm:$0xff]  ;;  %v1510_v23 = vld [vmem:[#allocation8 + $0x1c10] sm:$0xff] }
 0x20f   :  { %v1518_v13 = vld [vmem:[#allocation8 + $0x1c50] sm:$0xff]  ;;  %v3920_v24 = vpack.c.bf16 %v1516_v51, %v1508_v17  ;;  %v3930_v17 = vpack.c.bf16 %v1565_v63, %v1557_v62  ;;  %v4186_v51 = vpack.c.bf16 %v1567_v56, %v1559_v2  ;;  %v1607_v62 = vld [vmem:[#allocation8 + $0x1f18] sm:$0xff]  ;;  %v274_v2 = vsub.s32 6, %v5288_v15 }
 0x210   :  { %v4176_v12 = vpack.c.bf16 %v1518_v13, %v1510_v23  ;;  %v1573_v23 = vld [vmem:[#allocation8 + $0x1e08] sm:$0xff]  ;;  %v1615_v63 = vld [vmem:[#allocation8 + $0x1f58] sm:$0xff] }
 0x211   :  { %3909 = vmatpush1.bf16.msra.mxu0 %v3908_v25  ;;  %4165 = vmatpush1.bf16.msra.mxu1 %v4164_v27  ;;  %v1524_v25 = vld [vmem:[#allocation8 + $0x1c80] sm:$0xff]  ;;  %v1581_v13 = vld [vmem:[#allocation8 + $0x1e48] sm:$0xff] }
 0x212   :  { %3911 = vmatprep.subr.bf16.mxu0 %v3910_v35  ;;  %4167 = vmatprep.subr.bf16.mxu1 %v4166_v37  ;;  %v1532_v27 = vld [vmem:[#allocation8 + $0x1cc0] sm:$0xff]  ;;  %v1526_v35 = vld [vmem:[#allocation8 + $0x1c90] sm:$0xff] }
 0x213   :  { %v1534_v37 = vld [vmem:[#allocation8 + $0x1cd0] sm:$0xff]  ;;  %v3924_v45 = vpack.c.bf16 %v1532_v27, %v1524_v25  ;;  %v3934_v25 = vpack.c.bf16 %v1581_v13, %v1573_v23  ;;  %v4190_v27 = vpack.c.bf16 %v1583_v19, %v1575_v14  ;;  %v1629_v23 = vld [vmem:[#allocation8 + $0x1fc8] sm:$0xff]  ;;  %v1623_v13 = vld [vmem:[#allocation8 + $0x1f98] sm:$0xff]  ;;  %v275_v19 = vrot.slane %v5382_v5, %v274_v2 }
 0x214   :  { %v4180_v46 = vpack.c.bf16 %v1534_v37, %v1526_v35  ;;  %v1589_v35 = vld [vmem:[#allocation8 + $0x1e88] sm:$0xff]  ;;  %v1631_v14 = vld [vmem:[#allocation8 + $0x1fd8] sm:$0xff] }
 0x215   :  { %3913 = vmatpush1.bf16.msra.mxu0 %v3912_v47  ;;  %4169 = vmatpush1.bf16.msra.mxu1 %v4168_v50  ;;  %v1540_v47 = vld [vmem:[#allocation8 + $0x1d00] sm:$0xff]  ;;  %v1597_v37 = vld [vmem:[#allocation8 + $0x1ec8] sm:$0xff] }
 0x216   :  { %3915 = vmatprep.subr.bf16.mxu0 %v3914_v4  ;;  %4171 = vmatprep.subr.bf16.mxu1 %v4170_v31  ;;  %v1548_v50 = vld [vmem:[#allocation8 + $0x1d40] sm:$0xff]  ;;  %v1542_v4 = vld [vmem:[#allocation8 + $0x1d10] sm:$0xff] }
 0x217   :  { %v1550_v31 = vld [vmem:[#allocation8 + $0x1d50] sm:$0xff]  ;;  %v3928_v58 = vpack.c.bf16 %v1548_v50, %v1540_v47  ;;  %v3938_v47 = vpack.c.bf16 %v1597_v37, %v1589_v35  ;;  %v4194_v50 = vpack.c.bf16 %v1599_v40, %v1591_v39  ;;  %v617_v35 = vld [vmem:[#allocation8 + $0x28] sm:$0xff]  ;;  %v619_v39 = vld [vmem:[#allocation8 + $0x38] sm:$0xff] }
 0x218   :  { %v4184_v0 = vpack.c.bf16 %v1550_v31, %v1542_v4  ;;  %v1605_v4 = vld [vmem:[#allocation8 + $0x1f08] sm:$0xff]  ;;  %v627_v40 = vld [vmem:[#allocation8 + $0x78] sm:$0xff] }
 0x219   :  { %3917 = vmatpush1.bf16.msra.mxu0 %v3916_v1  ;;  %4173 = vmatpush1.bf16.msra.mxu1 %v4172_v28  ;;  %v1556_v1 = vld [vmem:[#allocation8 + $0x1d80] sm:$0xff]  ;;  %v1613_v31 = vld [vmem:[#allocation8 + $0x1f48] sm:$0xff] }
 0x21a   :  { %3919 = vmatprep.subr.bf16.mxu0 %v3918_v9  ;;  %4175 = vmatprep.subr.bf16.mxu1 %v4174_v10  ;;  %v1564_v28 = vld [vmem:[#allocation8 + $0x1dc0] sm:$0xff]  ;;  %v1558_v9 = vld [vmem:[#allocation8 + $0x1d90] sm:$0xff]  ;;  %v625_v37 = vld [vmem:[#allocation8 + $0x68] sm:$0xff] }
 0x21b   :  { %v1566_v10 = vld [vmem:[#allocation8 + $0x1dd0] sm:$0xff]  ;;  %v3932_v20 = vpack.c.bf16 %v1564_v28, %v1556_v1  ;;  %v1612_v1 = vld [vmem:[#allocation8 + $0x1f40] sm:$0xff]  ;;  %v3942_v28 = vpack.c.bf16 %v1613_v31, %v1605_v4  ;;  %v633_v31 = vld [vmem:[#allocation8 + $0xa8] sm:$0xff] }
 0x21c   :  { %v4188_v21 = vpack.c.bf16 %v1566_v10, %v1558_v9  ;;  %v1614_v9 = vld [vmem:[#allocation8 + $0x1f50] sm:$0xff]  ;;  %v1621_v10 = vld [vmem:[#allocation8 + $0x1f88] sm:$0xff] }
 0x21d   :  { %3921 = vmatpush1.bf16.msra.mxu0 %v3920_v24  ;;  %4177 = vmatpush1.bf16.msra.mxu1 %v4176_v12  ;;  %v1572_v24 = vld [vmem:[#allocation8 + $0x1e00] sm:$0xff]  ;;  %v626_v4 = vld [vmem:[#allocation8 + $0x70] sm:$0xff] }
 0x21e   :  { %3923 = vmatprep.subr.bf16.mxu0 %v3922_v29  ;;  %4179 = vmatprep.subr.bf16.mxu1 %v4178_v30  ;;  %v1580_v12 = vld [vmem:[#allocation8 + $0x1e40] sm:$0xff]  ;;  %v1574_v29 = vld [vmem:[#allocation8 + $0x1e10] sm:$0xff] }
 0x21f   :  { %v1582_v30 = vld [vmem:[#allocation8 + $0x1e50] sm:$0xff]  ;;  %v3936_v42 = vpack.c.bf16 %v1580_v12, %v1572_v24  ;;  %v1620_v24 = vld [vmem:[#allocation8 + $0x1f80] sm:$0xff] }
 0x220   :  { %v4192_v43 = vpack.c.bf16 %v1582_v30, %v1574_v29  ;;  %v1628_v12 = vld [vmem:[#allocation8 + $0x1fc0] sm:$0xff]  ;;  %v1622_v29 = vld [vmem:[#allocation8 + $0x1f90] sm:$0xff] }
 0x221   :  { %3925 = vmatpush1.bf16.msra.mxu0 %v3924_v45  ;;  %4181 = vmatpush1.bf16.msra.mxu1 %v4180_v46  ;;  %v1588_v45 = vld [vmem:[#allocation8 + $0x1e80] sm:$0xff]  ;;  %v1630_v30 = vld [vmem:[#allocation8 + $0x1fd0] sm:$0xff]  ;;  %v3948_v5 = vpack.c.bf16 %v1628_v12, %v1620_v24 }
 0x222   :  { %3927 = vmatprep.subr.bf16.mxu0 %v3926_v55  ;;  %4183 = vmatprep.subr.bf16.mxu1 %v4182_v57  ;;  %v1596_v46 = vld [vmem:[#allocation8 + $0x1ec0] sm:$0xff]  ;;  %v1590_v55 = vld [vmem:[#allocation8 + $0x1e90] sm:$0xff] }
 0x223   :  { %v1598_v57 = vld [vmem:[#allocation8 + $0x1ed0] sm:$0xff]  ;;  %v3940_v56 = vpack.c.bf16 %v1596_v46, %v1588_v45  ;;  %v616_v45 = vld [vmem:[#allocation8 + $0x20] sm:$0xff]  ;;  %v594_v46 = vadd.f32 %v5363_v3, %v5394_v33 }
 0x224   :  { %v632_v3 = vld [vmem:[#allocation8 + $0xa0] sm:$0xff] }
 0x225   :  { %3929 = vmatpush1.bf16.msra.mxu0 %v3928_v58  ;;  %4185 = vmatpush1.bf16.msra.mxu1 %v4184_v0  ;;  %v4196_v58 = vpack.c.bf16 %v1598_v57, %v1590_v55  ;;  %v1604_v0 = vld [vmem:[#allocation8 + $0x1f00] sm:$0xff]  ;;  %v618_v57 = vld [vmem:[#allocation8 + $0x30] sm:$0xff] }
 0x226   :  { %3931 = vmatprep.subr.bf16.mxu0 %v3930_v17  ;;  %4187 = vmatprep.subr.bf16.mxu1 %v4186_v51  ;;  %v4198_v17 = vpack.c.bf16 %v1615_v63, %v1607_v62  ;;  %v1606_v51 = vld [vmem:[#allocation8 + $0x1f10] sm:$0xff]  ;;  %v624_v55 = vld [vmem:[#allocation8 + $0x60] sm:$0xff]  ;;  %v592_v62 = vadd.f32 %v5351_v52, %v275_v19  ;;  %v641_v63 = vld [vmem:[#allocation8 + $0xe8] sm:$0xff] }
 0x227   :  { %v640_v33 = vld [vmem:[#allocation8 + $0xe0] sm:$0xff]  ;;  %v649_v52 = vld [vmem:[#allocation8 + $0x128] sm:$0xff] }
 0x228   :  { %v648_v24 = vld [vmem:[#allocation8 + $0x120] sm:$0xff] }
 0x229   :  { %3933 = vmatpush1.bf16.msra.mxu0 %v3932_v20  ;;  %4189 = vmatpush1.bf16.msra.mxu1 %v4188_v21  ;;  %v3944_v20 = vpack.c.bf16 %v1612_v1, %v1604_v0  ;;  %v4200_v21 = vpack.c.bf16 %v1614_v9, %v1606_v51  ;;  %v4464_v0 = vpack.c.bf16 %v626_v4, %v618_v57  ;;  %v634_v9 = vld [vmem:[#allocation8 + $0xb0] sm:$0xff]  ;;  %v656_v12 = vld [vmem:[#allocation8 + $0x160] sm:$0xff]  ;;  %v681_v57 = vld [vmem:[#allocation8 + $0x228] sm:$0xff] }
 0x22a   :  { %3935 = vmatprep.subr.bf16.mxu0 %v3934_v25  ;;  %4191 = vmatprep.subr.bf16.mxu1 %v4190_v27  ;;  %v3946_v25 = vpack.c.bf16 %v1629_v23, %v1621_v10  ;;  %v4202_v27 = vpack.c.bf16 %v1631_v14, %v1623_v13  ;;  %v642_v10 = vld [vmem:[#allocation8 + $0xf0] sm:$0xff]  ;;  %v5427_v23 = vmax.f32 %v592_v62, 0.0  ;;  %v657_v13 = vld [vmem:[#allocation8 + $0x168] sm:$0xff]  ;;  %v651_v14 = vld [vmem:[#allocation8 + $0x138] sm:$0xff] }
 0x22b   :  { %v689_v4 = vld [vmem:[#allocation8 + $0x268] sm:$0xff]  ;;  %v691_v62 = vld [vmem:[#allocation8 + $0x278] sm:$0xff] }
 0x22d   :  { %3937 = vmatpush1.bf16.msra.mxu0 %v3936_v42  ;;  %4193 = vmatpush1.bf16.msra.mxu1 %v4192_v43  ;;  %v586_v42 = vadd.f32 %v5341_v7, %v275_v19  ;;  %v4204_v43 = vpack.c.bf16 %v1630_v30, %v1622_v29  ;;  %v635_v7 = vld [vmem:[#allocation8 + $0xb8] sm:$0xff]  ;;  %v658_v30 = vld [vmem:[#allocation8 + $0x170] sm:$0xff] }
 0x22e   :  { %3939 = vmatprep.subr.bf16.mxu0 %v3938_v47  ;;  %4195 = vmatprep.subr.bf16.mxu1 %v4194_v50  ;;  %v4206_v47 = vpack.c.bf16 %v625_v37, %v617_v35  ;;  %v4462_v50 = vpack.c.bf16 %v627_v40, %v619_v39  ;;  %v659_v19 = vld [vmem:[#allocation8 + $0x178] sm:$0xff]  ;;  %v665_v35 = vld [vmem:[#allocation8 + $0x1a8] sm:$0xff] }
 0x22f   :  { %v5423_v1 = vmax.f32 %v586_v42, 0.0  ;;  %v4470_v29 = vpack.c.bf16 %v659_v19, %v651_v14  ;;  %v673_v37 = vld [vmem:[#allocation8 + $0x1e8] sm:$0xff]  ;;  %v667_v39 = vld [vmem:[#allocation8 + $0x1b8] sm:$0xff]  ;;  %v4216_v42 = vpack.c.bf16 %v656_v12, %v648_v24  ;;  %v696_v19 = vld [vmem:[#allocation8 + $0x2a0] sm:$0xff] }
 0x230   :  { %v675_v40 = vld [vmem:[#allocation8 + $0x1f8] sm:$0xff]  ;;  %v706_v12 = vld [vmem:[#allocation8 + $0x2f0] sm:$0xff] }
 0x231   :  { %3941 = vmatpush1.bf16.msra.mxu0 %v3940_v56  ;;  %4197 = vmatpush1.bf16.msra.mxu1 %v4196_v58  ;;  %v643_v56 = vld [vmem:[#allocation8 + $0xf8] sm:$0xff]  ;;  %v4208_v58 = vpack.c.bf16 %v624_v55, %v616_v45  ;;  %v664_v45 = vld [vmem:[#allocation8 + $0x1a0] sm:$0xff]  ;;  %v674_v55 = vld [vmem:[#allocation8 + $0x1f0] sm:$0xff] }
 0x232   :  { %3943 = vmatprep.subr.bf16.mxu0 %v3942_v28  ;;  %4199 = vmatprep.subr.bf16.mxu1 %v4198_v17  ;;  %v5425_v28 = vmax.f32 %v594_v46, 0.0  ;;  %v4210_v17 = vpack.c.bf16 %v641_v63, %v633_v31  ;;  %v4466_v51 = vpack.c.bf16 %v643_v56, %v635_v7  ;;  %v672_v46 = vld [vmem:[#allocation8 + $0x1e0] sm:$0xff]  ;;  %v683_v31 = vld [vmem:[#allocation8 + $0x238] sm:$0xff]  ;;  %v4222_v56 = vpack.c.bf16 %v689_v4, %v681_v57 }
 0x233   :  { %v4220_v63 = vpack.c.bf16 %v672_v46, %v664_v45  ;;  %v722_v45 = vld [vmem:[#allocation8 + $0x370] sm:$0xff]  ;;  %v729_v46 = vld [vmem:[#allocation8 + $0x3a8] sm:$0xff] }
 0x235   :  { %3945 = vmatpush1.bf16.msra.mxu0 %v3944_v20  ;;  %4201 = vmatpush1.bf16.msra.mxu1 %v4200_v21  ;;  %v4212_v20 = vpack.c.bf16 %v640_v33, %v632_v3  ;;  %v4468_v21 = vpack.c.bf16 %v642_v10, %v634_v9  ;;  %v4478_v3 = vpack.c.bf16 %v691_v62, %v683_v31  ;;  %v690_v33 = vld [vmem:[#allocation8 + $0x270] sm:$0xff]  ;;  %v699_v9 = vld [vmem:[#allocation8 + $0x2b8] sm:$0xff]  ;;  %v728_v62 = vld [vmem:[#allocation8 + $0x3a0] sm:$0xff] }
 0x236   :  { %3947 = vmatprep.subr.bf16.mxu0 %v3946_v25  ;;  %4203 = vmatprep.subr.bf16.mxu1 %v4202_v27  ;;  %v650_v25 = vld [vmem:[#allocation8 + $0x130] sm:$0xff]  ;;  %v4214_v27 = vpack.c.bf16 %v657_v13, %v649_v52  ;;  %v707_v10 = vld [vmem:[#allocation8 + $0x2f8] sm:$0xff] }
 0x237   :  { %v4482_v24 = vpack.c.bf16 %v707_v10, %v699_v9  ;;  %v744_v10 = vld [vmem:[#allocation8 + $0x420] sm:$0xff] }
 0x239   :  { %3949 = vmatpush1.bf16.msra.mxu0 %v3948_v5  ;;  %4205 = vmatpush1.bf16.msra.mxu1 %v4204_v43  ;;  %v4472_v5 = vpack.c.bf16 %v658_v30, %v650_v25  ;;  %v4218_v43 = vpack.c.bf16 %v673_v37, %v665_v35  ;;  %v713_v25 = vld [vmem:[#allocation8 + $0x328] sm:$0xff]  ;;  %v723_v30 = vld [vmem:[#allocation8 + $0x378] sm:$0xff] }
 0x23a   :  { %4207 = vmatprep.subr.bf16.mxu0 %v4206_v47  ;;  %4463 = vmatprep.subr.bf16.mxu1 %v4462_v50  ;;  %v666_v47 = vld [vmem:[#allocation8 + $0x1b0] sm:$0xff]  ;;  %v4474_v50 = vpack.c.bf16 %v675_v40, %v667_v39  ;;  %v712_v40 = vld [vmem:[#allocation8 + $0x320] sm:$0xff] }
 0x23b   :  { %v4476_v7 = vpack.c.bf16 %v674_v55, %v666_v47  ;;  %v737_v47 = vld [vmem:[#allocation8 + $0x3e8] sm:$0xff]  ;;  %v739_v55 = vld [vmem:[#allocation8 + $0x3f8] sm:$0xff] }
 0x23c   :  { %1974 = vmatmul.mubr.f32.vlgmr.msra.gmra.mrb[8].mxu0 %v5423_v1  ;;  %2282 = vmatmul.mubr.f32.vlgmr.msra.gmra.mrb[8].mxu1 %v5423_v1  ;;  %v4234_v31 = vpack.c.bf16 %v737_v47, %v729_v46 }
 0x23d   :  { %4209 = vmatpush1.bf16.msra.mxu0 %v4208_v58  ;;  %4465 = vmatpush1.bf16.msra.mxu1 %v4464_v0  ;;  %v688_v58 = vld [vmem:[#allocation8 + $0x260] sm:$0xff]  ;;  %v682_v0 = vld [vmem:[#allocation8 + $0x230] sm:$0xff] }
 0x23e   :  { %1979 = vmatprep.mubr.f32.mxu0 %v5425_v28  ;;  %2287 = vmatprep.mubr.f32.mxu1 %v5425_v28  ;;  %v4480_v13 = vpack.c.bf16 %v690_v33, %v682_v0  ;;  %v753_v0 = vld [vmem:[#allocation8 + $0x468] sm:$0xff]  ;;  %v755_v33 = vld [vmem:[#allocation8 + $0x478] sm:$0xff] }
 0x23f   :  { %4211 = vmatprep.subr.bf16.mxu0 %v4210_v17  ;;  %4467 = vmatprep.subr.bf16.mxu1 %v4466_v51  ;;  %v697_v17 = vld [vmem:[#allocation8 + $0x2a8] sm:$0xff] }
 0x240   :  { %1980 = vmatmul.mubr.f32.gmra.mrb[10].mxu0 %v5427_v23  ;;  %2288 = vmatmul.mubr.f32.gmra.mrb[10].mxu1 %v5427_v23  ;;  %v705_v51 = vld [vmem:[#allocation8 + $0x2e8] sm:$0xff] }
 0x241   :  { %4213 = vmatpush1.bf16.msra.mxu0 %v4212_v20  ;;  %2358 = vmatprep.mubr.f32.mxu0 %v5300_v34  ;;  %v4226_v14 = vpack.c.bf16 %v705_v51, %v697_v17  ;;  %v704_v20 = vld [vmem:[#allocation8 + $0x2e0] sm:$0xff] }
 0x242   :  { %4469 = vmatpush1.bf16.msra.mxu1 %v4468_v21  ;;  %2666 = vmatprep.mubr.f32.mxu1 %v5300_v34  ;;  %v680_v34 = vld [vmem:[#allocation8 + $0x220] sm:$0xff]  ;;  %v698_v21 = vld [vmem:[#allocation8 + $0x2b0] sm:$0xff]  ;;  %v4228_v35 = vpack.c.bf16 %v704_v20, %v696_v19  ;;  %v761_v20 = vld [vmem:[#allocation8 + $0x4a8] sm:$0xff] }
 0x243   :  { %4215 = vmatprep.subr.bf16.mxu0 %v4214_v27  ;;  %4471 = vmatprep.subr.bf16.mxu1 %v4470_v29  ;;  %v4224_v52 = vpack.c.bf16 %v688_v58, %v680_v34  ;;  %v721_v27 = vld [vmem:[#allocation8 + $0x368] sm:$0xff]  ;;  %v715_v29 = vld [vmem:[#allocation8 + $0x338] sm:$0xff]  ;;  %v4484_v37 = vpack.c.bf16 %v706_v12, %v698_v21  ;;  %v738_v34 = vld [vmem:[#allocation8 + $0x3f0] sm:$0xff] }
 0x244   :  { %v4230_v39 = vpack.c.bf16 %v721_v27, %v713_v25  ;;  %v745_v58 = vld [vmem:[#allocation8 + $0x428] sm:$0xff]  ;;  %v754_v19 = vld [vmem:[#allocation8 + $0x470] sm:$0xff]  ;;  %v771_v12 = vld [vmem:[#allocation8 + $0x4f8] sm:$0xff] }
 0x245   :  { %4217 = vmatpush1.bf16.msra.mxu0 %v4216_v42  ;;  %v720_v42 = vld [vmem:[#allocation8 + $0x360] sm:$0xff]  ;;  %v4238_v9 = vpack.c.bf16 %v753_v0, %v745_v58  ;;  %v769_v21 = vld [vmem:[#allocation8 + $0x4e8] sm:$0xff] }
 0x246   :  { %4473 = vmatpush1.bf16.msra.mxu1 %v4472_v5  ;;  %4219 = vmatprep.subr.bf16.mxu0 %v4218_v43  ;;  %v714_v5 = vld [vmem:[#allocation8 + $0x330] sm:$0xff]  ;;  %v4486_v43 = vpack.c.bf16 %v723_v30, %v715_v29  ;;  %v4232_v57 = vpack.c.bf16 %v720_v42, %v712_v40  ;;  %v4242_v29 = vpack.c.bf16 %v769_v21, %v761_v20  ;;  %v760_v30 = vld [vmem:[#allocation8 + $0x4a0] sm:$0xff]  ;;  %v777_v42 = vld [vmem:[#allocation8 + $0x528] sm:$0xff] }
 0x247   :  { %4475 = vmatprep.subr.bf16.mxu1 %v4474_v50  ;;  %v731_v50 = vld [vmem:[#allocation8 + $0x3b8] sm:$0xff]  ;;  %v4488_v4 = vpack.c.bf16 %v722_v45, %v714_v5  ;;  %v770_v40 = vld [vmem:[#allocation8 + $0x4f0] sm:$0xff]  ;;  %v785_v5 = vld [vmem:[#allocation8 + $0x568] sm:$0xff] }
 0x248   :  { %v787_v45 = vld [vmem:[#allocation8 + $0x578] sm:$0xff] }
 0x249   :  { %4221 = vmatpush1.bf16.msra.mxu0 %v4220_v63  ;;  %v736_v63 = vld [vmem:[#allocation8 + $0x3e0] sm:$0xff] }
 0x24a   :  { %4477 = vmatpush1.bf16.msra.mxu1 %v4476_v7  ;;  %4223 = vmatprep.subr.bf16.mxu0 %v4222_v56  ;;  %v730_v7 = vld [vmem:[#allocation8 + $0x3b0] sm:$0xff]  ;;  %v4490_v56 = vpack.c.bf16 %v739_v55, %v731_v50  ;;  %v4236_v17 = vpack.c.bf16 %v736_v63, %v728_v62  ;;  %v4246_v50 = vpack.c.bf16 %v785_v5, %v777_v42  ;;  %v776_v55 = vld [vmem:[#allocation8 + $0x520] sm:$0xff]  ;;  %v793_v63 = vld [vmem:[#allocation8 + $0x5a8] sm:$0xff] }
 0x24b   :  { %4479 = vmatprep.subr.bf16.mxu1 %v4478_v3  ;;  %v747_v3 = vld [vmem:[#allocation8 + $0x438] sm:$0xff]  ;;  %v4492_v51 = vpack.c.bf16 %v738_v34, %v730_v7  ;;  %v786_v62 = vld [vmem:[#allocation8 + $0x570] sm:$0xff]  ;;  %v801_v7 = vld [vmem:[#allocation8 + $0x5e8] sm:$0xff] }
 0x24c   :  { %v803_v34 = vld [vmem:[#allocation8 + $0x5f8] sm:$0xff] }
 0x24d   :  { %4225 = vmatpush1.bf16.msra.mxu0 %v4224_v52  ;;  %v752_v52 = vld [vmem:[#allocation8 + $0x460] sm:$0xff] }
 0x24e   :  { %4481 = vmatpush1.bf16.msra.mxu1 %v4480_v13  ;;  %4227 = vmatprep.subr.bf16.mxu0 %v4226_v14  ;;  %v746_v13 = vld [vmem:[#allocation8 + $0x430] sm:$0xff]  ;;  %v4494_v14 = vpack.c.bf16 %v755_v33, %v747_v3  ;;  %v4240_v25 = vpack.c.bf16 %v752_v52, %v744_v10  ;;  %v4250_v3 = vpack.c.bf16 %v801_v7, %v793_v63  ;;  %v792_v33 = vld [vmem:[#allocation8 + $0x5a0] sm:$0xff]  ;;  %v809_v52 = vld [vmem:[#allocation8 + $0x628] sm:$0xff] }
 0x24f   :  { %4483 = vmatprep.subr.bf16.mxu1 %v4482_v24  ;;  %v763_v24 = vld [vmem:[#allocation8 + $0x4b8] sm:$0xff]  ;;  %v4496_v27 = vpack.c.bf16 %v754_v19, %v746_v13  ;;  %v802_v10 = vld [vmem:[#allocation8 + $0x5f0] sm:$0xff]  ;;  %v817_v13 = vld [vmem:[#allocation8 + $0x668] sm:$0xff] }
 0x250   :  { %v819_v19 = vld [vmem:[#allocation8 + $0x678] sm:$0xff] }
 0x251   :  { %4229 = vmatpush1.bf16.msra.mxu0 %v4228_v35  ;;  %v768_v35 = vld [vmem:[#allocation8 + $0x4e0] sm:$0xff] }
 0x252   :  { %4485 = vmatpush1.bf16.msra.mxu1 %v4484_v37  ;;  %4231 = vmatprep.subr.bf16.mxu0 %v4230_v39  ;;  %v762_v37 = vld [vmem:[#allocation8 + $0x4b0] sm:$0xff]  ;;  %v4498_v39 = vpack.c.bf16 %v771_v12, %v763_v24  ;;  %v4244_v46 = vpack.c.bf16 %v768_v35, %v760_v30  ;;  %v4254_v24 = vpack.c.bf16 %v817_v13, %v809_v52  ;;  %v808_v12 = vld [vmem:[#allocation8 + $0x620] sm:$0xff]  ;;  %v825_v35 = vld [vmem:[#allocation8 + $0x6a8] sm:$0xff] }
 0x253   :  { %4487 = vmatprep.subr.bf16.mxu1 %v4486_v43  ;;  %v779_v43 = vld [vmem:[#allocation8 + $0x538] sm:$0xff]  ;;  %v4500_v47 = vpack.c.bf16 %v770_v40, %v762_v37  ;;  %v818_v30 = vld [vmem:[#allocation8 + $0x670] sm:$0xff]  ;;  %v833_v37 = vld [vmem:[#allocation8 + $0x6e8] sm:$0xff] }
 0x254   :  { %v835_v40 = vld [vmem:[#allocation8 + $0x6f8] sm:$0xff] }
 0x255   :  { %4233 = vmatpush1.bf16.msra.mxu0 %v4232_v57  ;;  %v784_v57 = vld [vmem:[#allocation8 + $0x560] sm:$0xff] }
 0x256   :  { %4489 = vmatpush1.bf16.msra.mxu1 %v4488_v4  ;;  %4235 = vmatprep.subr.bf16.mxu0 %v4234_v31  ;;  %v778_v4 = vld [vmem:[#allocation8 + $0x530] sm:$0xff]  ;;  %v4502_v31 = vpack.c.bf16 %v787_v45, %v779_v43  ;;  %v4248_v58 = vpack.c.bf16 %v784_v57, %v776_v55  ;;  %v4258_v43 = vpack.c.bf16 %v833_v37, %v825_v35  ;;  %v824_v45 = vld [vmem:[#allocation8 + $0x6a0] sm:$0xff]  ;;  %v841_v57 = vld [vmem:[#allocation8 + $0x728] sm:$0xff] }
 0x257   :  { %4491 = vmatprep.subr.bf16.mxu1 %v4490_v56  ;;  %v795_v56 = vld [vmem:[#allocation8 + $0x5b8] sm:$0xff]  ;;  %v4504_v0 = vpack.c.bf16 %v786_v62, %v778_v4  ;;  %v834_v55 = vld [vmem:[#allocation8 + $0x6f0] sm:$0xff]  ;;  %v849_v4 = vld [vmem:[#allocation8 + $0x768] sm:$0xff] }
 0x258   :  { %v851_v62 = vld [vmem:[#allocation8 + $0x778] sm:$0xff] }
 0x259   :  { %4237 = vmatpush1.bf16.msra.mxu0 %v4236_v17  ;;  %v800_v17 = vld [vmem:[#allocation8 + $0x5e0] sm:$0xff] }
 0x25a   :  { %4493 = vmatpush1.bf16.msra.mxu1 %v4492_v51  ;;  %4239 = vmatprep.subr.bf16.mxu0 %v4238_v9  ;;  %v794_v51 = vld [vmem:[#allocation8 + $0x5b0] sm:$0xff]  ;;  %v4506_v9 = vpack.c.bf16 %v803_v34, %v795_v56  ;;  %v4252_v20 = vpack.c.bf16 %v800_v17, %v792_v33  ;;  %v4262_v56 = vpack.c.bf16 %v849_v4, %v841_v57  ;;  %v840_v34 = vld [vmem:[#allocation8 + $0x720] sm:$0xff]  ;;  %v857_v17 = vld [vmem:[#allocation8 + $0x7a8] sm:$0xff] }
 0x25b   :  { %4495 = vmatprep.subr.bf16.mxu1 %v4494_v14  ;;  %v811_v14 = vld [vmem:[#allocation8 + $0x638] sm:$0xff]  ;;  %v4508_v21 = vpack.c.bf16 %v802_v10, %v794_v51  ;;  %v850_v33 = vld [vmem:[#allocation8 + $0x770] sm:$0xff]  ;;  %v865_v51 = vld [vmem:[#allocation8 + $0x7e8] sm:$0xff] }
 0x25c   :  { %v867_v10 = vld [vmem:[#allocation8 + $0x7f8] sm:$0xff] }
 0x25d   :  { %4241 = vmatpush1.bf16.msra.mxu0 %v4240_v25  ;;  %v816_v25 = vld [vmem:[#allocation8 + $0x660] sm:$0xff] }
 0x25e   :  { %4497 = vmatpush1.bf16.msra.mxu1 %v4496_v27  ;;  %4243 = vmatprep.subr.bf16.mxu0 %v4242_v29  ;;  %v810_v27 = vld [vmem:[#allocation8 + $0x630] sm:$0xff]  ;;  %v4510_v29 = vpack.c.bf16 %v819_v19, %v811_v14  ;;  %v4256_v42 = vpack.c.bf16 %v816_v25, %v808_v12  ;;  %v4266_v14 = vpack.c.bf16 %v865_v51, %v857_v17  ;;  %v856_v19 = vld [vmem:[#allocation8 + $0x7a0] sm:$0xff]  ;;  %v873_v25 = vld [vmem:[#allocation8 + $0x828] sm:$0xff] }
 0x25f   :  { %4499 = vmatprep.subr.bf16.mxu1 %v4498_v39  ;;  %v827_v39 = vld [vmem:[#allocation8 + $0x6b8] sm:$0xff]  ;;  %v4512_v5 = vpack.c.bf16 %v818_v30, %v810_v27  ;;  %v866_v12 = vld [vmem:[#allocation8 + $0x7f0] sm:$0xff]  ;;  %v881_v27 = vld [vmem:[#allocation8 + $0x868] sm:$0xff] }
 0x260   :  { %v883_v30 = vld [vmem:[#allocation8 + $0x878] sm:$0xff] }
 0x261   :  { %4245 = vmatpush1.bf16.msra.mxu0 %v4244_v46  ;;  %v832_v46 = vld [vmem:[#allocation8 + $0x6e0] sm:$0xff] }
 0x262   :  { %4501 = vmatpush1.bf16.msra.mxu1 %v4500_v47  ;;  %4247 = vmatprep.subr.bf16.mxu0 %v4246_v50  ;;  %v826_v47 = vld [vmem:[#allocation8 + $0x6b0] sm:$0xff]  ;;  %v4514_v50 = vpack.c.bf16 %v835_v40, %v827_v39  ;;  %v4260_v63 = vpack.c.bf16 %v832_v46, %v824_v45  ;;  %v4270_v39 = vpack.c.bf16 %v881_v27, %v873_v25  ;;  %v889_v46 = vld [vmem:[#allocation8 + $0x8a8] sm:$0xff]  ;;  %v920_v27 = vld [vmem:[#allocation8 + $0x9a0] sm:$0xff] }
 0x263   :  { %4503 = vmatprep.subr.bf16.mxu1 %v4502_v31  ;;  %v843_v31 = vld [vmem:[#allocation8 + $0x738] sm:$0xff]  ;;  %v4516_v7 = vpack.c.bf16 %v834_v55, %v826_v47  ;;  %v882_v45 = vld [vmem:[#allocation8 + $0x870] sm:$0xff]  ;;  %v897_v47 = vld [vmem:[#allocation8 + $0x8e8] sm:$0xff] }
 0x264   :  { %v899_v55 = vld [vmem:[#allocation8 + $0x8f8] sm:$0xff] }
 0x265   :  { %4249 = vmatpush1.bf16.msra.mxu0 %v4248_v58  ;;  %v848_v58 = vld [vmem:[#allocation8 + $0x760] sm:$0xff] }
 0x266   :  { %4505 = vmatpush1.bf16.msra.mxu1 %v4504_v0  ;;  %4251 = vmatprep.subr.bf16.mxu0 %v4250_v3  ;;  %v842_v0 = vld [vmem:[#allocation8 + $0x730] sm:$0xff]  ;;  %v4518_v3 = vpack.c.bf16 %v851_v62, %v843_v31  ;;  %v4264_v52 = vpack.c.bf16 %v848_v58, %v840_v34  ;;  %v4274_v31 = vpack.c.bf16 %v897_v47, %v889_v46  ;;  %v888_v62 = vld [vmem:[#allocation8 + $0x8a0] sm:$0xff]  ;;  %v905_v58 = vld [vmem:[#allocation8 + $0x928] sm:$0xff] }
 0x267   :  { %4507 = vmatprep.subr.bf16.mxu1 %v4506_v9  ;;  %v859_v9 = vld [vmem:[#allocation8 + $0x7b8] sm:$0xff]  ;;  %v4520_v13 = vpack.c.bf16 %v850_v33, %v842_v0  ;;  %v898_v34 = vld [vmem:[#allocation8 + $0x8f0] sm:$0xff]  ;;  %v913_v0 = vld [vmem:[#allocation8 + $0x968] sm:$0xff] }
 0x268   :  { %v915_v33 = vld [vmem:[#allocation8 + $0x978] sm:$0xff]  ;;  %v944_v46 = vld [vmem:[#allocation8 + $0xa60] sm:$0xff]  ;;  %v938_v47 = vld [vmem:[#allocation8 + $0xa30] sm:$0xff] }
 0x269   :  { %4253 = vmatpush1.bf16.msra.mxu0 %v4252_v20  ;;  %v864_v20 = vld [vmem:[#allocation8 + $0x7e0] sm:$0xff] }
 0x26a   :  { %4509 = vmatpush1.bf16.msra.mxu1 %v4508_v21  ;;  %4255 = vmatprep.subr.bf16.mxu0 %v4254_v24  ;;  %v858_v21 = vld [vmem:[#allocation8 + $0x7b0] sm:$0xff]  ;;  %v4522_v24 = vpack.c.bf16 %v867_v10, %v859_v9  ;;  %v4268_v35 = vpack.c.bf16 %v864_v20, %v856_v19  ;;  %v4278_v9 = vpack.c.bf16 %v913_v0, %v905_v58  ;;  %v904_v10 = vld [vmem:[#allocation8 + $0x920] sm:$0xff]  ;;  %v921_v19 = vld [vmem:[#allocation8 + $0x9a8] sm:$0xff] }
 0x26b   :  { %4511 = vmatprep.subr.bf16.mxu1 %v4510_v29  ;;  %v875_v29 = vld [vmem:[#allocation8 + $0x838] sm:$0xff]  ;;  %v4524_v37 = vpack.c.bf16 %v866_v12, %v858_v21  ;;  %v929_v20 = vld [vmem:[#allocation8 + $0x9e8] sm:$0xff]  ;;  %v960_v58 = vld [vmem:[#allocation8 + $0xae0] sm:$0xff] }
 0x26c   :  { %v4526_v40 = vpack.c.bf16 %v883_v30, %v875_v29  ;;  %v931_v21 = vld [vmem:[#allocation8 + $0x9f8] sm:$0xff]  ;;  %v4282_v25 = vpack.c.bf16 %v929_v20, %v921_v19  ;;  %v928_v29 = vld [vmem:[#allocation8 + $0x9e0] sm:$0xff]  ;;  %v922_v30 = vld [vmem:[#allocation8 + $0x9b0] sm:$0xff] }
 0x26d   :  { %4257 = vmatpush1.bf16.msra.mxu0 %v4256_v42  ;;  %v872_v42 = vld [vmem:[#allocation8 + $0x820] sm:$0xff]  ;;  %v954_v0 = vld [vmem:[#allocation8 + $0xab0] sm:$0xff] }
 0x26e   :  { %4513 = vmatpush1.bf16.msra.mxu1 %v4512_v5  ;;  %4259 = vmatprep.subr.bf16.mxu0 %v4258_v43  ;;  %v880_v5 = vld [vmem:[#allocation8 + $0x860] sm:$0xff]  ;;  %v874_v43 = vld [vmem:[#allocation8 + $0x830] sm:$0xff] }
 0x26f   :  { %4515 = vmatprep.subr.bf16.mxu1 %v4514_v50  ;;  %v891_v50 = vld [vmem:[#allocation8 + $0x8b8] sm:$0xff]  ;;  %v4272_v57 = vpack.c.bf16 %v880_v5, %v872_v42  ;;  %v4528_v4 = vpack.c.bf16 %v882_v45, %v874_v43  ;;  %v4284_v5 = vpack.c.bf16 %v928_v29, %v920_v27  ;;  %v936_v45 = vld [vmem:[#allocation8 + $0xa20] sm:$0xff]  ;;  %v970_v20 = vld [vmem:[#allocation8 + $0xb30] sm:$0xff] }
 0x270   :  { %v947_v42 = vld [vmem:[#allocation8 + $0xa78] sm:$0xff]  ;;  %v976_v19 = vld [vmem:[#allocation8 + $0xb60] sm:$0xff] }
 0x271   :  { %4261 = vmatpush1.bf16.msra.mxu0 %v4260_v63  ;;  %v896_v63 = vld [vmem:[#allocation8 + $0x8e0] sm:$0xff]  ;;  %v995_v27 = vld [vmem:[#allocation8 + $0xbf8] sm:$0xff] }
 0x272   :  { %4517 = vmatpush1.bf16.msra.mxu1 %v4516_v7  ;;  %4263 = vmatprep.subr.bf16.mxu0 %v4262_v56  ;;  %v890_v7 = vld [vmem:[#allocation8 + $0x8b0] sm:$0xff]  ;;  %v4530_v56 = vpack.c.bf16 %v899_v55, %v891_v50  ;;  %v4276_v17 = vpack.c.bf16 %v896_v63, %v888_v62  ;;  %v963_v62 = vld [vmem:[#allocation8 + $0xaf8] sm:$0xff]  ;;  %v4288_v63 = vpack.c.bf16 %v944_v46, %v936_v45 }
 0x273   :  { %4519 = vmatprep.subr.bf16.mxu1 %v4518_v3  ;;  %v907_v3 = vld [vmem:[#allocation8 + $0x938] sm:$0xff]  ;;  %v4532_v51 = vpack.c.bf16 %v898_v34, %v890_v7  ;;  %v946_v55 = vld [vmem:[#allocation8 + $0xa70] sm:$0xff]  ;;  %v952_v34 = vld [vmem:[#allocation8 + $0xaa0] sm:$0xff] }
 0x274   :  { %v4544_v7 = vpack.c.bf16 %v946_v55, %v938_v47  ;;  %v1011_v45 = vld [vmem:[#allocation8 + $0xc78] sm:$0xff]  ;;  %v1000_v55 = vld [vmem:[#allocation8 + $0xc20] sm:$0xff] }
 0x275   :  { %4265 = vmatpush1.bf16.msra.mxu0 %v4264_v52  ;;  %v912_v52 = vld [vmem:[#allocation8 + $0x960] sm:$0xff] }
 0x276   :  { %4521 = vmatpush1.bf16.msra.mxu1 %v4520_v13  ;;  %4267 = vmatprep.subr.bf16.mxu0 %v4266_v14  ;;  %v906_v13 = vld [vmem:[#allocation8 + $0x930] sm:$0xff]  ;;  %v4534_v14 = vpack.c.bf16 %v915_v33, %v907_v3 }
 0x277   :  { %4523 = vmatprep.subr.bf16.mxu1 %v4522_v24  ;;  %v4280_v24 = vpack.c.bf16 %v912_v52, %v904_v10  ;;  %v962_v33 = vld [vmem:[#allocation8 + $0xaf0] sm:$0xff]  ;;  %v979_v10 = vld [vmem:[#allocation8 + $0xb78] sm:$0xff]  ;;  %v4292_v52 = vpack.c.bf16 %v960_v58, %v952_v34 }
 0x278   :  { %v1027_v34 = vld [vmem:[#allocation8 + $0xcf8] sm:$0xff] }
 0x279   :  { %4269 = vmatpush1.bf16.msra.mxu0 %v4268_v35 }
 0x27a   :  { %4525 = vmatpush1.bf16.msra.mxu1 %v4524_v37  ;;  %4271 = vmatprep.subr.bf16.mxu0 %v4270_v39  ;;  %v930_v37 = vld [vmem:[#allocation8 + $0x9f0] sm:$0xff]  ;;  %v937_v39 = vld [vmem:[#allocation8 + $0xa28] sm:$0xff] }
 0x27b   :  { %4527 = vmatprep.subr.bf16.mxu1 %v4526_v40  ;;  %v939_v40 = vld [vmem:[#allocation8 + $0xa38] sm:$0xff] }
 0x27c   :  { %2359 = vmatmul.mubr.f32.vlgmr.msra.gmra.mrb[12].mxu0 %v5302_v41  ;;  %v4542_v50 = vpack.c.bf16 %v947_v42, %v939_v40  ;;  %v994_v42 = vld [vmem:[#allocation8 + $0xbf0] sm:$0xff] }
 0x27d   :  { %2667 = vmatmul.mubr.f32.vlgmr.msra.gmra.mrb[12].mxu1 %v5302_v41  ;;  %2364 = vmatprep.mubr.f32.mxu0 %v5311_v59  ;;  %v914_v41 = vld [vmem:[#allocation8 + $0x970] sm:$0xff] }
 0x27e   :  { %4273 = vmatpush1.bf16.msra.mxu0 %v4272_v57  ;;  %2672 = vmatprep.mubr.f32.mxu1 %v5311_v59  ;;  %v923_v59 = vld [vmem:[#allocation8 + $0x9b8] sm:$0xff]  ;;  %v4536_v12 = vpack.c.bf16 %v914_v41, %v906_v13  ;;  %v953_v57 = vld [vmem:[#allocation8 + $0xaa8] sm:$0xff]  ;;  %v4548_v13 = vpack.c.bf16 %v962_v33, %v954_v0  ;;  %v968_v41 = vld [vmem:[#allocation8 + $0xb20] sm:$0xff] }
 0x27f   :  { %4529 = vmatpush1.bf16.msra.mxu1 %v4528_v4  ;;  %4275 = vmatprep.subr.bf16.mxu0 %v4274_v31  ;;  %v4538_v35 = vpack.c.bf16 %v931_v21, %v923_v59  ;;  %v961_v4 = vld [vmem:[#allocation8 + $0xae8] sm:$0xff]  ;;  %v955_v31 = vld [vmem:[#allocation8 + $0xab8] sm:$0xff]  ;;  %v978_v21 = vld [vmem:[#allocation8 + $0xb70] sm:$0xff]  ;;  %v4296_v29 = vpack.c.bf16 %v976_v19, %v968_v41 }
 0x280   :  { %2365 = vmatmul.mubr.f32.gmra.mrb[14].mxu0 %v5309_v54  ;;  %4531 = vmatprep.subr.bf16.mxu1 %v4530_v56  ;;  %v4290_v56 = vpack.c.bf16 %v961_v4, %v953_v57  ;;  %v4546_v3 = vpack.c.bf16 %v963_v62, %v955_v31  ;;  %v1008_v57 = vld [vmem:[#allocation8 + $0xc60] sm:$0xff]  ;;  %v1002_v4 = vld [vmem:[#allocation8 + $0xc30] sm:$0xff]  ;;  %v1043_v41 = vld [vmem:[#allocation8 + $0xd78] sm:$0xff] }
 0x281   :  { %2673 = vmatmul.mubr.f32.gmra.mrb[14].mxu1 %v5309_v54  ;;  %2435 = vmatprep.mubr.f32.mxu0 %v5325_v22  ;;  %v945_v54 = vld [vmem:[#allocation8 + $0xa68] sm:$0xff]  ;;  %v1010_v62 = vld [vmem:[#allocation8 + $0xc70] sm:$0xff]  ;;  %v4304_v58 = vpack.c.bf16 %v1008_v57, %v1000_v55  ;;  %v1016_v33 = vld [vmem:[#allocation8 + $0xca0] sm:$0xff] }
 0x282   :  { %4277 = vmatpush1.bf16.msra.mxu0 %v4276_v17  ;;  %2743 = vmatprep.mubr.f32.mxu1 %v5325_v22  ;;  %v4540_v22 = vpack.c.bf16 %v930_v37, %v922_v30  ;;  %v4286_v43 = vpack.c.bf16 %v945_v54, %v937_v39  ;;  %v969_v17 = vld [vmem:[#allocation8 + $0xb28] sm:$0xff]  ;;  %v4552_v30 = vpack.c.bf16 %v978_v21, %v970_v20  ;;  %v984_v37 = vld [vmem:[#allocation8 + $0xba0] sm:$0xff]  ;;  %v986_v54 = vld [vmem:[#allocation8 + $0xbb0] sm:$0xff] }
 0x283   :  { %4533 = vmatpush1.bf16.msra.mxu1 %v4532_v51  ;;  %4279 = vmatprep.subr.bf16.mxu0 %v4278_v9  ;;  %v977_v51 = vld [vmem:[#allocation8 + $0xb68] sm:$0xff]  ;;  %v971_v9 = vld [vmem:[#allocation8 + $0xb38] sm:$0xff]  ;;  %v992_v39 = vld [vmem:[#allocation8 + $0xbe0] sm:$0xff]  ;;  %v4556_v47 = vpack.c.bf16 %v994_v42, %v986_v54  ;;  %v4560_v0 = vpack.c.bf16 %v1010_v62, %v1002_v4 }
 0x284   :  { %4535 = vmatprep.subr.bf16.mxu1 %v4534_v14  ;;  %v4294_v14 = vpack.c.bf16 %v977_v51, %v969_v17  ;;  %v4550_v59 = vpack.c.bf16 %v979_v10, %v971_v9  ;;  %v4300_v46 = vpack.c.bf16 %v992_v39, %v984_v37  ;;  %v1024_v17 = vld [vmem:[#allocation8 + $0xce0] sm:$0xff]  ;;  %v1018_v51 = vld [vmem:[#allocation8 + $0xcb0] sm:$0xff]  ;;  %v1059_v37 = vld [vmem:[#allocation8 + $0xdf8] sm:$0xff] }
 0x285   :  { %v1026_v10 = vld [vmem:[#allocation8 + $0xcf0] sm:$0xff]  ;;  %v4308_v19 = vpack.c.bf16 %v1024_v17, %v1016_v33  ;;  %v1032_v21 = vld [vmem:[#allocation8 + $0xd20] sm:$0xff]  ;;  %v1075_v55 = vld [vmem:[#allocation8 + $0xe78] sm:$0xff] }
 0x286   :  { %4281 = vmatpush1.bf16.msra.mxu0 %v4280_v24  ;;  %v985_v24 = vld [vmem:[#allocation8 + $0xba8] sm:$0xff]  ;;  %v4564_v20 = vpack.c.bf16 %v1026_v10, %v1018_v51  ;;  %v1048_v42 = vld [vmem:[#allocation8 + $0xda0] sm:$0xff]  ;;  %v1091_v33 = vld [vmem:[#allocation8 + $0xef8] sm:$0xff] }
 0x287   :  { %4537 = vmatpush1.bf16.msra.mxu1 %v4536_v12  ;;  %4283 = vmatprep.subr.bf16.mxu0 %v4282_v25  ;;  %v993_v12 = vld [vmem:[#allocation8 + $0xbe8] sm:$0xff]  ;;  %v987_v25 = vld [vmem:[#allocation8 + $0xbb8] sm:$0xff]  ;;  %v1064_v62 = vld [vmem:[#allocation8 + $0xe20] sm:$0xff] }
 0x288   :  { %4539 = vmatprep.subr.bf16.mxu1 %v4538_v35  ;;  %v4298_v35 = vpack.c.bf16 %v993_v12, %v985_v24  ;;  %v4554_v40 = vpack.c.bf16 %v995_v27, %v987_v25  ;;  %v1040_v24 = vld [vmem:[#allocation8 + $0xd60] sm:$0xff]  ;;  %v1034_v12 = vld [vmem:[#allocation8 + $0xd30] sm:$0xff] }
 0x289   :  { %v1042_v27 = vld [vmem:[#allocation8 + $0xd70] sm:$0xff]  ;;  %v4312_v39 = vpack.c.bf16 %v1040_v24, %v1032_v21  ;;  %v1080_v10 = vld [vmem:[#allocation8 + $0xea0] sm:$0xff]  ;;  %v1107_v21 = vld [vmem:[#allocation8 + $0xf78] sm:$0xff] }
 0x28a   :  { %4285 = vmatpush1.bf16.msra.mxu0 %v4284_v5  ;;  %v1001_v5 = vld [vmem:[#allocation8 + $0xc28] sm:$0xff]  ;;  %v4568_v54 = vpack.c.bf16 %v1042_v27, %v1034_v12  ;;  %v1096_v27 = vld [vmem:[#allocation8 + $0xf20] sm:$0xff] }
 0x28b   :  { %4541 = vmatpush1.bf16.msra.mxu1 %v4540_v22  ;;  %4287 = vmatprep.subr.bf16.mxu0 %v4286_v43  ;;  %v1009_v22 = vld [vmem:[#allocation8 + $0xc68] sm:$0xff]  ;;  %v1003_v43 = vld [vmem:[#allocation8 + $0xc38] sm:$0xff] }
 0x28c   :  { %4543 = vmatprep.subr.bf16.mxu1 %v4542_v50  ;;  %v4302_v50 = vpack.c.bf16 %v1009_v22, %v1001_v5  ;;  %v4558_v31 = vpack.c.bf16 %v1011_v45, %v1003_v43  ;;  %v1056_v5 = vld [vmem:[#allocation8 + $0xde0] sm:$0xff]  ;;  %v1050_v22 = vld [vmem:[#allocation8 + $0xdb0] sm:$0xff] }
 0x28d   :  { %v1058_v45 = vld [vmem:[#allocation8 + $0xdf0] sm:$0xff]  ;;  %v4316_v57 = vpack.c.bf16 %v1056_v5, %v1048_v42  ;;  %v1123_v42 = vld [vmem:[#allocation8 + $0xff8] sm:$0xff] }
 0x28e   :  { %4289 = vmatpush1.bf16.msra.mxu0 %v4288_v63  ;;  %v1017_v63 = vld [vmem:[#allocation8 + $0xca8] sm:$0xff]  ;;  %v4572_v4 = vpack.c.bf16 %v1058_v45, %v1050_v22  ;;  %v1112_v45 = vld [vmem:[#allocation8 + $0xfa0] sm:$0xff] }
 0x28f   :  { %4545 = vmatpush1.bf16.msra.mxu1 %v4544_v7  ;;  %4291 = vmatprep.subr.bf16.mxu0 %v4290_v56  ;;  %v1025_v7 = vld [vmem:[#allocation8 + $0xce8] sm:$0xff]  ;;  %v1019_v56 = vld [vmem:[#allocation8 + $0xcb8] sm:$0xff] }
 0x290   :  { %4547 = vmatprep.subr.bf16.mxu1 %v4546_v3  ;;  %v4306_v3 = vpack.c.bf16 %v1025_v7, %v1017_v63  ;;  %v4562_v9 = vpack.c.bf16 %v1027_v34, %v1019_v56  ;;  %v1072_v63 = vld [vmem:[#allocation8 + $0xe60] sm:$0xff]  ;;  %v1066_v7 = vld [vmem:[#allocation8 + $0xe30] sm:$0xff] }
 0x291   :  { %v1074_v34 = vld [vmem:[#allocation8 + $0xe70] sm:$0xff]  ;;  %v4320_v17 = vpack.c.bf16 %v1072_v63, %v1064_v62  ;;  %v1139_v62 = vld [vmem:[#allocation8 + $0x1078] sm:$0xff] }
 0x292   :  { %4293 = vmatpush1.bf16.msra.mxu0 %v4292_v52  ;;  %v1033_v52 = vld [vmem:[#allocation8 + $0xd28] sm:$0xff]  ;;  %v4576_v51 = vpack.c.bf16 %v1074_v34, %v1066_v7 }
 0x293   :  { %4549 = vmatpush1.bf16.msra.mxu1 %v4548_v13  ;;  %4295 = vmatprep.subr.bf16.mxu0 %v4294_v14  ;;  %v1041_v13 = vld [vmem:[#allocation8 + $0xd68] sm:$0xff]  ;;  %v1035_v14 = vld [vmem:[#allocation8 + $0xd38] sm:$0xff] }
 0x294   :  { %4551 = vmatprep.subr.bf16.mxu1 %v4550_v59  ;;  %v4310_v59 = vpack.c.bf16 %v1041_v13, %v1033_v52  ;;  %v4566_v25 = vpack.c.bf16 %v1043_v41, %v1035_v14  ;;  %v1088_v52 = vld [vmem:[#allocation8 + $0xee0] sm:$0xff]  ;;  %v1082_v13 = vld [vmem:[#allocation8 + $0xeb0] sm:$0xff] }
 0x295   :  { %v1090_v41 = vld [vmem:[#allocation8 + $0xef0] sm:$0xff]  ;;  %v4324_v24 = vpack.c.bf16 %v1088_v52, %v1080_v10  ;;  %v1155_v10 = vld [vmem:[#allocation8 + $0x10f8] sm:$0xff] }
 0x296   :  { %4297 = vmatpush1.bf16.msra.mxu0 %v4296_v29  ;;  %v1049_v29 = vld [vmem:[#allocation8 + $0xda8] sm:$0xff]  ;;  %v4580_v12 = vpack.c.bf16 %v1090_v41, %v1082_v13  ;;  %v1144_v41 = vld [vmem:[#allocation8 + $0x10a0] sm:$0xff] }
 0x297   :  { %4553 = vmatpush1.bf16.msra.mxu1 %v4552_v30  ;;  %4299 = vmatprep.subr.bf16.mxu0 %v4298_v35  ;;  %v1057_v30 = vld [vmem:[#allocation8 + $0xde8] sm:$0xff]  ;;  %v1051_v35 = vld [vmem:[#allocation8 + $0xdb8] sm:$0xff] }
 0x298   :  { %4555 = vmatprep.subr.bf16.mxu1 %v4554_v40  ;;  %v4314_v40 = vpack.c.bf16 %v1057_v30, %v1049_v29  ;;  %v4570_v43 = vpack.c.bf16 %v1059_v37, %v1051_v35  ;;  %v1104_v29 = vld [vmem:[#allocation8 + $0xf60] sm:$0xff]  ;;  %v1098_v30 = vld [vmem:[#allocation8 + $0xf30] sm:$0xff] }
 0x299   :  { %v1106_v37 = vld [vmem:[#allocation8 + $0xf70] sm:$0xff]  ;;  %v4328_v5 = vpack.c.bf16 %v1104_v29, %v1096_v27  ;;  %v1171_v27 = vld [vmem:[#allocation8 + $0x1178] sm:$0xff] }
 0x29a   :  { %4301 = vmatpush1.bf16.msra.mxu0 %v4300_v46  ;;  %v1065_v46 = vld [vmem:[#allocation8 + $0xe28] sm:$0xff]  ;;  %v4584_v22 = vpack.c.bf16 %v1106_v37, %v1098_v30  ;;  %v1160_v37 = vld [vmem:[#allocation8 + $0x1120] sm:$0xff] }
 0x29b   :  { %4557 = vmatpush1.bf16.msra.mxu1 %v4556_v47  ;;  %4303 = vmatprep.subr.bf16.mxu0 %v4302_v50  ;;  %v1073_v47 = vld [vmem:[#allocation8 + $0xe68] sm:$0xff]  ;;  %v1067_v50 = vld [vmem:[#allocation8 + $0xe38] sm:$0xff] }
 0x29c   :  { %4559 = vmatprep.subr.bf16.mxu1 %v4558_v31  ;;  %v4318_v31 = vpack.c.bf16 %v1073_v47, %v1065_v46  ;;  %v4574_v56 = vpack.c.bf16 %v1075_v55, %v1067_v50  ;;  %v1120_v46 = vld [vmem:[#allocation8 + $0xfe0] sm:$0xff]  ;;  %v1114_v47 = vld [vmem:[#allocation8 + $0xfb0] sm:$0xff] }
 0x29d   :  { %v1122_v55 = vld [vmem:[#allocation8 + $0xff0] sm:$0xff]  ;;  %v4332_v63 = vpack.c.bf16 %v1120_v46, %v1112_v45 }
 0x29e   :  { %4305 = vmatpush1.bf16.msra.mxu0 %v4304_v58  ;;  %v1081_v58 = vld [vmem:[#allocation8 + $0xea8] sm:$0xff]  ;;  %v4588_v7 = vpack.c.bf16 %v1122_v55, %v1114_v47  ;;  %v1176_v47 = vld [vmem:[#allocation8 + $0x11a0] sm:$0xff]  ;;  %v1178_v55 = vld [vmem:[#allocation8 + $0x11b0] sm:$0xff] }
 0x29f   :  { %4561 = vmatpush1.bf16.msra.mxu1 %v4560_v0  ;;  %4307 = vmatprep.subr.bf16.mxu0 %v4306_v3  ;;  %v1089_v0 = vld [vmem:[#allocation8 + $0xee8] sm:$0xff]  ;;  %v1083_v3 = vld [vmem:[#allocation8 + $0xeb8] sm:$0xff] }
 0x2a0   :  { %4563 = vmatprep.subr.bf16.mxu1 %v4562_v9  ;;  %v4322_v9 = vpack.c.bf16 %v1089_v0, %v1081_v58  ;;  %v4578_v14 = vpack.c.bf16 %v1091_v33, %v1083_v3  ;;  %v1128_v58 = vld [vmem:[#allocation8 + $0x1020] sm:$0xff]  ;;  %v1130_v3 = vld [vmem:[#allocation8 + $0x1030] sm:$0xff] }
 0x2a1   :  { %v1136_v0 = vld [vmem:[#allocation8 + $0x1060] sm:$0xff]  ;;  %v1138_v33 = vld [vmem:[#allocation8 + $0x1070] sm:$0xff] }
 0x2a2   :  { %4309 = vmatpush1.bf16.msra.mxu0 %v4308_v19  ;;  %v1097_v19 = vld [vmem:[#allocation8 + $0xf28] sm:$0xff]  ;;  %v4336_v52 = vpack.c.bf16 %v1136_v0, %v1128_v58  ;;  %v4592_v13 = vpack.c.bf16 %v1138_v33, %v1130_v3  ;;  %v1200_v58 = vld [vmem:[#allocation8 + $0x1260] sm:$0xff]  ;;  %v1194_v0 = vld [vmem:[#allocation8 + $0x1230] sm:$0xff] }
 0x2a3   :  { %4565 = vmatpush1.bf16.msra.mxu1 %v4564_v20  ;;  %4311 = vmatprep.subr.bf16.mxu0 %v4310_v59  ;;  %v1105_v20 = vld [vmem:[#allocation8 + $0xf68] sm:$0xff]  ;;  %v1099_v59 = vld [vmem:[#allocation8 + $0xf38] sm:$0xff]  ;;  %v1202_v33 = vld [vmem:[#allocation8 + $0x1270] sm:$0xff] }
 0x2a4   :  { %4567 = vmatprep.subr.bf16.mxu1 %v4566_v25  ;;  %v4326_v25 = vpack.c.bf16 %v1105_v20, %v1097_v19  ;;  %v4582_v35 = vpack.c.bf16 %v1107_v21, %v1099_v59  ;;  %v1152_v19 = vld [vmem:[#allocation8 + $0x10e0] sm:$0xff]  ;;  %v1146_v20 = vld [vmem:[#allocation8 + $0x10b0] sm:$0xff] }
 0x2a5   :  { %v1154_v21 = vld [vmem:[#allocation8 + $0x10f0] sm:$0xff]  ;;  %v4340_v29 = vpack.c.bf16 %v1152_v19, %v1144_v41  ;;  %v1208_v41 = vld [vmem:[#allocation8 + $0x12a0] sm:$0xff] }
 0x2a6   :  { %4313 = vmatpush1.bf16.msra.mxu0 %v4312_v39  ;;  %v1113_v39 = vld [vmem:[#allocation8 + $0xfa8] sm:$0xff]  ;;  %v4596_v30 = vpack.c.bf16 %v1154_v21, %v1146_v20  ;;  %v1216_v19 = vld [vmem:[#allocation8 + $0x12e0] sm:$0xff]  ;;  %v1210_v20 = vld [vmem:[#allocation8 + $0x12b0] sm:$0xff] }
 0x2a7   :  { %4569 = vmatpush1.bf16.msra.mxu1 %v4568_v54  ;;  %4315 = vmatprep.subr.bf16.mxu0 %v4314_v40  ;;  %v1121_v54 = vld [vmem:[#allocation8 + $0xfe8] sm:$0xff]  ;;  %v1115_v40 = vld [vmem:[#allocation8 + $0xfb8] sm:$0xff]  ;;  %v1218_v21 = vld [vmem:[#allocation8 + $0x12f0] sm:$0xff] }
 0x2a8   :  { %4571 = vmatprep.subr.bf16.mxu1 %v4570_v43  ;;  %v4330_v43 = vpack.c.bf16 %v1121_v54, %v1113_v39  ;;  %v4586_v50 = vpack.c.bf16 %v1123_v42, %v1115_v40  ;;  %v1168_v39 = vld [vmem:[#allocation8 + $0x1160] sm:$0xff]  ;;  %v1162_v54 = vld [vmem:[#allocation8 + $0x1130] sm:$0xff]  ;;  %v1177_v42 = vld [vmem:[#allocation8 + $0x11a8] sm:$0xff] }
 0x2aa   :  { %4317 = vmatpush1.bf16.msra.mxu0 %v4316_v57  ;;  %v1129_v57 = vld [vmem:[#allocation8 + $0x1028] sm:$0xff] }
 0x2ab   :  { %4573 = vmatpush1.bf16.msra.mxu1 %v4572_v4  ;;  %4319 = vmatprep.subr.bf16.mxu0 %v4318_v31  ;;  %v1137_v4 = vld [vmem:[#allocation8 + $0x1068] sm:$0xff]  ;;  %v1131_v31 = vld [vmem:[#allocation8 + $0x1038] sm:$0xff] }
 0x2ac   :  { %4575 = vmatprep.subr.bf16.mxu1 %v4574_v56  ;;  %v4334_v56 = vpack.c.bf16 %v1137_v4, %v1129_v57  ;;  %v4590_v34 = vpack.c.bf16 %v1139_v62, %v1131_v31  ;;  %v1186_v4 = vld [vmem:[#allocation8 + $0x11f0] sm:$0xff]  ;;  %v1193_v31 = vld [vmem:[#allocation8 + $0x1228] sm:$0xff]  ;;  %v1195_v62 = vld [vmem:[#allocation8 + $0x1238] sm:$0xff] }
 0x2ae   :  { %4321 = vmatpush1.bf16.msra.mxu0 %v4320_v17  ;;  %v1145_v17 = vld [vmem:[#allocation8 + $0x10a8] sm:$0xff] }
 0x2af   :  { %4577 = vmatpush1.bf16.msra.mxu1 %v4576_v51  ;;  %4323 = vmatprep.subr.bf16.mxu0 %v4322_v9  ;;  %v1153_v51 = vld [vmem:[#allocation8 + $0x10e8] sm:$0xff]  ;;  %v1147_v9 = vld [vmem:[#allocation8 + $0x10b8] sm:$0xff] }
 0x2b0   :  { %4579 = vmatprep.subr.bf16.mxu1 %v4578_v14  ;;  %v4338_v14 = vpack.c.bf16 %v1153_v51, %v1145_v17  ;;  %v4594_v59 = vpack.c.bf16 %v1155_v10, %v1147_v9  ;;  %v1209_v17 = vld [vmem:[#allocation8 + $0x12a8] sm:$0xff]  ;;  %v1211_v9 = vld [vmem:[#allocation8 + $0x12b8] sm:$0xff] }
 0x2b1   :  { %v1217_v51 = vld [vmem:[#allocation8 + $0x12e8] sm:$0xff]  ;;  %v1219_v10 = vld [vmem:[#allocation8 + $0x12f8] sm:$0xff] }
 0x2b2   :  { %4325 = vmatpush1.bf16.msra.mxu0 %v4324_v24  ;;  %v1161_v24 = vld [vmem:[#allocation8 + $0x1128] sm:$0xff] }
 0x2b3   :  { %4581 = vmatpush1.bf16.msra.mxu1 %v4580_v12  ;;  %4327 = vmatprep.subr.bf16.mxu0 %v4326_v25  ;;  %v1169_v12 = vld [vmem:[#allocation8 + $0x1168] sm:$0xff]  ;;  %v1163_v25 = vld [vmem:[#allocation8 + $0x1138] sm:$0xff] }
 0x2b4   :  { %4583 = vmatprep.subr.bf16.mxu1 %v4582_v35  ;;  %v4342_v35 = vpack.c.bf16 %v1169_v12, %v1161_v24  ;;  %v4598_v40 = vpack.c.bf16 %v1171_v27, %v1163_v25  ;;  %v1225_v24 = vld [vmem:[#allocation8 + $0x1328] sm:$0xff]  ;;  %v1227_v25 = vld [vmem:[#allocation8 + $0x1338] sm:$0xff] }
 0x2b5   :  { %v1233_v12 = vld [vmem:[#allocation8 + $0x1368] sm:$0xff]  ;;  %v1235_v27 = vld [vmem:[#allocation8 + $0x1378] sm:$0xff] }
 0x2b6   :  { %4329 = vmatpush1.bf16.msra.mxu0 %v4328_v5  ;;  %v1185_v5 = vld [vmem:[#allocation8 + $0x11e8] sm:$0xff] }
 0x2b7   :  { %4585 = vmatpush1.bf16.msra.mxu1 %v4584_v22  ;;  %4331 = vmatprep.subr.bf16.mxu0 %v4330_v43  ;;  %v1187_v22 = vld [vmem:[#allocation8 + $0x11f8] sm:$0xff]  ;;  %v4344_v43 = vpack.c.bf16 %v1168_v39, %v1160_v37  ;;  %v4346_v46 = vpack.c.bf16 %v1185_v5, %v1177_v42  ;;  %v1224_v37 = vld [vmem:[#allocation8 + $0x1320] sm:$0xff]  ;;  %v1241_v42 = vld [vmem:[#allocation8 + $0x13a8] sm:$0xff] }
 0x2b8   :  { %4587 = vmatprep.subr.bf16.mxu1 %v4586_v50  ;;  %v1184_v50 = vld [vmem:[#allocation8 + $0x11e0] sm:$0xff]  ;;  %v1249_v5 = vld [vmem:[#allocation8 + $0x13e8] sm:$0xff] }
 0x2b9   :  { %v1232_v39 = vld [vmem:[#allocation8 + $0x1360] sm:$0xff] }
 0x2ba   :  { %4333 = vmatpush1.bf16.msra.mxu0 %v4332_v63  ;;  %v1203_v63 = vld [vmem:[#allocation8 + $0x1278] sm:$0xff] }
 0x2bb   :  { %4589 = vmatpush1.bf16.msra.mxu1 %v4588_v7  ;;  %4335 = vmatprep.subr.bf16.mxu0 %v4334_v56  ;;  %v4348_v7 = vpack.c.bf16 %v1184_v50, %v1176_v47  ;;  %v4606_v3 = vpack.c.bf16 %v1203_v63, %v1195_v62  ;;  %v1240_v47 = vld [vmem:[#allocation8 + $0x13a0] sm:$0xff]  ;;  %v1259_v62 = vld [vmem:[#allocation8 + $0x1438] sm:$0xff] }
 0x2bc   :  { %4591 = vmatprep.subr.bf16.mxu1 %v4590_v34  ;;  %v1192_v34 = vld [vmem:[#allocation8 + $0x1220] sm:$0xff]  ;;  %v1267_v63 = vld [vmem:[#allocation8 + $0x1478] sm:$0xff] }
 0x2bd   :  { %2436 = vmatmul.mubr.f32.vlgmr.msra.gmra.mrb[12].mxu0 %v5360_v60  ;;  %v1248_v50 = vld [vmem:[#allocation8 + $0x13e0] sm:$0xff] }
 0x2be   :  { %2744 = vmatmul.mubr.f32.vlgmr.msra.gmra.mrb[12].mxu1 %v5360_v60  ;;  %2441 = vmatprep.mubr.f32.mxu0 %v5365_v11  ;;  %v1170_v60 = vld [vmem:[#allocation8 + $0x1170] sm:$0xff] }
 0x2bf   :  { %4337 = vmatpush1.bf16.msra.mxu0 %v4336_v52  ;;  %2749 = vmatprep.mubr.f32.mxu1 %v5365_v11  ;;  %v1179_v11 = vld [vmem:[#allocation8 + $0x11b8] sm:$0xff]  ;;  %v4600_v45 = vpack.c.bf16 %v1170_v60, %v1162_v54  ;;  %v4352_v52 = vpack.c.bf16 %v1200_v58, %v1192_v34  ;;  %v1226_v54 = vld [vmem:[#allocation8 + $0x1330] sm:$0xff]  ;;  %v1256_v34 = vld [vmem:[#allocation8 + $0x1420] sm:$0xff] }
 0x2c0   :  { %4593 = vmatpush1.bf16.msra.mxu1 %v4592_v13  ;;  %4339 = vmatprep.subr.bf16.mxu0 %v4338_v14  ;;  %v4602_v57 = vpack.c.bf16 %v1187_v22, %v1179_v11  ;;  %v4608_v13 = vpack.c.bf16 %v1202_v33, %v1194_v0  ;;  %v4354_v14 = vpack.c.bf16 %v1217_v51, %v1209_v17  ;;  %v1234_v60 = vld [vmem:[#allocation8 + $0x1370] sm:$0xff]  ;;  %v1243_v11 = vld [vmem:[#allocation8 + $0x13b8] sm:$0xff]  ;;  %v1264_v58 = vld [vmem:[#allocation8 + $0x1460] sm:$0xff] }
 0x2c1   :  { %2442 = vmatmul.mubr.f32.gmra.mrb[14].mxu0 %v5371_v44  ;;  %4595 = vmatprep.subr.bf16.mxu1 %v4594_v59  ;;  %v4610_v59 = vpack.c.bf16 %v1219_v10, %v1211_v9  ;;  %v1251_v22 = vld [vmem:[#allocation8 + $0x13f8] sm:$0xff]  ;;  %v1258_v0 = vld [vmem:[#allocation8 + $0x1430] sm:$0xff]  ;;  %v1273_v17 = vld [vmem:[#allocation8 + $0x14a8] sm:$0xff] }
 0x2c2   :  { %2750 = vmatmul.mubr.f32.gmra.mrb[14].mxu1 %v5371_v44  ;;  %2512 = vmatprep.mubr.f32.mxu0 %v5373_v32  ;;  %v1201_v44 = vld [vmem:[#allocation8 + $0x1268] sm:$0xff]  ;;  %v1266_v33 = vld [vmem:[#allocation8 + $0x1470] sm:$0xff]  ;;  %v1275_v9 = vld [vmem:[#allocation8 + $0x14b8] sm:$0xff] }
 0x2c3   :  { %4341 = vmatpush1.bf16.msra.mxu0 %v4340_v29  ;;  %2820 = vmatprep.mubr.f32.mxu1 %v5373_v32  ;;  %v4604_v32 = vpack.c.bf16 %v1186_v4, %v1178_v55  ;;  %v4350_v56 = vpack.c.bf16 %v1201_v44, %v1193_v31  ;;  %v4356_v29 = vpack.c.bf16 %v1216_v19, %v1208_v41  ;;  %v1242_v55 = vld [vmem:[#allocation8 + $0x13b0] sm:$0xff]  ;;  %v1257_v31 = vld [vmem:[#allocation8 + $0x1428] sm:$0xff]  ;;  %v1283_v10 = vld [vmem:[#allocation8 + $0x14f8] sm:$0xff] }
 0x2c4   :  { %4597 = vmatpush1.bf16.msra.mxu1 %v4596_v30  ;;  %4343 = vmatprep.subr.bf16.mxu0 %v4342_v35  ;;  %v4612_v30 = vpack.c.bf16 %v1218_v21, %v1210_v20  ;;  %v4358_v35 = vpack.c.bf16 %v1233_v12, %v1225_v24  ;;  %v1250_v4 = vld [vmem:[#allocation8 + $0x13f0] sm:$0xff]  ;;  %v1265_v44 = vld [vmem:[#allocation8 + $0x1468] sm:$0xff]  ;;  %v1272_v41 = vld [vmem:[#allocation8 + $0x14a0] sm:$0xff] }
 0x2c5   :  { %4599 = vmatprep.subr.bf16.mxu1 %v4598_v40  ;;  %v4614_v40 = vpack.c.bf16 %v1235_v27, %v1227_v25  ;;  %v1281_v51 = vld [vmem:[#allocation8 + $0x14e8] sm:$0xff]  ;;  %v1280_v19 = vld [vmem:[#allocation8 + $0x14e0] sm:$0xff]  ;;  %v1274_v20 = vld [vmem:[#allocation8 + $0x14b0] sm:$0xff] }
 0x2c6   :  { %v1282_v21 = vld [vmem:[#allocation8 + $0x14f0] sm:$0xff]  ;;  %v1289_v24 = vld [vmem:[#allocation8 + $0x1528] sm:$0xff]  ;;  %v1291_v25 = vld [vmem:[#allocation8 + $0x1538] sm:$0xff] }
 0x2c7   :  { %4345 = vmatpush1.bf16.msra.mxu0 %v4344_v43  ;;  %v4360_v43 = vpack.c.bf16 %v1232_v39, %v1224_v37  ;;  %v1297_v12 = vld [vmem:[#allocation8 + $0x1568] sm:$0xff]  ;;  %v1299_v27 = vld [vmem:[#allocation8 + $0x1578] sm:$0xff]  ;;  %v1288_v37 = vld [vmem:[#allocation8 + $0x1520] sm:$0xff] }
 0x2c8   :  { %4601 = vmatpush1.bf16.msra.mxu1 %v4600_v45  ;;  %4347 = vmatprep.subr.bf16.mxu0 %v4346_v46  ;;  %v4616_v45 = vpack.c.bf16 %v1234_v60, %v1226_v54  ;;  %v4362_v46 = vpack.c.bf16 %v1249_v5, %v1241_v42  ;;  %v1296_v39 = vld [vmem:[#allocation8 + $0x1560] sm:$0xff]  ;;  %v1290_v54 = vld [vmem:[#allocation8 + $0x1530] sm:$0xff]  ;;  %v1305_v42 = vld [vmem:[#allocation8 + $0x15a8] sm:$0xff] }
 0x2c9   :  { %4603 = vmatprep.subr.bf16.mxu1 %v4602_v57  ;;  %v4618_v57 = vpack.c.bf16 %v1251_v22, %v1243_v11  ;;  %v1298_v60 = vld [vmem:[#allocation8 + $0x1570] sm:$0xff]  ;;  %v1313_v5 = vld [vmem:[#allocation8 + $0x15e8] sm:$0xff]  ;;  %v1307_v11 = vld [vmem:[#allocation8 + $0x15b8] sm:$0xff] }
 0x2ca   :  { %v1315_v22 = vld [vmem:[#allocation8 + $0x15f8] sm:$0xff] }
 0x2cb   :  { %4349 = vmatpush1.bf16.msra.mxu0 %v4348_v7  ;;  %v4364_v7 = vpack.c.bf16 %v1248_v50, %v1240_v47  ;;  %v1304_v47 = vld [vmem:[#allocation8 + $0x15a0] sm:$0xff] }
 0x2cc   :  { %4605 = vmatpush1.bf16.msra.mxu1 %v4604_v32  ;;  %4351 = vmatprep.subr.bf16.mxu0 %v4350_v56  ;;  %v4620_v32 = vpack.c.bf16 %v1250_v4, %v1242_v55  ;;  %v4366_v56 = vpack.c.bf16 %v1265_v44, %v1257_v31  ;;  %v1312_v50 = vld [vmem:[#allocation8 + $0x15e0] sm:$0xff]  ;;  %v1306_v55 = vld [vmem:[#allocation8 + $0x15b0] sm:$0xff]  ;;  %v1321_v31 = vld [vmem:[#allocation8 + $0x1628] sm:$0xff] }
 0x2cd   :  { %4607 = vmatprep.subr.bf16.mxu1 %v4606_v3  ;;  %v4622_v3 = vpack.c.bf16 %v1267_v63, %v1259_v62  ;;  %v1314_v4 = vld [vmem:[#allocation8 + $0x15f0] sm:$0xff]  ;;  %v1329_v44 = vld [vmem:[#allocation8 + $0x1668] sm:$0xff]  ;;  %v1323_v62 = vld [vmem:[#allocation8 + $0x1638] sm:$0xff] }
 0x2ce   :  { %v1331_v63 = vld [vmem:[#allocation8 + $0x1678] sm:$0xff] }
 0x2cf   :  { %4353 = vmatpush1.bf16.msra.mxu0 %v4352_v52  ;;  %v4368_v52 = vpack.c.bf16 %v1264_v58, %v1256_v34  ;;  %v1320_v34 = vld [vmem:[#allocation8 + $0x1620] sm:$0xff] }
 0x2d0   :  { %4609 = vmatpush1.bf16.msra.mxu1 %v4608_v13  ;;  %4355 = vmatprep.subr.bf16.mxu0 %v4354_v14  ;;  %v4624_v13 = vpack.c.bf16 %v1266_v33, %v1258_v0  ;;  %v4370_v14 = vpack.c.bf16 %v1281_v51, %v1273_v17  ;;  %v1328_v58 = vld [vmem:[#allocation8 + $0x1660] sm:$0xff]  ;;  %v1322_v0 = vld [vmem:[#allocation8 + $0x1630] sm:$0xff]  ;;  %v1337_v17 = vld [vmem:[#allocation8 + $0x16a8] sm:$0xff] }
 0x2d1   :  { %4611 = vmatprep.subr.bf16.mxu1 %v4610_v59  ;;  %v4626_v59 = vpack.c.bf16 %v1283_v10, %v1275_v9  ;;  %v1330_v33 = vld [vmem:[#allocation8 + $0x1670] sm:$0xff]  ;;  %v1345_v51 = vld [vmem:[#allocation8 + $0x16e8] sm:$0xff]  ;;  %v1339_v9 = vld [vmem:[#allocation8 + $0x16b8] sm:$0xff] }
 0x2d2   :  { %v1347_v10 = vld [vmem:[#allocation8 + $0x16f8] sm:$0xff] }
 0x2d3   :  { %4357 = vmatpush1.bf16.msra.mxu0 %v4356_v29  ;;  %v4372_v29 = vpack.c.bf16 %v1280_v19, %v1272_v41  ;;  %v1336_v41 = vld [vmem:[#allocation8 + $0x16a0] sm:$0xff] }
 0x2d4   :  { %4613 = vmatpush1.bf16.msra.mxu1 %v4612_v30  ;;  %4359 = vmatprep.subr.bf16.mxu0 %v4358_v35  ;;  %v4628_v30 = vpack.c.bf16 %v1282_v21, %v1274_v20  ;;  %v4374_v35 = vpack.c.bf16 %v1297_v12, %v1289_v24  ;;  %v1344_v19 = vld [vmem:[#allocation8 + $0x16e0] sm:$0xff]  ;;  %v1338_v20 = vld [vmem:[#allocation8 + $0x16b0] sm:$0xff]  ;;  %v1353_v24 = vld [vmem:[#allocation8 + $0x1728] sm:$0xff] }
 0x2d5   :  { %4615 = vmatprep.subr.bf16.mxu1 %v4614_v40  ;;  %v4630_v40 = vpack.c.bf16 %v1299_v27, %v1291_v25  ;;  %v1346_v21 = vld [vmem:[#allocation8 + $0x16f0] sm:$0xff]  ;;  %v1361_v12 = vld [vmem:[#allocation8 + $0x1768] sm:$0xff]  ;;  %v1355_v25 = vld [vmem:[#allocation8 + $0x1738] sm:$0xff] }
 0x2d6   :  { %v1363_v27 = vld [vmem:[#allocation8 + $0x1778] sm:$0xff] }
 0x2d7   :  { %4361 = vmatpush1.bf16.msra.mxu0 %v4360_v43  ;;  %v4376_v43 = vpack.c.bf16 %v1296_v39, %v1288_v37  ;;  %v1352_v37 = vld [vmem:[#allocation8 + $0x1720] sm:$0xff] }
 0x2d8   :  { %4617 = vmatpush1.bf16.msra.mxu1 %v4616_v45  ;;  %4363 = vmatprep.subr.bf16.mxu0 %v4362_v46  ;;  %v4632_v45 = vpack.c.bf16 %v1298_v60, %v1290_v54  ;;  %v4378_v46 = vpack.c.bf16 %v1313_v5, %v1305_v42  ;;  %v1360_v39 = vld [vmem:[#allocation8 + $0x1760] sm:$0xff]  ;;  %v1354_v54 = vld [vmem:[#allocation8 + $0x1730] sm:$0xff]  ;;  %v1369_v42 = vld [vmem:[#allocation8 + $0x17a8] sm:$0xff] }
 0x2d9   :  { %4619 = vmatprep.subr.bf16.mxu1 %v4618_v57  ;;  %v4634_v57 = vpack.c.bf16 %v1315_v22, %v1307_v11  ;;  %v1362_v60 = vld [vmem:[#allocation8 + $0x1770] sm:$0xff]  ;;  %v1377_v5 = vld [vmem:[#allocation8 + $0x17e8] sm:$0xff]  ;;  %v1371_v11 = vld [vmem:[#allocation8 + $0x17b8] sm:$0xff] }
 0x2da   :  { %v1379_v22 = vld [vmem:[#allocation8 + $0x17f8] sm:$0xff] }
 0x2db   :  { %4365 = vmatpush1.bf16.msra.mxu0 %v4364_v7  ;;  %v4380_v7 = vpack.c.bf16 %v1312_v50, %v1304_v47  ;;  %v1368_v47 = vld [vmem:[#allocation8 + $0x17a0] sm:$0xff] }
 0x2dc   :  { %4621 = vmatpush1.bf16.msra.mxu1 %v4620_v32  ;;  %4367 = vmatprep.subr.bf16.mxu0 %v4366_v56  ;;  %v4636_v32 = vpack.c.bf16 %v1314_v4, %v1306_v55  ;;  %v4382_v56 = vpack.c.bf16 %v1329_v44, %v1321_v31  ;;  %v1376_v50 = vld [vmem:[#allocation8 + $0x17e0] sm:$0xff]  ;;  %v1370_v55 = vld [vmem:[#allocation8 + $0x17b0] sm:$0xff]  ;;  %v1385_v31 = vld [vmem:[#allocation8 + $0x1828] sm:$0xff] }
 0x2dd   :  { %4623 = vmatprep.subr.bf16.mxu1 %v4622_v3  ;;  %v4638_v3 = vpack.c.bf16 %v1331_v63, %v1323_v62  ;;  %v1378_v4 = vld [vmem:[#allocation8 + $0x17f0] sm:$0xff]  ;;  %v1393_v44 = vld [vmem:[#allocation8 + $0x1868] sm:$0xff]  ;;  %v1387_v62 = vld [vmem:[#allocation8 + $0x1838] sm:$0xff] }
 0x2de   :  { %v1395_v63 = vld [vmem:[#allocation8 + $0x1878] sm:$0xff] }
 0x2df   :  { %4369 = vmatpush1.bf16.msra.mxu0 %v4368_v52  ;;  %v4384_v52 = vpack.c.bf16 %v1328_v58, %v1320_v34  ;;  %v4654_v34 = vpack.c.bf16 %v1395_v63, %v1387_v62  ;;  %v1384_v58 = vld [vmem:[#allocation8 + $0x1820] sm:$0xff] }
 0x2e0   :  { %4625 = vmatpush1.bf16.msra.mxu1 %v4624_v13  ;;  %4371 = vmatprep.subr.bf16.mxu0 %v4370_v14  ;;  %v4640_v13 = vpack.c.bf16 %v1330_v33, %v1322_v0  ;;  %v4386_v14 = vpack.c.bf16 %v1345_v51, %v1337_v17  ;;  %v1392_v0 = vld [vmem:[#allocation8 + $0x1860] sm:$0xff]  ;;  %v1394_v33 = vld [vmem:[#allocation8 + $0x1870] sm:$0xff]  ;;  %v1401_v17 = vld [vmem:[#allocation8 + $0x18a8] sm:$0xff] }
 0x2e1   :  { %4627 = vmatprep.subr.bf16.mxu1 %v4626_v59  ;;  %v4642_v59 = vpack.c.bf16 %v1347_v10, %v1339_v9  ;;  %v1409_v51 = vld [vmem:[#allocation8 + $0x18e8] sm:$0xff]  ;;  %v1403_v9 = vld [vmem:[#allocation8 + $0x18b8] sm:$0xff]  ;;  %v1448_v63 = vld [vmem:[#allocation8 + $0x1a20] sm:$0xff] }
 0x2e2   :  { %v1411_v10 = vld [vmem:[#allocation8 + $0x18f8] sm:$0xff] }
 0x2e3   :  { %4373 = vmatpush1.bf16.msra.mxu0 %v4372_v29  ;;  %v4388_v29 = vpack.c.bf16 %v1344_v19, %v1336_v41  ;;  %v1400_v41 = vld [vmem:[#allocation8 + $0x18a0] sm:$0xff] }
 0x2e4   :  { %4629 = vmatpush1.bf16.msra.mxu1 %v4628_v30  ;;  %4375 = vmatprep.subr.bf16.mxu0 %v4374_v35  ;;  %v4644_v30 = vpack.c.bf16 %v1346_v21, %v1338_v20  ;;  %v4390_v35 = vpack.c.bf16 %v1361_v12, %v1353_v24  ;;  %v1408_v19 = vld [vmem:[#allocation8 + $0x18e0] sm:$0xff]  ;;  %v1402_v20 = vld [vmem:[#allocation8 + $0x18b0] sm:$0xff]  ;;  %v1417_v24 = vld [vmem:[#allocation8 + $0x1928] sm:$0xff] }
 0x2e5   :  { %4631 = vmatprep.subr.bf16.mxu1 %v4630_v40  ;;  %v4646_v40 = vpack.c.bf16 %v1363_v27, %v1355_v25  ;;  %v1410_v21 = vld [vmem:[#allocation8 + $0x18f0] sm:$0xff]  ;;  %v1425_v12 = vld [vmem:[#allocation8 + $0x1968] sm:$0xff]  ;;  %v1419_v25 = vld [vmem:[#allocation8 + $0x1938] sm:$0xff] }
 0x2e6   :  { %v1427_v27 = vld [vmem:[#allocation8 + $0x1978] sm:$0xff] }
 0x2e7   :  { %4377 = vmatpush1.bf16.msra.mxu0 %v4376_v43  ;;  %v4392_v43 = vpack.c.bf16 %v1360_v39, %v1352_v37  ;;  %v1416_v37 = vld [vmem:[#allocation8 + $0x1920] sm:$0xff] }
 0x2e8   :  { %4633 = vmatpush1.bf16.msra.mxu1 %v4632_v45  ;;  %4379 = vmatprep.subr.bf16.mxu0 %v4378_v46  ;;  %v4648_v45 = vpack.c.bf16 %v1362_v60, %v1354_v54  ;;  %v4394_v46 = vpack.c.bf16 %v1377_v5, %v1369_v42  ;;  %v1424_v39 = vld [vmem:[#allocation8 + $0x1960] sm:$0xff]  ;;  %v1418_v54 = vld [vmem:[#allocation8 + $0x1930] sm:$0xff]  ;;  %v1433_v60 = vld [vmem:[#allocation8 + $0x19a8] sm:$0xff] }
 0x2e9   :  { %4635 = vmatprep.subr.bf16.mxu1 %v4634_v57  ;;  %v4650_v57 = vpack.c.bf16 %v1379_v22, %v1371_v11  ;;  %v1441_v42 = vld [vmem:[#allocation8 + $0x19e8] sm:$0xff]  ;;  %v1443_v5 = vld [vmem:[#allocation8 + $0x19f8] sm:$0xff]  ;;  %v4408_v11 = vpack.c.bf16 %v1424_v39, %v1416_v37  ;;  %v1480_v37 = vld [vmem:[#allocation8 + $0x1b20] sm:$0xff] }
 0x2ea   :  { %v1488_v39 = vld [vmem:[#allocation8 + $0x1b60] sm:$0xff] }
 0x2eb   :  { %4381 = vmatpush1.bf16.msra.mxu0 %v4380_v7  ;;  %v4396_v7 = vpack.c.bf16 %v1376_v50, %v1368_v47  ;;  %v1434_v47 = vld [vmem:[#allocation8 + $0x19b0] sm:$0xff] }
 0x2ec   :  { %4637 = vmatpush1.bf16.msra.mxu1 %v4636_v32  ;;  %4383 = vmatprep.subr.bf16.mxu0 %v4382_v56  ;;  %v4652_v32 = vpack.c.bf16 %v1378_v4, %v1370_v55  ;;  %v4398_v56 = vpack.c.bf16 %v1393_v44, %v1385_v31  ;;  %v1442_v55 = vld [vmem:[#allocation8 + $0x19f0] sm:$0xff]  ;;  %v1451_v4 = vld [vmem:[#allocation8 + $0x1a38] sm:$0xff] }
 0x2ed   :  { %4639 = vmatprep.subr.bf16.mxu1 %v4638_v3  ;;  %v1386_v3 = vld [vmem:[#allocation8 + $0x1830] sm:$0xff]  ;;  %v1459_v31 = vld [vmem:[#allocation8 + $0x1a78] sm:$0xff] }
 0x2ef   :  { %4385 = vmatpush1.bf16.msra.mxu0 %v4384_v52  ;;  %v4400_v52 = vpack.c.bf16 %v1392_v0, %v1384_v58  ;;  %v1465_v58 = vld [vmem:[#allocation8 + $0x1aa8] sm:$0xff] }
 0x2f0   :  { %4641 = vmatpush1.bf16.msra.mxu1 %v4640_v13  ;;  %4387 = vmatprep.subr.bf16.mxu0 %v4386_v14  ;;  %v4656_v13 = vpack.c.bf16 %v1394_v33, %v1386_v3  ;;  %v4402_v14 = vpack.c.bf16 %v1409_v51, %v1401_v17  ;;  %v1473_v0 = vld [vmem:[#allocation8 + $0x1ae8] sm:$0xff]  ;;  %v1467_v3 = vld [vmem:[#allocation8 + $0x1ab8] sm:$0xff] }
 0x2f1   :  { %4643 = vmatprep.subr.bf16.mxu1 %v4642_v59  ;;  %v4658_v59 = vpack.c.bf16 %v1411_v10, %v1403_v9  ;;  %v1475_v33 = vld [vmem:[#allocation8 + $0x1af8] sm:$0xff]  ;;  %v4418_v9 = vpack.c.bf16 %v1473_v0, %v1465_v58  ;;  %v1464_v10 = vld [vmem:[#allocation8 + $0x1aa0] sm:$0xff]  ;;  %v1514_v0 = vld [vmem:[#allocation8 + $0x1c30] sm:$0xff] }
 0x2f2   :  { %v1520_v58 = vld [vmem:[#allocation8 + $0x1c60] sm:$0xff] }
 0x2f3   :  { %4389 = vmatpush1.bf16.msra.mxu0 %v4388_v29  ;;  %v4404_v29 = vpack.c.bf16 %v1408_v19, %v1400_v41  ;;  %v1474_v41 = vld [vmem:[#allocation8 + $0x1af0] sm:$0xff]  ;;  %v1481_v19 = vld [vmem:[#allocation8 + $0x1b28] sm:$0xff] }
 0x2f4   :  { %4645 = vmatpush1.bf16.msra.mxu1 %v4644_v30  ;;  %4391 = vmatprep.subr.bf16.mxu0 %v4390_v35  ;;  %v4660_v30 = vpack.c.bf16 %v1410_v21, %v1402_v20  ;;  %v4406_v35 = vpack.c.bf16 %v1425_v12, %v1417_v24  ;;  %v1489_v20 = vld [vmem:[#allocation8 + $0x1b68] sm:$0xff]  ;;  %v1483_v24 = vld [vmem:[#allocation8 + $0x1b38] sm:$0xff] }
 0x2f5   :  { %4647 = vmatprep.subr.bf16.mxu1 %v4646_v40  ;;  %v4662_v40 = vpack.c.bf16 %v1427_v27, %v1419_v25  ;;  %v1491_v12 = vld [vmem:[#allocation8 + $0x1b78] sm:$0xff] }
 0x2f7   :  { %4393 = vmatpush1.bf16.msra.mxu0 %v4392_v43  ;;  %v4410_v43 = vpack.c.bf16 %v1441_v42, %v1433_v60  ;;  %v1497_v60 = vld [vmem:[#allocation8 + $0x1ba8] sm:$0xff] }
 0x2f8   :  { %4649 = vmatpush1.bf16.msra.mxu1 %v4648_v45  ;;  %4395 = vmatprep.subr.bf16.mxu0 %v4394_v46  ;;  %v1432_v45 = vld [vmem:[#allocation8 + $0x19a0] sm:$0xff]  ;;  %v1505_v42 = vld [vmem:[#allocation8 + $0x1be8] sm:$0xff] }
 0x2f9   :  { %4651 = vmatprep.subr.bf16.mxu1 %v4650_v57  ;;  %v1440_v46 = vld [vmem:[#allocation8 + $0x19e0] sm:$0xff]  ;;  %v1449_v57 = vld [vmem:[#allocation8 + $0x1a28] sm:$0xff] }
 0x2fa   :  { %v4412_v44 = vpack.c.bf16 %v1440_v46, %v1432_v45  ;;  %v4424_v46 = vpack.c.bf16 %v1488_v39, %v1480_v37  ;;  %v1555_v37 = vld [vmem:[#allocation8 + $0x1d78] sm:$0xff] }
 0x2fb   :  { %4397 = vmatpush1.bf16.msra.mxu0 %v4396_v7  ;;  %v1456_v7 = vld [vmem:[#allocation8 + $0x1a60] sm:$0xff] }
 0x2fc   :  { %4653 = vmatpush1.bf16.msra.mxu1 %v4652_v32  ;;  %4399 = vmatprep.subr.bf16.mxu0 %v4398_v56  ;;  %v1450_v32 = vld [vmem:[#allocation8 + $0x1a30] sm:$0xff]  ;;  %v4670_v56 = vpack.c.bf16 %v1459_v31, %v1451_v4  ;;  %v4416_v17 = vpack.c.bf16 %v1456_v7, %v1448_v63  ;;  %v1523_v63 = vld [vmem:[#allocation8 + $0x1c78] sm:$0xff] }
 0x2fd   :  { %4655 = vmatprep.subr.bf16.mxu1 %v4654_v34  ;;  %v1458_v34 = vld [vmem:[#allocation8 + $0x1a70] sm:$0xff] }
 0x2fe   :  { %2513 = vmatmul.mubr.f32.vlgmr.msra.gmra.mrb[12].mxu0 %v5396_v53  ;;  %v4672_v51 = vpack.c.bf16 %v1458_v34, %v1450_v32  ;;  %v1506_v31 = vld [vmem:[#allocation8 + $0x1bf0] sm:$0xff]  ;;  %v1512_v34 = vld [vmem:[#allocation8 + $0x1c20] sm:$0xff] }
 0x2ff   :  { %2821 = vmatmul.mubr.f32.vlgmr.msra.gmra.mrb[12].mxu1 %v5396_v53  ;;  %2518 = vmatprep.mubr.f32.mxu0 %v5399_v8  ;;  %v1426_v53 = vld [vmem:[#allocation8 + $0x1970] sm:$0xff] }
 0x300   :  { %4401 = vmatpush1.bf16.msra.mxu0 %v4400_v52  ;;  %2826 = vmatprep.mubr.f32.mxu1 %v5399_v8  ;;  %v1435_v8 = vld [vmem:[#allocation8 + $0x19b8] sm:$0xff]  ;;  %v4664_v22 = vpack.c.bf16 %v1426_v53, %v1418_v54  ;;  %v1472_v52 = vld [vmem:[#allocation8 + $0x1ae0] sm:$0xff]  ;;  %v1482_v54 = vld [vmem:[#allocation8 + $0x1b30] sm:$0xff] }
 0x301   :  { %4657 = vmatpush1.bf16.msra.mxu1 %v4656_v13  ;;  %4403 = vmatprep.subr.bf16.mxu0 %v4402_v14  ;;  %v4666_v50 = vpack.c.bf16 %v1443_v5, %v1435_v8  ;;  %v1466_v13 = vld [vmem:[#allocation8 + $0x1ab0] sm:$0xff]  ;;  %v4674_v14 = vpack.c.bf16 %v1475_v33, %v1467_v3 }
 0x302   :  { %2519 = vmatmul.mubr.f32.gmra.mrb[14].mxu0 %v5405_v6  ;;  %4659 = vmatprep.subr.bf16.mxu1 %v4658_v59  ;;  %v1490_v53 = vld [vmem:[#allocation8 + $0x1b70] sm:$0xff] }
 0x303   :  { %2827 = vmatmul.mubr.f32.gmra.mrb[14].mxu1 %v5405_v6  ;;  %2589 = vmatprep.mubr.f32.mxu0 %v5407_v38  ;;  %v1457_v6 = vld [vmem:[#allocation8 + $0x1a68] sm:$0xff]  ;;  %v1522_v33 = vld [vmem:[#allocation8 + $0x1c70] sm:$0xff] }
 0x304   :  { %4405 = vmatpush1.bf16.msra.mxu0 %v4404_v29  ;;  %2897 = vmatprep.mubr.f32.mxu1 %v5407_v38  ;;  %v4668_v38 = vpack.c.bf16 %v1442_v55, %v1434_v47  ;;  %v4414_v62 = vpack.c.bf16 %v1457_v6, %v1449_v57  ;;  %v4420_v29 = vpack.c.bf16 %v1472_v52, %v1464_v10  ;;  %v1496_v55 = vld [vmem:[#allocation8 + $0x1ba0] sm:$0xff]  ;;  %v1498_v6 = vld [vmem:[#allocation8 + $0x1bb0] sm:$0xff]  ;;  %v1539_v10 = vld [vmem:[#allocation8 + $0x1cf8] sm:$0xff] }
 0x305   :  { %4661 = vmatpush1.bf16.msra.mxu1 %v4660_v30  ;;  %4407 = vmatprep.subr.bf16.mxu0 %v4406_v35  ;;  %v4676_v30 = vpack.c.bf16 %v1474_v41, %v1466_v13  ;;  %v4422_v35 = vpack.c.bf16 %v1489_v20, %v1481_v19  ;;  %v4680_v47 = vpack.c.bf16 %v1490_v53, %v1482_v54  ;;  %v1504_v57 = vld [vmem:[#allocation8 + $0x1be0] sm:$0xff]  ;;  %v1530_v20 = vld [vmem:[#allocation8 + $0x1cb0] sm:$0xff] }
 0x306   :  { %4663 = vmatprep.subr.bf16.mxu1 %v4662_v40  ;;  %v4678_v40 = vpack.c.bf16 %v1491_v12, %v1483_v24  ;;  %v4428_v7 = vpack.c.bf16 %v1504_v57, %v1496_v55  ;;  %v4684_v32 = vpack.c.bf16 %v1506_v31, %v1498_v6  ;;  %v4432_v52 = vpack.c.bf16 %v1520_v58, %v1512_v34  ;;  %v1528_v41 = vld [vmem:[#allocation8 + $0x1ca0] sm:$0xff]  ;;  %v1538_v12 = vld [vmem:[#allocation8 + $0x1cf0] sm:$0xff]  ;;  %v1571_v55 = vld [vmem:[#allocation8 + $0x1df8] sm:$0xff] }
 0x307   :  { %v4688_v13 = vpack.c.bf16 %v1522_v33, %v1514_v0  ;;  %v1536_v19 = vld [vmem:[#allocation8 + $0x1ce0] sm:$0xff]  ;;  %v4692_v54 = vpack.c.bf16 %v1538_v12, %v1530_v20  ;;  %v1587_v34 = vld [vmem:[#allocation8 + $0x1e78] sm:$0xff] }
 0x308   :  { %4409 = vmatpush1.bf16.msra.mxu0 %v4408_v11  ;;  %v1499_v11 = vld [vmem:[#allocation8 + $0x1bb8] sm:$0xff]  ;;  %v4436_v39 = vpack.c.bf16 %v1536_v19, %v1528_v41  ;;  %v1544_v53 = vld [vmem:[#allocation8 + $0x1d20] sm:$0xff] }
 0x309   :  { %4665 = vmatpush1.bf16.msra.mxu1 %v4664_v22  ;;  %4411 = vmatprep.subr.bf16.mxu0 %v4410_v43  ;;  %v1507_v22 = vld [vmem:[#allocation8 + $0x1bf8] sm:$0xff]  ;;  %v1560_v31 = vld [vmem:[#allocation8 + $0x1da0] sm:$0xff] }
 0x30a   :  { %4667 = vmatprep.subr.bf16.mxu1 %v4666_v50  ;;  %v4426_v50 = vpack.c.bf16 %v1505_v42, %v1497_v60  ;;  %v4682_v4 = vpack.c.bf16 %v1507_v22, %v1499_v11  ;;  %v1552_v60 = vld [vmem:[#allocation8 + $0x1d60] sm:$0xff]  ;;  %v1546_v42 = vld [vmem:[#allocation8 + $0x1d30] sm:$0xff]  ;;  %v1603_v41 = vld [vmem:[#allocation8 + $0x1ef8] sm:$0xff] }
 0x30b   :  { %v1554_v22 = vld [vmem:[#allocation8 + $0x1d70] sm:$0xff]  ;;  %v4440_v57 = vpack.c.bf16 %v1552_v60, %v1544_v53  ;;  %v1576_v33 = vld [vmem:[#allocation8 + $0x1e20] sm:$0xff]  ;;  %v1619_v53 = vld [vmem:[#allocation8 + $0x1f78] sm:$0xff] }
 0x30c   :  { %4413 = vmatpush1.bf16.msra.mxu0 %v4412_v44  ;;  %v1513_v44 = vld [vmem:[#allocation8 + $0x1c28] sm:$0xff]  ;;  %v4696_v6 = vpack.c.bf16 %v1554_v22, %v1546_v42  ;;  %v1592_v12 = vld [vmem:[#allocation8 + $0x1ea0] sm:$0xff] }
 0x30d   :  { %4669 = vmatpush1.bf16.msra.mxu1 %v4668_v38  ;;  %4415 = vmatprep.subr.bf16.mxu0 %v4414_v62  ;;  %v1521_v38 = vld [vmem:[#allocation8 + $0x1c68] sm:$0xff]  ;;  %v1515_v62 = vld [vmem:[#allocation8 + $0x1c38] sm:$0xff]  ;;  %v1608_v22 = vld [vmem:[#allocation8 + $0x1f20] sm:$0xff] }
 0x30e   :  { %4671 = vmatprep.subr.bf16.mxu1 %v4670_v56  ;;  %v4430_v56 = vpack.c.bf16 %v1521_v38, %v1513_v44  ;;  %v4686_v3 = vpack.c.bf16 %v1523_v63, %v1515_v62  ;;  %v1568_v44 = vld [vmem:[#allocation8 + $0x1de0] sm:$0xff]  ;;  %v1562_v38 = vld [vmem:[#allocation8 + $0x1db0] sm:$0xff] }
 0x30f   :  { %v5461_v59 = vpop.f32.mrb[8].mxu0  ;;  %v5463_v21 = vpop.f32.mrb[8].mxu1  ;;  %v1570_v63 = vld [vmem:[#allocation8 + $0x1df0] sm:$0xff]  ;;  %v4444_v58 = vpack.c.bf16 %v1568_v44, %v1560_v31  ;;  %v1635_v31 = vld [vmem:[#allocation8 + $0x1ff8] sm:$0xff] }
 0x310   :  { %4417 = vmatpush1.bf16.msra.mxu0 %v4416_v17  ;;  %v5465_v25 = vpop.f32.mrb[9].mxu0  ;;  %v5467_v27 = vpop.f32.mrb[9].mxu1  ;;  %v1529_v17 = vld [vmem:[#allocation8 + $0x1ca8] sm:$0xff]  ;;  %v4700_v0 = vpack.c.bf16 %v1570_v63, %v1562_v38  ;;  %v1624_v63 = vld [vmem:[#allocation8 + $0x1fa0] sm:$0xff] }
 0x311   :  { %4673 = vmatpush1.bf16.msra.mxu1 %v4672_v51  ;;  %4419 = vmatprep.subr.bf16.mxu0 %v4418_v9  ;;  %v1537_v51 = vld [vmem:[#allocation8 + $0x1ce8] sm:$0xff]  ;;  %v1531_v9 = vld [vmem:[#allocation8 + $0x1cb8] sm:$0xff] }
 0x312   :  { %4675 = vmatprep.subr.bf16.mxu1 %v4674_v14  ;;  %v4434_v14 = vpack.c.bf16 %v1537_v51, %v1529_v17  ;;  %v4690_v24 = vpack.c.bf16 %v1539_v10, %v1531_v9  ;;  %v1584_v17 = vld [vmem:[#allocation8 + $0x1e60] sm:$0xff]  ;;  %v1578_v51 = vld [vmem:[#allocation8 + $0x1e30] sm:$0xff] }
 0x313   :  { %v5469_v8 = vpop.f32.mrb[10].mxu0  ;;  %v5471_v5 = vpop.f32.mrb[10].mxu1  ;;  %v1586_v10 = vld [vmem:[#allocation8 + $0x1e70] sm:$0xff]  ;;  %v4448_v19 = vpack.c.bf16 %v1584_v17, %v1576_v33  ;;  %v2974_v33 = vld [vmem:[#allocation11 + $0x180] sm:$0xff] }
 0x314   :  { %4421 = vmatpush1.bf16.msra.mxu0 %v4420_v29  ;;  %v5473_v43 = vpop.f32.mrb[11].mxu0  ;;  %v5475_v45 = vpop.f32.mrb[11].mxu1  ;;  %v1545_v29 = vld [vmem:[#allocation8 + $0x1d28] sm:$0xff]  ;;  %v4704_v20 = vpack.c.bf16 %v1586_v10, %v1578_v51  ;;  %v2975_v17 = vld [vmem:[#allocation11 + $0x188] sm:$0xff] }
 0x315   :  { %4677 = vmatpush1.bf16.msra.mxu1 %v4676_v30  ;;  %4423 = vmatprep.subr.bf16.mxu0 %v4422_v35  ;;  %v1553_v30 = vld [vmem:[#allocation8 + $0x1d68] sm:$0xff]  ;;  %v1547_v35 = vld [vmem:[#allocation8 + $0x1d38] sm:$0xff] }
 0x316   :  { %4679 = vmatprep.subr.bf16.mxu1 %v4678_v40  ;;  %v4438_v40 = vpack.c.bf16 %v1553_v30, %v1545_v29  ;;  %v4694_v11 = vpack.c.bf16 %v1555_v37, %v1547_v35  ;;  %v1600_v29 = vld [vmem:[#allocation8 + $0x1ee0] sm:$0xff]  ;;  %v1594_v30 = vld [vmem:[#allocation8 + $0x1eb0] sm:$0xff] }
 0x317   :  { %v1602_v37 = vld [vmem:[#allocation8 + $0x1ef0] sm:$0xff]  ;;  %v4452_v60 = vpack.c.bf16 %v1600_v29, %v1592_v12  ;;  %v2944_v12 = vld [vmem:[#allocation11 + $0x90] sm:$0xff]  ;;  %v2945_v29 = vld [vmem:[#allocation11 + $0x98] sm:$0xff] }
 0x318   :  { %4425 = vmatpush1.bf16.msra.mxu0 %v4424_v46  ;;  %v1561_v46 = vld [vmem:[#allocation8 + $0x1da8] sm:$0xff]  ;;  %v4708_v42 = vpack.c.bf16 %v1602_v37, %v1594_v30  ;;  %v2976_v30 = vld [vmem:[#allocation11 + $0x190] sm:$0xff] }
 0x319   :  { %4681 = vmatpush1.bf16.msra.mxu1 %v4680_v47  ;;  %4427 = vmatprep.subr.bf16.mxu0 %v4426_v50  ;;  %v1569_v47 = vld [vmem:[#allocation8 + $0x1de8] sm:$0xff]  ;;  %v1563_v50 = vld [vmem:[#allocation8 + $0x1db8] sm:$0xff] }
 0x31a   :  { %4683 = vmatprep.subr.bf16.mxu1 %v4682_v4  ;;  %v4442_v4 = vpack.c.bf16 %v1569_v47, %v1561_v46  ;;  %v4698_v62 = vpack.c.bf16 %v1571_v55, %v1563_v50  ;;  %v1616_v46 = vld [vmem:[#allocation8 + $0x1f60] sm:$0xff]  ;;  %v1610_v47 = vld [vmem:[#allocation8 + $0x1f30] sm:$0xff] }
 0x31b   :  { %v1618_v55 = vld [vmem:[#allocation8 + $0x1f70] sm:$0xff]  ;;  %v4456_v44 = vpack.c.bf16 %v1616_v46, %v1608_v22  ;;  %v2946_v22 = vld [vmem:[#allocation11 + $0xa0] sm:$0xff] }
 0x31c   :  { %4429 = vmatpush1.bf16.msra.mxu0 %v4428_v7  ;;  %v1577_v7 = vld [vmem:[#allocation8 + $0x1e28] sm:$0xff]  ;;  %v4712_v38 = vpack.c.bf16 %v1618_v55, %v1610_v47  ;;  %v2947_v46 = vld [vmem:[#allocation11 + $0xa8] sm:$0xff] }
 0x31d   :  { %4685 = vmatpush1.bf16.msra.mxu1 %v4684_v32  ;;  %4431 = vmatprep.subr.bf16.mxu0 %v4430_v56  ;;  %v1585_v32 = vld [vmem:[#allocation8 + $0x1e68] sm:$0xff]  ;;  %v1579_v56 = vld [vmem:[#allocation8 + $0x1e38] sm:$0xff]  ;;  %v2979_v47 = vld [vmem:[#allocation11 + $0x1a8] sm:$0xff] }
 0x31e   :  { %4687 = vmatprep.subr.bf16.mxu1 %v4686_v3  ;;  %v4446_v3 = vpack.c.bf16 %v1585_v32, %v1577_v7  ;;  %v4702_v9 = vpack.c.bf16 %v1587_v34, %v1579_v56  ;;  %v1632_v7 = vld [vmem:[#allocation8 + $0x1fe0] sm:$0xff]  ;;  %v1626_v32 = vld [vmem:[#allocation8 + $0x1fb0] sm:$0xff] }
 0x31f   :  { %v1634_v34 = vld [vmem:[#allocation8 + $0x1ff0] sm:$0xff]  ;;  %v4460_v51 = vpack.c.bf16 %v1632_v7, %v1624_v63  ;;  %v2949_v63 = vld [vmem:[#allocation11 + $0xb8] sm:$0xff] }
 0x320   :  { %4433 = vmatpush1.bf16.msra.mxu0 %v4432_v52  ;;  %v1593_v52 = vld [vmem:[#allocation8 + $0x1ea8] sm:$0xff]  ;;  %v2981_v7 = vld [vmem:[#allocation11 + $0x1b8] sm:$0xff] }
 0x321   :  { %4689 = vmatpush1.bf16.msra.mxu1 %v4688_v13  ;;  %4435 = vmatprep.subr.bf16.mxu0 %v4434_v14  ;;  %v1601_v13 = vld [vmem:[#allocation8 + $0x1ee8] sm:$0xff]  ;;  %v1595_v14 = vld [vmem:[#allocation8 + $0x1eb8] sm:$0xff] }
 0x322   :  { %4691 = vmatprep.subr.bf16.mxu1 %v4690_v24  ;;  %v4450_v24 = vpack.c.bf16 %v1601_v13, %v1593_v52  ;;  %v4706_v35 = vpack.c.bf16 %v1603_v41, %v1595_v14  ;;  %v4750_v13 = vpack.c.bf16 %v2975_v17, %v2974_v33  ;;  %v2926_v14 = vld [vmem:[#allocation11] sm:$0xff]  ;;  %v2927_v41 = vld [vmem:[#allocation11 + $0x8] sm:$0xff]  ;;  %v2964_v33 = vld [vmem:[#allocation11 + $0x130] sm:$0xff] }
 0x324   :  { %4437 = vmatpush1.bf16.msra.mxu0 %v4436_v39  ;;  %v1609_v39 = vld [vmem:[#allocation8 + $0x1f28] sm:$0xff] }
 0x325   :  { %4693 = vmatpush1.bf16.msra.mxu1 %v4692_v54  ;;  %4439 = vmatprep.subr.bf16.mxu0 %v4438_v40  ;;  %v1617_v54 = vld [vmem:[#allocation8 + $0x1f68] sm:$0xff]  ;;  %v1611_v40 = vld [vmem:[#allocation8 + $0x1f38] sm:$0xff] }
 0x326   :  { %4695 = vmatprep.subr.bf16.mxu1 %v4694_v11  ;;  %v4454_v11 = vpack.c.bf16 %v1617_v54, %v1609_v39  ;;  %v4710_v50 = vpack.c.bf16 %v1619_v53, %v1611_v40  ;;  %v4722_v54 = vpack.c.bf16 %v2945_v29, %v2944_v12  ;;  %v2928_v40 = vld [vmem:[#allocation11 + $0x10] sm:$0xff]  ;;  %v2929_v53 = vld [vmem:[#allocation11 + $0x18] sm:$0xff]  ;;  %v2935_v12 = vld [vmem:[#allocation11 + $0x48] sm:$0xff] }
 0x327   :  { %v2966_v29 = vld [vmem:[#allocation11 + $0x140] sm:$0xff] }
 0x328   :  { %4441 = vmatpush1.bf16.msra.mxu0 %v4440_v57  ;;  %v1625_v57 = vld [vmem:[#allocation8 + $0x1fa8] sm:$0xff] }
 0x329   :  { %4697 = vmatpush1.bf16.msra.mxu1 %v4696_v6  ;;  %4443 = vmatprep.subr.bf16.mxu0 %v4442_v4  ;;  %v1633_v6 = vld [vmem:[#allocation8 + $0x1fe8] sm:$0xff]  ;;  %v1627_v4 = vld [vmem:[#allocation8 + $0x1fb8] sm:$0xff] }
 0x32a   :  { %4699 = vmatprep.subr.bf16.mxu1 %v4698_v62  ;;  %v4458_v62 = vpack.c.bf16 %v1633_v6, %v1625_v57  ;;  %v4714_v56 = vpack.c.bf16 %v1635_v31, %v1627_v4  ;;  %v4726_v57 = vpack.c.bf16 %v2947_v46, %v2946_v22  ;;  %v2930_v6 = vld [vmem:[#allocation11 + $0x20] sm:$0xff]  ;;  %v2931_v4 = vld [vmem:[#allocation11 + $0x28] sm:$0xff]  ;;  %v2969_v46 = vld [vmem:[#allocation11 + $0x158] sm:$0xff] }
 0x32b   :  { %v2962_v31 = vld [vmem:[#allocation11 + $0x120] sm:$0xff] }
 0x32c   :  { %4445 = vmatpush1.bf16.msra.mxu0 %v4444_v58  ;;  %v2942_v58 = vld [vmem:[#allocation11 + $0x80] sm:$0xff] }
 0x32d   :  { %4701 = vmatpush1.bf16.msra.mxu1 %v4700_v0  ;;  %4447 = vmatprep.subr.bf16.mxu0 %v4446_v3  ;;  %v2943_v0 = vld [vmem:[#allocation11 + $0x88] sm:$0xff]  ;;  %v5477_v3 = vld [vmem:[#allocation10] sm:$0xff] }
 0x32e   :  { %4703 = vmatprep.subr.bf16.mxu1 %v4702_v9  ;;  %v4716_v9 = vpack.c.bf16 %v1634_v34, %v1626_v32  ;;  %v4718_v10 = vpack.c.bf16 %v2943_v0, %v2942_v58  ;;  %v5482_v52 = vrot.slane %v5477_v3, %v254_v18  ;;  %v4720_v18 = vpack.c.bf16 %v2927_v41, %v2926_v14  ;;  %v2932_v58 = vld [vmem:[#allocation11 + $0x30] sm:$0xff]  ;;  %v2933_v0 = vld [vmem:[#allocation11 + $0x38] sm:$0xff] }
 0x32f   :  { %v4728_v32 = vpack.c.bf16 %v2931_v4, %v2930_v6  ;;  %v4732_v14 = vpack.c.bf16 %v2933_v0, %v2932_v58  ;;  %v2938_v4 = vld [vmem:[#allocation11 + $0x60] sm:$0xff]  ;;  %v2940_v0 = vld [vmem:[#allocation11 + $0x70] sm:$0xff] }
 0x330   :  { %4449 = vmatpush1.bf16.msra.mxu0 %v4448_v19  ;;  %v2958_v19 = vld [vmem:[#allocation11 + $0x100] sm:$0xff]  ;;  %v4847_v37 = vadd.f32 %v5465_v25, %v5482_v52 }
 0x331   :  { %4705 = vmatpush1.bf16.msra.mxu1 %v4704_v20  ;;  %4451 = vmatprep.subr.bf16.mxu0 %v4450_v24  ;;  %v5487_v20 = vrot.slane %v5477_v3, %v262_v49  ;;  %v2959_v24 = vld [vmem:[#allocation11 + $0x108] sm:$0xff]  ;;  %v2978_v25 = vld [vmem:[#allocation11 + $0x1a0] sm:$0xff] }
 0x332   :  { %4707 = vmatprep.subr.bf16.mxu1 %v4706_v35  ;;  %v2977_v35 = vld [vmem:[#allocation11 + $0x198] sm:$0xff]  ;;  %v4752_v39 = vpack.c.bf16 %v2959_v24, %v2958_v19  ;;  %v2911_v55 = vmax.f32 %v4847_v37, 0.0  ;;  %v2934_v24 = vld [vmem:[#allocation11 + $0x40] sm:$0xff] }
 0x333   :  { %v4851_v49 = vadd.f32 %v5467_v27, %v5487_v20  ;;  %v2953_v37 = vld [vmem:[#allocation11 + $0xd8] sm:$0xff] }
 0x334   :  { %4453 = vmatpush1.bf16.msra.mxu0 %v4452_v60  ;;  %v2960_v60 = vld [vmem:[#allocation11 + $0x110] sm:$0xff] }
 0x335   :  { %4709 = vmatpush1.bf16.msra.mxu1 %v4708_v42  ;;  %4455 = vmatprep.subr.bf16.mxu0 %v4454_v11  ;;  %v4754_v42 = vpack.c.bf16 %v2977_v35, %v2976_v30  ;;  %v2961_v11 = vld [vmem:[#allocation11 + $0x118] sm:$0xff]  ;;  %v2967_v35 = vld [vmem:[#allocation11 + $0x148] sm:$0xff] }
 0x336   :  { %4711 = vmatprep.subr.bf16.mxu1 %v4710_v50  ;;  %v4724_v50 = vpack.c.bf16 %v2929_v53, %v2928_v40  ;;  %v4756_v27 = vpack.c.bf16 %v2961_v11, %v2960_v60  ;;  %v4736_v40 = vpack.c.bf16 %v2935_v12, %v2934_v24  ;;  %v4768_v53 = vpack.c.bf16 %v2967_v35, %v2966_v29  ;;  %v2968_v11 = vld [vmem:[#allocation11 + $0x150] sm:$0xff]  ;;  %v2990_v29 = vld [vmem:[#allocation11 + $0x200] sm:$0xff] }
 0x338   :  { %4457 = vmatpush1.bf16.msra.mxu0 %v4456_v44  ;;  %v2913_v44 = vmax.f32 %v4851_v49, 0.0  ;;  %v2936_v49 = vld [vmem:[#allocation11 + $0x50] sm:$0xff] }
 0x339   :  { %4713 = vmatpush1.bf16.msra.mxu1 %v4712_v38  ;;  %4459 = vmatprep.subr.bf16.mxu0 %v4458_v62  ;;  %v2963_v38 = vld [vmem:[#allocation11 + $0x128] sm:$0xff]  ;;  %v2948_v62 = vld [vmem:[#allocation11 + $0xb0] sm:$0xff] }
 0x33a   :  { %4715 = vmatprep.subr.bf16.mxu1 %v4714_v56  ;;  %v4760_v56 = vpack.c.bf16 %v2963_v38, %v2962_v31  ;;  %v4730_v34 = vpack.c.bf16 %v2949_v63, %v2948_v62  ;;  %v2939_v31 = vld [vmem:[#allocation11 + $0x68] sm:$0xff]  ;;  %v2956_v62 = vld [vmem:[#allocation11 + $0xf0] sm:$0xff]  ;;  %v2957_v63 = vld [vmem:[#allocation11 + $0xf8] sm:$0xff] }
 0x33b   :  { %v2971_v38 = vld [vmem:[#allocation11 + $0x168] sm:$0xff]  ;;  %v4746_v58 = vpack.c.bf16 %v2957_v63, %v2956_v62  ;;  %v3026_v63 = vld [vmem:[#allocation11 + $0x320] sm:$0xff] }
 0x33c   :  { %4461 = vmatpush1.bf16.msra.mxu0 %v4460_v51  ;;  %v2965_v51 = vld [vmem:[#allocation11 + $0x138] sm:$0xff]  ;;  %v2995_v62 = vld [vmem:[#allocation11 + $0x228] sm:$0xff] }
 0x33d   :  { %4717 = vmatpush1.bf16.msra.mxu1 %v4716_v9  ;;  %4719 = vmatprep.subr.bf16.mxu0 %v4718_v10  ;;  %v2950_v9 = vld [vmem:[#allocation11 + $0xc0] sm:$0xff]  ;;  %v2951_v10 = vld [vmem:[#allocation11 + $0xc8] sm:$0xff]  ;;  %v4764_v41 = vpack.c.bf16 %v2965_v51, %v2964_v33  ;;  %v2941_v33 = vld [vmem:[#allocation11 + $0x78] sm:$0xff]  ;;  %v1649_v51 = vrot.slane %v5477_v3, %v258_v61  ;;  %v4849_v61 = vadd.f32 %v5473_v43, %v5482_v52 }
 0x33e   :  { %4751 = vmatprep.subr.bf16.mxu1 %v4750_v13  ;;  %v2982_v13 = vld [vmem:[#allocation11 + $0x1c0] sm:$0xff]  ;;  %v4734_v19 = vpack.c.bf16 %v2951_v10, %v2950_v9  ;;  %v2973_v10 = vld [vmem:[#allocation11 + $0x178] sm:$0xff] }
 0x33f   :  { %2590 = vmatmul.mubr.f32.vlgmr.msra.gmra.mrb[12].mxu0 %v5423_v1 }
 0x340   :  { %2898 = vmatmul.mubr.f32.vlgmr.msra.gmra.mrb[12].mxu1 %v5423_v1  ;;  %2595 = vmatprep.mubr.f32.mxu0 %v5425_v28  ;;  %v4758_v1 = vpack.c.bf16 %v2979_v47, %v2978_v25  ;;  %v2954_v25 = vld [vmem:[#allocation11 + $0xe0] sm:$0xff]  ;;  %v2955_v47 = vld [vmem:[#allocation11 + $0xe8] sm:$0xff] }
 0x341   :  { %2903 = vmatprep.mubr.f32.mxu1 %v5425_v28  ;;  %4721 = vmatpush3.bf16.msra.mxu0 %v4720_v18  ;;  %v2980_v28 = vld [vmem:[#allocation11 + $0x1b0] sm:$0xff]  ;;  %v4742_v6 = vpack.c.bf16 %v2955_v47, %v2954_v25 }
 0x342   :  { %4753 = vmatpush3.bf16.msra.mxu1 %v4752_v39  ;;  %4723 = vmatprep.subr.bf16.mxu0 %v4722_v54  ;;  %v4762_v17 = vpack.c.bf16 %v2981_v7, %v2980_v28  ;;  %v2952_v18 = vld [vmem:[#allocation11 + $0xd0] sm:$0xff]  ;;  %v2985_v54 = vld [vmem:[#allocation11 + $0x1d8] sm:$0xff] }
 0x343   :  { %2596 = vmatmul.mubr.f32.gmra.mrb[14].mxu0 %v5427_v23  ;;  %4755 = vmatprep.subr.bf16.mxu1 %v4754_v42  ;;  %v2984_v39 = vld [vmem:[#allocation11 + $0x1d0] sm:$0xff]  ;;  %v4738_v60 = vpack.c.bf16 %v2953_v37, %v2952_v18  ;;  %v2937_v42 = vld [vmem:[#allocation11 + $0x58] sm:$0xff]  ;;  %v2991_v18 = vld [vmem:[#allocation11 + $0x208] sm:$0xff] }
 0x344   :  { %2904 = vmatmul.mubr.f32.gmra.mrb[14].mxu1 %v5427_v23  ;;  %3125 = vmatprep.mubr.f32.mxu0 %v2911_v55  ;;  %v2983_v23 = vld [vmem:[#allocation11 + $0x1c8] sm:$0xff]  ;;  %v4770_v22 = vpack.c.bf16 %v2985_v54, %v2984_v39  ;;  %v2988_v28 = vld [vmem:[#allocation11 + $0x1f0] sm:$0xff]  ;;  %v2989_v7 = vld [vmem:[#allocation11 + $0x1f8] sm:$0xff]  ;;  %v4853_v54 = vadd.f32 %v5475_v45, %v5487_v20 }
 0x345   :  { %4725 = vmatpush3.bf16.msra.mxu0 %v4724_v50  ;;  %3200 = vmatprep.mubr.f32.mxu1 %v2913_v44  ;;  %v4766_v30 = vpack.c.bf16 %v2983_v23, %v2982_v13  ;;  %v2986_v50 = vld [vmem:[#allocation11 + $0x1e0] sm:$0xff]  ;;  %v2987_v55 = vld [vmem:[#allocation11 + $0x1e8] sm:$0xff]  ;;  %v4778_v9 = vpack.c.bf16 %v2989_v7, %v2988_v28  ;;  %v2992_v25 = vld [vmem:[#allocation11 + $0x210] sm:$0xff] }
 0x346   :  { %4757 = vmatpush3.bf16.msra.mxu1 %v4756_v27  ;;  %4727 = vmatprep.subr.bf16.mxu0 %v4726_v57  ;;  %v4740_v27 = vpack.c.bf16 %v2937_v42, %v2936_v49  ;;  %v4772_v57 = vpack.c.bf16 %v2969_v46, %v2968_v11  ;;  %v2970_v44 = vld [vmem:[#allocation11 + $0x160] sm:$0xff]  ;;  %v3007_v23 = vld [vmem:[#allocation11 + $0x288] sm:$0xff]  ;;  %v4852_v11 = vadd.f32 %v5471_v5, %v1649_v51  ;;  %v2993_v45 = vld [vmem:[#allocation11 + $0x218] sm:$0xff]  ;;  %v2921_v47 = vmax.f32 %v4853_v54, 0.0 }
 0x347   :  { %4759 = vmatprep.subr.bf16.mxu1 %v4758_v1  ;;  %v4774_v1 = vpack.c.bf16 %v2987_v55, %v2986_v50  ;;  %v3006_v13 = vld [vmem:[#allocation11 + $0x280] sm:$0xff]  ;;  %v3023_v39 = vld [vmem:[#allocation11 + $0x308] sm:$0xff]  ;;  %v3024_v20 = vld [vmem:[#allocation11 + $0x310] sm:$0xff]  ;;  %v4788_v5 = vpack.c.bf16 %v2993_v45, %v2992_v25 }
 0x348   :  { %v4782_v12 = vpack.c.bf16 %v3007_v23, %v3006_v13  ;;  %v3022_v37 = vld [vmem:[#allocation11 + $0x300] sm:$0xff]  ;;  %v3025_v55 = vld [vmem:[#allocation11 + $0x318] sm:$0xff]  ;;  %v3027_v7 = vld [vmem:[#allocation11 + $0x328] sm:$0xff] }
 0x349   :  { %4729 = vmatpush3.bf16.msra.mxu0 %v4728_v32  ;;  %v4744_v32 = vpack.c.bf16 %v2939_v31, %v2938_v4  ;;  %v4816_v43 = vpack.c.bf16 %v3023_v39, %v3022_v37  ;;  %v2920_v31 = vmax.f32 %v4852_v11, 0.0  ;;  %v3029_v23 = vld [vmem:[#allocation11 + $0x338] sm:$0xff]  ;;  %v3031_v37 = vld [vmem:[#allocation11 + $0x348] sm:$0xff]  ;;  %v3016_v39 = vld [vmem:[#allocation11 + $0x2d0] sm:$0xff] }
 0x34a   :  { %4761 = vmatpush3.bf16.msra.mxu1 %v4760_v56  ;;  %4731 = vmatprep.subr.bf16.mxu0 %v4730_v34  ;;  %v1641_v56 = vrot.slane %v5477_v3, %v250_v16  ;;  %v4776_v34 = vpack.c.bf16 %v2971_v38, %v2970_v44  ;;  %v4748_v16 = vpack.c.bf16 %v2941_v33, %v2940_v0  ;;  %v2994_v38 = vld [vmem:[#allocation11 + $0x220] sm:$0xff]  ;;  %v3017_v54 = vld [vmem:[#allocation11 + $0x2d8] sm:$0xff]  ;;  %v3051_v45 = vld [vmem:[#allocation11 + $0x3e8] sm:$0xff] }
 0x34b   :  { %4763 = vmatprep.subr.bf16.mxu1 %v4762_v17  ;;  %v2972_v17 = vld [vmem:[#allocation11 + $0x170] sm:$0xff]  ;;  %v4820_v44 = vpack.c.bf16 %v3025_v55, %v3024_v20  ;;  %v4792_v0 = vpack.c.bf16 %v2995_v62, %v2994_v38  ;;  %v4824_v33 = vpack.c.bf16 %v3027_v7, %v3026_v63  ;;  %v3033_v11 = vld [vmem:[#allocation11 + $0x358] sm:$0xff]  ;;  %v3050_v25 = vld [vmem:[#allocation11 + $0x3e0] sm:$0xff] }
 0x34c   :  { %v4780_v24 = vpack.c.bf16 %v2973_v10, %v2972_v17  ;;  %v4848_v42 = vadd.f32 %v5469_v8, %v1641_v56  ;;  %v3042_v8 = vld [vmem:[#allocation11 + $0x3a0] sm:$0xff]  ;;  %v3028_v10 = vld [vmem:[#allocation11 + $0x330] sm:$0xff]  ;;  %v4838_v55 = vpack.c.bf16 %v3051_v45, %v3050_v25  ;;  %v3053_v62 = vld [vmem:[#allocation11 + $0x3f8] sm:$0xff] }
 0x34d   :  { %4733 = vmatpush3.bf16.msra.mxu0 %v4732_v14  ;;  %v3038_v14 = vld [vmem:[#allocation11 + $0x380] sm:$0xff]  ;;  %v3004_v63 = vld [vmem:[#allocation11 + $0x270] sm:$0xff] }
 0x34e   :  { %4765 = vmatpush3.bf16.msra.mxu1 %v4764_v41  ;;  %4735 = vmatprep.subr.bf16.mxu0 %v4734_v19  ;;  %v3039_v41 = vld [vmem:[#allocation11 + $0x388] sm:$0xff]  ;;  %v4846_v19 = vadd.f32 %v5461_v59, %v1641_v56  ;;  %v3009_v59 = vld [vmem:[#allocation11 + $0x298] sm:$0xff]  ;;  %v2918_v4 = vmax.f32 %v4848_v42, 0.0  ;;  %v3000_v42 = vld [vmem:[#allocation11 + $0x250] sm:$0xff] }
 0x34f   :  { %4767 = vmatprep.subr.bf16.mxu1 %v4766_v30  ;;  %v4850_v30 = vadd.f32 %v5463_v21, %v1649_v51  ;;  %v4814_v35 = vpack.c.bf16 %v3039_v41, %v3038_v14  ;;  %v4784_v21 = vpack.c.bf16 %v2991_v18, %v2990_v29  ;;  %v3013_v56 = vld [vmem:[#allocation11 + $0x2b8] sm:$0xff]  ;;  %v2996_v51 = vld [vmem:[#allocation11 + $0x230] sm:$0xff]  ;;  %v3014_v14 = vld [vmem:[#allocation11 + $0x2c0] sm:$0xff] }
 0x350   :  { %v2910_v49 = vmax.f32 %v4846_v19, 0.0  ;;  %v3015_v41 = vld [vmem:[#allocation11 + $0x2c8] sm:$0xff] }
 0x351   :  { %4737 = vmatpush3.bf16.msra.mxu0 %v4736_v40  ;;  %v3008_v40 = vld [vmem:[#allocation11 + $0x290] sm:$0xff]  ;;  %v2912_v52 = vmax.f32 %v4850_v30, 0.0  ;;  %v3047_v19 = vld [vmem:[#allocation11 + $0x3c8] sm:$0xff]  ;;  %v4798_v29 = vpack.c.bf16 %v3015_v41, %v3014_v14  ;;  %v2998_v30 = vld [vmem:[#allocation11 + $0x240] sm:$0xff] }
 0x352   :  { %4769 = vmatpush3.bf16.msra.mxu1 %v4768_v53  ;;  %4739 = vmatprep.subr.bf16.mxu0 %v4738_v60  ;;  %v3040_v53 = vld [vmem:[#allocation11 + $0x390] sm:$0xff]  ;;  %v3041_v60 = vld [vmem:[#allocation11 + $0x398] sm:$0xff]  ;;  %v4786_v46 = vpack.c.bf16 %v3009_v59, %v3008_v40 }
 0x353   :  { %4771 = vmatprep.subr.bf16.mxu1 %v4770_v22  ;;  %v2919_v22 = vmax.f32 %v4849_v61, 0.0  ;;  %v4818_v50 = vpack.c.bf16 %v3041_v60, %v3040_v53  ;;  %v2999_v61 = vld [vmem:[#allocation11 + $0x248] sm:$0xff]  ;;  %v3048_v40 = vld [vmem:[#allocation11 + $0x3d0] sm:$0xff]  ;;  %v3049_v59 = vld [vmem:[#allocation11 + $0x3d8] sm:$0xff] }
 0x354   :  { %v4800_v53 = vpack.c.bf16 %v2999_v61, %v2998_v30 }
 0x355   :  { %4741 = vmatpush3.bf16.msra.mxu0 %v4740_v27  ;;  %v3010_v27 = vld [vmem:[#allocation11 + $0x2a0] sm:$0xff] }
 0x356   :  { %4773 = vmatpush3.bf16.msra.mxu1 %v4772_v57  ;;  %4743 = vmatprep.subr.bf16.mxu0 %v4742_v6  ;;  %v3011_v57 = vld [vmem:[#allocation11 + $0x2a8] sm:$0xff] }
 0x357   :  { %4775 = vmatprep.subr.bf16.mxu1 %v4774_v1  ;;  %v3043_v6 = vld [vmem:[#allocation11 + $0x3a8] sm:$0xff]  ;;  %v4790_v1 = vpack.c.bf16 %v3011_v57, %v3010_v27  ;;  %v3002_v27 = vld [vmem:[#allocation11 + $0x260] sm:$0xff] }
 0x358   :  { %v4822_v28 = vpack.c.bf16 %v3043_v6, %v3042_v8  ;;  %v3003_v57 = vld [vmem:[#allocation11 + $0x268] sm:$0xff]  ;;  %v3034_v8 = vld [vmem:[#allocation11 + $0x360] sm:$0xff] }
 0x359   :  { %4745 = vmatpush3.bf16.msra.mxu0 %v4744_v32  ;;  %v3012_v32 = vld [vmem:[#allocation11 + $0x2b0] sm:$0xff]  ;;  %v4808_v6 = vpack.c.bf16 %v3003_v57, %v3002_v27 }
 0x35a   :  { %4777 = vmatpush3.bf16.msra.mxu1 %v4776_v34  ;;  %4747 = vmatprep.subr.bf16.mxu0 %v4746_v58  ;;  %v3044_v34 = vld [vmem:[#allocation11 + $0x3b0] sm:$0xff]  ;;  %v3045_v58 = vld [vmem:[#allocation11 + $0x3b8] sm:$0xff]  ;;  %v4794_v17 = vpack.c.bf16 %v3013_v56, %v3012_v32 }
 0x35b   :  { %4779 = vmatprep.subr.bf16.mxu1 %v4778_v9  ;;  %v2997_v9 = vld [vmem:[#allocation11 + $0x238] sm:$0xff]  ;;  %v4826_v13 = vpack.c.bf16 %v3045_v58, %v3044_v34  ;;  %v3036_v56 = vld [vmem:[#allocation11 + $0x370] sm:$0xff] }
 0x35c   :  { %v3037_v34 = vld [vmem:[#allocation11 + $0x378] sm:$0xff] }
 0x35d   :  { %4749 = vmatpush3.bf16.msra.mxu0 %v4748_v16  ;;  %v3046_v16 = vld [vmem:[#allocation11 + $0x3c0] sm:$0xff]  ;;  %v4844_v58 = vpack.c.bf16 %v3037_v34, %v3036_v56 }
 0x35e   :  { %4781 = vmatpush3.bf16.msra.mxu1 %v4780_v24  ;;  %4783 = vmatprep.subr.bf16.mxu0 %v4782_v12  ;;  %v4796_v24 = vpack.c.bf16 %v2997_v9, %v2996_v51  ;;  %v4828_v12 = vpack.c.bf16 %v3029_v23, %v3028_v10  ;;  %v4830_v18 = vpack.c.bf16 %v3047_v19, %v3046_v16 }
 0x35f   :  { %4815 = vmatprep.subr.bf16.mxu1 %v4814_v35  ;;  %v3030_v35 = vld [vmem:[#allocation11 + $0x340] sm:$0xff]  ;;  %v1669_v51 = vrot.slane %v5477_v3, %v278_v26 }
 0x360   :  { %3126 = vmatmul.mubr.f32.vlgmr.msra.gmra.mrb[16].mxu0 %v2910_v49  ;;  %v4832_v60 = vpack.c.bf16 %v3031_v37, %v3030_v35  ;;  %v4802_v49 = vpack.c.bf16 %v3017_v54, %v3016_v39 }
 0x361   :  { %3201 = vmatmul.mubr.f32.vlgmr.msra.gmra.mrb[16].mxu1 %v2912_v52  ;;  %3130 = vmatprep.mubr.f32.mxu0 %v2919_v22  ;;  %v4834_v52 = vpack.c.bf16 %v3049_v59, %v3048_v40  ;;  %v3018_v22 = vld [vmem:[#allocation11 + $0x2e0] sm:$0xff] }
 0x362   :  { %3205 = vmatprep.mubr.f32.mxu1 %v2921_v47  ;;  %4785 = vmatpush3.bf16.msra.mxu0 %v4784_v21  ;;  %v3001_v21 = vld [vmem:[#allocation11 + $0x258] sm:$0xff] }
 0x363   :  { %4817 = vmatpush3.bf16.msra.mxu1 %v4816_v43  ;;  %4787 = vmatprep.subr.bf16.mxu0 %v4786_v46  ;;  %v3032_v43 = vld [vmem:[#allocation11 + $0x350] sm:$0xff]  ;;  %v3019_v46 = vld [vmem:[#allocation11 + $0x2e8] sm:$0xff]  ;;  %v4804_v20 = vpack.c.bf16 %v3001_v21, %v3000_v42 }
 0x364   :  { %3131 = vmatmul.mubr.f32.gmra.mrb[18].mxu0 %v2918_v4  ;;  %4819 = vmatprep.subr.bf16.mxu1 %v4818_v50  ;;  %v4836_v47 = vpack.c.bf16 %v3033_v11, %v3032_v43  ;;  %v4806_v50 = vpack.c.bf16 %v3019_v46, %v3018_v22  ;;  %v3035_v4 = vld [vmem:[#allocation11 + $0x368] sm:$0xff] }
 0x365   :  { %3206 = vmatmul.mubr.f32.gmra.mrb[18].mxu1 %v2920_v31  ;;  %v3020_v31 = vld [vmem:[#allocation11 + $0x2f0] sm:$0xff] }
 0x366   :  { %4789 = vmatpush3.bf16.msra.mxu0 %v4788_v5  ;;  %v4840_v5 = vpack.c.bf16 %v3035_v4, %v3034_v8 }
 0x367   :  { %4821 = vmatpush3.bf16.msra.mxu1 %v4820_v44  ;;  %4791 = vmatprep.subr.bf16.mxu0 %v4790_v1  ;;  %v3021_v44 = vld [vmem:[#allocation11 + $0x2f8] sm:$0xff]  ;;  %v3052_v1 = vld [vmem:[#allocation11 + $0x3f0] sm:$0xff] }
 0x368   :  { %4823 = vmatprep.subr.bf16.mxu1 %v4822_v28  ;;  %v4810_v38 = vpack.c.bf16 %v3021_v44, %v3020_v31  ;;  %v3005_v28 = vld [vmem:[#allocation11 + $0x278] sm:$0xff]  ;;  %v4842_v7 = vpack.c.bf16 %v3053_v62, %v3052_v1 }
 0x369   :  { %v4812_v32 = vpack.c.bf16 %v3005_v28, %v3004_v63 }
 0x36a   :  { %4793 = vmatpush3.bf16.msra.mxu0 %v4792_v0  ;;  %v1657_v0 = vrot.slane %v5477_v3, %v266_v48 }
 0x36b   :  { %4825 = vmatpush3.bf16.msra.mxu1 %v4824_v33  ;;  %4795 = vmatprep.subr.bf16.mxu0 %v4794_v17  ;;  %v1665_v33 = vrot.slane %v5477_v3, %v274_v2  ;;  %v1661_v17 = vrot.slane %v5477_v3, %v270_v36 }
 0x36c   :  { %4827 = vmatprep.subr.bf16.mxu1 %v4826_v13 }
 0x36e   :  { %4797 = vmatpush3.bf16.msra.mxu0 %v4796_v24 }
 0x36f   :  { %4829 = vmatpush3.bf16.msra.mxu1 %v4828_v12  ;;  %4799 = vmatprep.subr.bf16.mxu0 %v4798_v29 }
 0x370   :  { %4831 = vmatprep.subr.bf16.mxu1 %v4830_v18 }
 0x372   :  { %4801 = vmatpush3.bf16.msra.mxu0 %v4800_v53  ;;  %v3413_v53 = vld [vmem:[#allocation13] ss:$0 sm:$0xff] }
 0x373   :  { %4833 = vmatpush3.bf16.msra.mxu1 %v4832_v60  ;;  %4803 = vmatprep.subr.bf16.mxu0 %v4802_v49 }
 0x374   :  { %4835 = vmatprep.subr.bf16.mxu1 %v4834_v52 }
 0x376   :  { %4805 = vmatpush3.bf16.msra.mxu0 %v4804_v20 }
 0x377   :  { %4837 = vmatpush3.bf16.msra.mxu1 %v4836_v47  ;;  %4807 = vmatprep.subr.bf16.mxu0 %v4806_v50 }
 0x378   :  { %4839 = vmatprep.subr.bf16.mxu1 %v4838_v55 }
 0x37a   :  { %4809 = vmatpush3.bf16.msra.mxu0 %v4808_v6 }
 0x37b   :  { %4841 = vmatpush3.bf16.msra.mxu1 %v4840_v5  ;;  %4811 = vmatprep.subr.bf16.mxu0 %v4810_v38 }
 0x37c   :  { %4843 = vmatprep.subr.bf16.mxu1 %v4842_v7 }
 0x37e   :  { %4813 = vmatpush3.bf16.msra.mxu0 %v4812_v32 }
 0x37f   :  { %4845 = vmatpush3.bf16.msra.mxu1 %v4844_v58 }
 0x412   :  { %v2591_v9 = vpop.f32.mrb[12].mxu0 }
 0x413   :  { %v4854_v10 = vadd.f32 %v2591_v9, %v1657_v0  ;;  %v2899_v13 = vpop.f32.mrb[12].mxu1  ;;  %v2593_v23 = vpop.f32.mrb[13].mxu0 }
 0x414   :  { %v4858_v14 = vadd.f32 %v2899_v13, %v1665_v33  ;;  %v4855_v41 = vadd.f32 %v2593_v23, %v1661_v17  ;;  %v2901_v16 = vpop.f32.mrb[13].mxu1 }
 0x415   :  { %v4859_v48 = vadd.f32 %v2901_v16, %v1669_v51  ;;  %v2914_v12 = vmax.f32 %v4854_v10, 0.0 }
 0x416   :  { %v2915_v19 = vmax.f32 %v4855_v41, 0.0  ;;  %v2597_v24 = vpop.f32.mrb[14].mxu0  ;;  %v2916_v36 = vmax.f32 %v4858_v14, 0.0 }
 0x417   :  { %v2917_v2 = vmax.f32 %v4859_v48, 0.0  ;;  %v4856_v29 = vadd.f32 %v2597_v24, %v1657_v0  ;;  %v2905_v30 = vpop.f32.mrb[14].mxu1  ;;  %v2599_v61 = vpop.f32.mrb[15].mxu0 }
 0x418   :  { %v4860_v35 = vadd.f32 %v2905_v30, %v1665_v33  ;;  %v4857_v15 = vadd.f32 %v2599_v61, %v1661_v17  ;;  %v2907_v18 = vpop.f32.mrb[15].mxu1  ;;  %3275 = vmatprep.mubr.f32.mxu0 %v2915_v19 }
 0x419   :  { %v4861_v26 = vadd.f32 %v2907_v18, %v1669_v51  ;;  %3350 = vmatprep.mubr.f32.mxu1 %v2917_v2  ;;  %3276 = vmatmul.mubr.f32.vlgmr.msra.gmra.mrb[20].mxu0 %v2914_v12  ;;  %v2922_v37 = vmax.f32 %v4856_v29, 0.0 }
 0x41a   :  { %v2923_v3 = vmax.f32 %v4857_v15, 0.0  ;;  %3351 = vmatmul.mubr.f32.vlgmr.msra.gmra.mrb[20].mxu1 %v2916_v36  ;;  %v2924_v54 = vmax.f32 %v4860_v35, 0.0 }
 0x41b   :  { %v2925_v39 = vmax.f32 %v4861_v26, 0.0 }
 0x41c   :  { %3280 = vmatprep.mubr.f32.mxu0 %v2923_v3 }
 0x41d   :  { %3355 = vmatprep.mubr.f32.mxu1 %v2925_v39  ;;  %3281 = vmatmul.mubr.f32.gmra.mrb[22].mxu0 %v2922_v37 }
 0x41e   :  { %3356 = vmatmul.mubr.f32.gmra.mrb[22].mxu1 %v2924_v54 }
 0x433   :  { %v3446_v40 = vpop.f32.mrb[16].mxu0 }
 0x434   :  { %v3484_v59 = vpop.f32.mrb[16].mxu1  ;;  %v3447_v60 = vpop.f32.mrb[17].mxu0 }
 0x435   :  { %v3448_v49 = vadd.f32 %v3447_v60, %v3446_v40  ;;  %v3485_v42 = vpop.f32.mrb[17].mxu1 }
 0x436   :  { %v3486_v21 = vadd.f32 %v3485_v42, %v3484_v59 }
 0x437   :  { %v3128_v43 = vadd.f32 %v3448_v49, %v3413_v53  ;;  %v3449_v52 = vpop.f32.mrb[18].mxu0 }
 0x438   :  { %v3487_v11 = vpop.f32.mrb[18].mxu1  ;;  %v3450_v22 = vpop.f32.mrb[19].mxu0 }
 0x439   :  { %v3203_v46 = vadd.f32 %v3486_v21, %v3128_v43  ;;  %v3451_v25 = vadd.f32 %v3450_v22, %v3449_v52  ;;  %v3488_v45 = vpop.f32.mrb[19].mxu1 }
 0x43a   :  { %v3489_v20 = vadd.f32 %v3488_v45, %v3487_v11 }
 0x43b   :  { %v3133_v47 = vadd.f32 %v3451_v25, %v3413_v53 }
 0x43d   :  { %v3208_v50 = vadd.f32 %v3489_v20, %v3133_v47 }
 0x4ec   :  { %v3522_v55 = vpop.f32.mrb[20].mxu0 }
 0x4ed   :  { %v3560_v27 = vpop.f32.mrb[20].mxu1  ;;  %v3523_v57 = vpop.f32.mrb[21].mxu0 }
 0x4ee   :  { %v3524_v8 = vadd.f32 %v3523_v57, %v3522_v55  ;;  %v3561_v6 = vpop.f32.mrb[21].mxu1 }
 0x4ef   :  { %v3562_v4 = vadd.f32 %v3561_v6, %v3560_v27 }
 0x4f0   :  { %v3278_v5 = vadd.f32 %v3524_v8, %v3203_v46  ;;  %v3525_v31 = vpop.f32.mrb[22].mxu0 }
 0x4f1   :  { %v3563_v44 = vpop.f32.mrb[22].mxu1  ;;  %v3526_v1 = vpop.f32.mrb[23].mxu0 }
 0x4f2   :  { %v3353_v38 = vadd.f32 %v3562_v4, %v3278_v5  ;;  %v3527_v62 = vadd.f32 %v3526_v1, %v3525_v31  ;;  %v3564_v63 = vpop.f32.mrb[23].mxu1 }
 0x4f3   :  { %v3565_v28 = vadd.f32 %v3564_v63, %v3563_v44 }
 0x4f4   :  { %v3363_v7 = vand.u32 2147483647, %v3353_v38  ;;  %v3283_v32 = vadd.f32 %v3527_v62, %v3208_v50  ;;  %v3361_v2 = vmax.f32 %v3353_v38, 0.0 }
 0x4f6   :  { %v3365_v56 = vsub.f32 0.0, %v3363_v7  ;;  %v3358_v34 = vadd.f32 %v3565_v28, %v3283_v32 }
 0x4f8   :  { %v3367_v58 = vmul.f32 1.442695, %v3365_v56  ;;  %v3364_v0 = vand.u32 2147483647, %v3358_v34  ;;  %v3362_v18 = vmax.f32 %v3358_v34, 0.0 }
 0x4fa   :  { %4923 = vpow2.f32 %v3367_v58  ;;  %v3366_v33 = vsub.f32 0.0, %v3364_v0 }
 0x4fc   :  { %v3369_v17 = vmul.f32 1.442695, %v3366_v33 }
 0x4fe   :  { %4925 = vpow2.f32 %v3369_v17 }
 0x504   :  { %v4924_v51 = vpop.eup %4923 }
 0x505   :  { %v3371_v9 = vadd.f32 1.0, %v4924_v51  ;;  %v3374_v23 = vmul.f32 -0.5, %v4924_v51  ;;  %v3377_v16 = vand.u32 2147483647, %v4924_v51 }
 0x507   :  { %4927 = vlog2.f32 %v3371_v9  ;;  %v3375_v14 = vadd.f32 1.0, %v3374_v23  ;;  %vm3378_vm0 = vcmp.lt.f32.partialorder %v3377_v16, 0.0004427343 }
 0x508   :  { %v4926_v10 = vpop.eup %4925 }
 0x509   :  { %v3380_v13 = vadd.f32 1.0, %v4926_v10  ;;  %v3383_v41 = vmul.f32 -0.5, %v4926_v10  ;;  %v3376_v24 = vmul.f32 %v4924_v51, %v3375_v14  ;;  %v3386_v29 = vand.u32 2147483647, %v4926_v10 }
 0x50b   :  { %4929 = vlog2.f32 %v3380_v13  ;;  %v3384_v12 = vadd.f32 1.0, %v3383_v41  ;;  %vm3387_vm1 = vcmp.lt.f32.partialorder %v3386_v29, 0.0004427343 }
 0x50d   :  { %v3385_v15 = vmul.f32 %v4926_v10, %v3384_v12 }
 0x511   :  { %v4928_v48 = vpop.eup %4927 }
 0x512   :  { %v3373_v19 = vmul.f32 0.6931472, %v4928_v48 }
 0x514   :  { %v3379_v30 = vsel %vm3378_vm0, %v3376_v24, %v3373_v19 }
 0x515   :  { %v4930_v61 = vpop.eup %4929  ;;  %v3389_v36 = vadd.f32 %v3379_v30, %v3361_v2 }
 0x516   :  { %v3382_v35 = vmul.f32 0.6931472, %v4930_v61 }
 0x517   :  { %3391 = vst [vmem:[#allocation14] sm:$0xff] %v3389_v36 }
 0x518   :  { %v3388_v26 = vsel %vm3387_vm1, %v3385_v15, %v3382_v35 }
 0x519   :  { %v3390_v3 = vadd.f32 %v3388_v26, %v3362_v18 }
 0x51b   :  { %3392 = vst [vmem:[#allocation14 + $0x8] sm:$0xff] %v3390_v3 }
 0x51c   :  { %5097 = shalt.err (!%p5094_p4)
}
 0x51d   :  { %s5098_s17 = scalar_lea.hbm %s5547_s7, 256 }
 0x51e   :  { %p5099_p5 = scmp.ne.s32.totalorder %s5547_s7, %s5098_s17  ;;  %p5102_p6 = scmp.lt.u32.totalorder %s5098_s17, %s5547_s7 }
 0x520   :  { %p5104_p7 = pnand %p5102_p6, %p5099_p5 }
 0x522   :  { %5107 = shalt.err (!%p5104_p7)
}
 0x523   :  { %3404 = dma.vmem_to_hbm [thread:$0]  %s3399_s3, 256, %s5547_s7, [#allocation4], %s5124_s11, %s5124_s11, %s5125_s12  }
 0x524   :  { %5116 = dma.done.wait [#allocation4], 256  }
 0x525   :  { %5117 = vsyncadd [#allocation4], 4294967040 }
 0x526   :  { %3408 = vsyncpa [#allocation3], 1 }
 0x527   :  { %3409 = vsyncpa [#allocation6], 1 }
 0x528   :  { %3410 = vsyncpa [#allocation9], 1 }
 0x529   :  { %3411 = vsyncpa [#allocation12], 1 }
 0x52a   :  { %3412 = vsyncpa [#allocation4], 1 }

</bundles_post_ra>
